<compile_context>
chip_gen: v7x
topology: tpu7x:2x2x1
jax: 0.10.0
libtpu: 0.0.40
codegen_flags: <defaults>
</compile_context>

<pallas_src>
import math
from functools import partial

import jax
import jax.numpy as jnp
from jax.experimental import pallas as pl
from jax.experimental.pallas import tpu as pltpu

MIN_NORM = 1e-15
ATANH_EPS = 1e-7


# ----------------------------- parameter setup (plain JAX glue) --------------

def init_hyp_fc_params(key, out_dim, in_dim):
    """Hyp_plus_MLR params: z_mlr ~ U(-0.05, 0.05); mlr_r ~ U(-1, 1) (bias=False)."""
    kz, kr = jax.random.split(key)
    z_mlr = jax.random.uniform(kz, (out_dim, in_dim), jnp.float32, -0.05, 0.05)
    mlr_r = jax.random.uniform(kr, (out_dim, 1), jnp.float32, -1.0, 1.0)
    return z_mlr, mlr_r


def _preprocess_fc(z_mlr, mlr_r, c):
    """Pure functions of the weights -> per-class tensors consumed by the kernel."""
    sc = math.sqrt(c)
    a = (1.0 / jnp.cosh(mlr_r * sc) ** 2) * z_mlr                    # a_k        (N, D)
    norm_a = jnp.linalg.norm(a, axis=-1)                             # ||a_k||    (N,)
    a_hat = a / jnp.maximum(norm_a, 1e-12)[:, None]                  # normalize  (N, D)
    # TODO(synk): the original uses the *full* mlr_r matrix here (a broadcasting
    # bug that only runs when batch == num_class); the intended per-class
    # mlr_r[cl] * z_mlr[cl] is used.
    u = mlr_r * z_mlr                                                # (N, D)
    un = jnp.maximum(jnp.linalg.norm(u, axis=-1, keepdims=True), MIN_NORM)
    q = jnp.tanh(sc * un) / (sc * un) * u                            # expmap0    (N, D)
    q2 = jnp.sum(q * q, axis=-1)                                     # (N,)
    qa = jnp.sum(q * a_hat, axis=-1)                                 # (N,)
    return q, a_hat, jnp.stack([norm_a, q2, qa], axis=0)             # (3, N)


def pack_params(fc_params, biases, c, d_in, H):
    """Pack the four live FCs.

    Gate lane order: [Wz | Wr | Uz | Ur], each H classes wide (NW = 4H lanes).
      W_h   (H, 8H)  : h-side weights; cols [0,4H)=q-proj, [4H,8H)=a_hat-proj
      W_x   (d_in,8H): x-side weights
      stats (6, 4H)  : rows = [||a||, ||q||^2, <q,a_hat>, h-gate selector,
                               bias lane [bz|br|bz|br], ||b_chain||^2]
      aux   (4H, 8H) : [S | P]  S = same-gate block-ones (segmented sums),
                                P = partner-gate permutation (Wz<->Uz, Wr<->Ur)
      bh    (1, H)   : b_h row for the GRU tail
    """
    NW = 4 * H
    b_z, b_r, b_h = biases
    gates = [("Wz", "h", H), ("Wr", "h", H), ("Uz", "x", d_in), ("Ur", "x", d_in)]
    W_h = jnp.zeros((H, 2 * NW), jnp.float32)
    W_x = jnp.zeros((d_in, 2 * NW), jnp.float32)
    stat_cols, sel_cols = [], []
    for gi, (name, side, D) in enumerate(gates):
        q, a_hat, s = _preprocess_fc(*fc_params[name], c)            # (H, D), (H, D), (3, H)
        col0 = gi * H
        if side == "h":
            W_h = W_h.at[:, col0:col0 + H].set(q.T)
            W_h = W_h.at[:, NW + col0:NW + col0 + H].set(a_hat.T)
        else:
            W_x = W_x.at[:, col0:col0 + H].set(q.T)
            W_x = W_x.at[:, NW + col0:NW + col0 + H].set(a_hat.T)
        stat_cols.append(s)
        sel_cols.append(jnp.full((1, H), 1.0 if side == "h" else 0.0, jnp.float32))
    stats3 = jnp.concatenate(stat_cols, axis=-1)                     # (3, 4H)
    sel = jnp.concatenate(sel_cols, axis=-1)                         # (1, 4H)
    ones_h = jnp.ones((H,), jnp.float32)
    bias_lane = jnp.concatenate([b_z, b_r, b_z, b_r])[None, :]       # (1, 4H)
    bz2 = jnp.sum(b_z * b_z)
    br2 = jnp.sum(b_r * b_r)
    bias2 = jnp.concatenate([ones_h * bz2, ones_h * br2,
                             ones_h * bz2, ones_h * br2])[None, :]   # (1, 4H)
    stats = jnp.concatenate([stats3, sel, bias_lane, bias2], axis=0).astype(jnp.float32)

    idx = jnp.arange(NW)
    gid = idx // H
    S = (gid[:, None] == gid[None, :]).astype(jnp.float32)           # (4H, 4H)
    P = (idx[:, None] == ((idx[None, :] + 2 * H) % NW)).astype(jnp.float32)
    aux = jnp.concatenate([S, P], axis=1)                            # (4H, 8H)
    return W_h, W_x, stats, aux, b_h[None, :].astype(jnp.float32)


# ----------------------------- Pallas kernel ---------------------------------

def _make_kernel(c, H):
    sc = math.sqrt(c)
    NW = 4 * H
    # Full-precision f32 MXU passes: the 5e-3 budget does not survive bf16-
    # demoted products once they hit the near-singular mobius denominators.
    dot32 = partial(jnp.dot, preferred_element_type=jnp.float32,
                    precision=jax.lax.Precision.HIGHEST)

    def _sinh(x):
        # exact two-exp sinh (the approx-reciprocal variant was the dominant
        # error source in the previous version).
        return 0.5 * (jnp.exp(x) - jnp.exp(-x))

    def _sigmoid(x):
        return 0.5 * (jnp.tanh(0.5 * x) + 1.0)

    def _asinh(x):
        x = jnp.clip(x, -3e18, 3e18)     # keeps x*x finite in f32
        s = jnp.where(x >= 0.0, 1.0, -1.0)
        ax = jnp.abs(x)
        return s * jnp.log(ax + jnp.sqrt(ax * ax + 1.0))

    def _atanh(x):
        xx = jnp.clip(x, -1.0 + ATANH_EPS, 1.0 - ATANH_EPS)
        return 0.5 * jnp.log((1.0 + xx) / (1.0 - xx))

    def kernel(x_ref, h_ref, wh_ref, wx_ref, stats_ref, aux_ref, bh_ref, out_ref):
        x = x_ref[...]                       # (TB, d_in)
        h = h_ref[...]                       # (TB, H)
        S = aux_ref[:, :NW]                  # (4H, 4H) same-gate block-ones
        P = aux_ref[:, NW:]                  # (4H, 4H) partner-gate permutation

        naB = stats_ref[0:1, :]              # ||a_k||                  (1, 4H)
        q2B = stats_ref[1:2, :]              # ||q_k||^2
        qaB = stats_ref[2:3, :]              # <q_k, a_hat_k>
        selH = stats_ref[3:4, :]             # 1.0 on h-gate lanes (Wz|Wr)
        b_lane = stats_ref[4:5, :]           # [b_z | b_r | b_z | b_r]
        b2B = stats_ref[5:6, :]              # ||b_chain||^2 per lane

        h2 = jnp.sum(h * h, axis=-1, keepdims=True)          # (TB, 1)
        x2 = jnp.sum(x * x, axis=-1, keepdims=True)

        # All 8 per-gate projections in one MXU pass per operand.
        packed = dot32(h, wh_ref[...]) + dot32(x, wx_ref[...])   # (TB, 8H)
        xq = packed[:, :NW]                  # <inp_g, q_gk>         (TB, 4H)
        xa = packed[:, NW:]                  # <inp_g, a_hat_gk>     (TB, 4H)

        inp2 = h2 * selH + x2 * (1.0 - selH)                  # (TB, 4H)

        # --- Hyp_plus_MLR for all 4 gates (lane dense) --------------------
        # mobius_add(-q_k, inp) = (-alpha*q + beta*inp)/den, expanded.
        two_c_xq = 2.0 * c * xq
        alpha = 1.0 - two_c_xq + c * inp2
        beta = 1.0 - c * q2B
        invd = 1.0 / jnp.maximum(1.0 - two_c_xq + (c * c) * q2B * inp2, MIN_NORM)
        v2 = (alpha * alpha * q2B - 2.0 * alpha * beta * xq
              + beta * beta * inp2) * (invd * invd)
        va = (beta * xa - alpha * qaB) * invd
        arg = 2.0 * va / (1.0 - v2)          # unclamped, as in the reference
        w = _sinh((2.0 * naB) * _asinh(arg) * sc)             # (TB, 4H)

        # --- Hyp_plus_FC epilogue (lane dense; segmented sums on the MXU) -
        # TODO(synk): original scales by a (B,)-shaped norm (broadcast bug
        # unless B == out_dim); the intended per-row keepdims norm is used.
        w2g = dot32(w * w, S)                # per-gate ||w||^2, lane-broadcast
        y = (jnp.sqrt(c * w2g) + 1.0) * w    # [fcWz(h)|fcWr(h)|fcUz(x)|fcUr(x)]

        # --- mobius_add(fcW*(h), fcU*(x)) for z / r chains (lane dense) ---
        y_sw = dot32(y, P)                   # partner gate, component aligned
        a2 = dot32(y * y, S)
        pb2 = dot32(y_sw * y_sw, S)
        ab = dot32(y * y_sw, S)
        inv1 = 1.0 / jnp.maximum(1.0 + 2.0 * c * ab + (c * c) * a2 * pb2, MIN_NORM)
        zr0 = (((1.0 + 2.0 * c * ab + c * pb2) * inv1) * y
               + ((1.0 - c * a2) * inv1) * y_sw)
        # lanes [0,2H) = [mob_add(Wz,Uz) | mob_add(Wr,Ur)]; lanes [2H,4H) unused

        # --- mobius_add(. , b_z / b_r) (lane dense) ------------------------
        p2 = dot32(zr0 * zr0, S)
        pdb = dot32(zr0 * b_lane, S)
        inv2 = 1.0 / jnp.maximum(1.0 + 2.0 * c * pdb + (c * c) * p2 * b2B, MIN_NORM)
        zr1 = (((1.0 + 2.0 * c * pdb + c * b2B) * inv2) * zr0
               + ((1.0 - c * p2) * inv2) * b_lane)

        # --- sigmoid(logmap0(.)) (lane dense) ------------------------------
        n2 = dot32(zr1 * zr1, S)
        yn = jnp.maximum(jnp.sqrt(n2), MIN_NORM)
        zr = _sigmoid((_atanh(sc * yn) / (sc * yn)) * zr1)

        z = zr[:, 0:H]                       # (TB, H)
        r = zr[:, H:2 * H]                   # (TB, H)

        # --- GRU tail (inherently H-wide: the semantic output width) -------
        def mob_add(a, b, a2_=None, b2_=None):
            if a2_ is None:
                a2_ = jnp.sum(a * a, axis=-1, keepdims=True)
            if b2_ is None:
                b2_ = jnp.sum(b * b, axis=-1, keepdims=True)
            ab_ = jnp.sum(a * b, axis=-1, keepdims=True)
            inv = 1.0 / jnp.maximum(1.0 + 2.0 * c * ab_ + c * c * a2_ * b2_, MIN_NORM)
            return ((1.0 + 2.0 * c * ab_ + c * b2_) * inv) * a + ((1.0 - c * a2_) * inv) * b

        def mob_pw_mul(wv, xv):
            xn = jnp.maximum(jnp.sqrt(jnp.sum(xv * xv, axis=-1, keepdims=True)), MIN_NORM)
            wx = wv * xv
            wxn = jnp.maximum(jnp.sqrt(jnp.sum(wx * wx, axis=-1, keepdims=True)), MIN_NORM)
            t = (wxn / xn) * (_atanh(sc * xn) / sc)
            return ((jnp.tanh(sc * t) / sc) / wxn) * wx

        bh = bh_ref[...]                                       # (1, H)
        bh2 = jnp.sum(bh * bh, axis=-1, keepdims=True)         # (1, 1)

        # NOTE: the original forward overwrites h_tilde right after computing
        # fc_Wh(mobius_pointwise_mul(hidden, r)) / fc_Uh(hyp_x), so that dead
        # compute never reaches the output and is skipped here.
        h_tilde = mob_add(r, bh, b2_=bh2)
        mh_ht = mob_add(-h, h_tilde, a2_=h2)
        out_ref[...] = mob_add(h, mob_pw_mul(mh_ht, z), a2_=h2)

    return kernel


def hyper_gru_cell_forward(hyp_x, hidden, fc_params, biases, c, block_b=None):
    B, d_in = hyp_x.shape
    _, H = hidden.shape

    # One grid step for small batches (pipeline overhead paid once); for large
    # batches cap the tile (VMEM headroom, v7x has 64 MiB) and keep >= 2 steps
    # so both v7x TensorCores get work.  Ragged batches are padded, not asserted.
    if block_b is None:
        if B <= 256:
            block_b = B
        else:
            block_b = min(512, ((B + 1) // 2 + 7) // 8 * 8)
    grid = pl.cdiv(B, block_b)
    b_pad = grid * block_b

    x_in, h_in = hyp_x, hidden
    if b_pad != B:
        x_in = jnp.pad(hyp_x, ((0, b_pad - B), (0, 0)))
        h_in = jnp.pad(hidden, ((0, b_pad - B), (0, 0)))

    W_h, W_x, stats, aux, bh = pack_params(fc_params, biases, c, d_in, H)

    def _full(arr):
        n = arr.ndim
        return pl.BlockSpec(arr.shape, lambda i, _n=n: (0,) * _n)

    grid_spec = pltpu.PrefetchScalarGridSpec(
        num_scalar_prefetch=0,
        grid=(grid,),
        in_specs=[pl.BlockSpec((block_b, d_in), lambda i: (i, 0)),
                  pl.BlockSpec((block_b, H), lambda i: (i, 0)),
                  _full(W_h), _full(W_x), _full(stats), _full(aux), _full(bh)],
        out_specs=pl.BlockSpec((block_b, H), lambda i: (i, 0)),
    )

    out = pl.pallas_call(
        _make_kernel(c, H),
        out_shape=jax.ShapeDtypeStruct((b_pad, H), jnp.float32),
        grid_spec=grid_spec,
        compiler_params=pltpu.CompilerParams(dimension_semantics=("parallel",)),
    )(x_in, h_in, W_h, W_x, stats, aux, bh)
    return out[:B]


# ----------------------------- pure-JAX reference ----------------------------

def _expmap0_ref(u, c):
    sc = math.sqrt(c)
    un = jnp.maximum(jnp.linalg.norm(u, axis=-1, keepdims=True), MIN_NORM)
    return jnp.tanh(sc * un) / (sc * un) * u


def _mobius_add_ref(x, y, c):
    x2 = jnp.sum(x * x, axis=-1, keepdims=True)
    y2 = jnp.sum(y * y, axis=-1, keepdims=True)
    xy = jnp.sum(x * y, axis=-1, keepdims=True)
    num = (1.0 + 2.0 * c * xy + c * y2) * x + (1.0 - c * x2) * y
    den = jnp.maximum(1.0 + 2.0 * c * xy + c * c * x2 * y2, MIN_NORM)
    return num / den


def _logmap0_ref(y, c):
    sc = math.sqrt(c)
    yn = jnp.maximum(jnp.linalg.norm(y, axis=-1, keepdims=True), MIN_NORM)
    return jnp.arctanh(jnp.clip(sc * yn, -1.0 + ATANH_EPS, 1.0 - ATANH_EPS)) / (sc * yn) * y


def _mobius_pw_mul_ref(w, x, c):
    sc = math.sqrt(c)
    xn = jnp.maximum(jnp.linalg.norm(x, axis=-1, keepdims=True), MIN_NORM)
    wx = w * x
    wxn = jnp.maximum(jnp.linalg.norm(wx, axis=-1, keepdims=True), MIN_NORM)
    t = (wxn / xn) * (jnp.arctanh(jnp.clip(sc * xn, -1.0 + ATANH_EPS, 1.0 - ATANH_EPS)) / sc)
    return jnp.tanh(sc * t) / sc * (wx / wxn)


def _hyp_fc_ref(x, z_mlr, mlr_r, c):
    sc = math.sqrt(c)
    logits = []
    for cl in range(z_mlr.shape[0]):
        a_k = (1.0 / jnp.cosh(mlr_r[cl] * sc) ** 2) * z_mlr[cl]
        q_k = _expmap0_ref(mlr_r[cl] * z_mlr[cl], c)
        v = _mobius_add_ref(-q_k[None, :], x, c)
        norm_a = jnp.linalg.norm(a_k)
        lam = 2.0 / (1.0 - jnp.sum(v * v, axis=1))
        a_hat = a_k / jnp.maximum(norm_a, 1e-12)
        pxa = jnp.sum(v * a_hat[None, :], axis=1)
        logits.append(2.0 * norm_a * jnp.arcsinh(pxa * lam))
    v_k = jnp.stack(logits, axis=1)
    w = jnp.sinh(v_k * sc)
    wn = jnp.linalg.norm(w, axis=-1, keepdims=True)
    return (jnp.sqrt(c * wn ** 2) + 1.0) * w


def hyper_gru_cell_ref(x, h, fc_params, biases, c):
    b_z, b_r, b_h = biases
    FC = lambda inp, name: _hyp_fc_ref(inp, *fc_params[name], c)
    z = _mobius_add_ref(_mobius_add_ref(FC(h, "Wz"), FC(x, "Uz"), c), b_z[None, :], c)
    z = jax.nn.sigmoid(_logmap0_ref(z, c))
    r = _mobius_add_ref(_mobius_add_ref(FC(h, "Wr"), FC(x, "Ur"), c), b_r[None, :], c)
    r = jax.nn.sigmoid(_logmap0_ref(r, c))
    r_point_h = _mobius_pw_mul_ref(h, r, c)
    h_tilde = _mobius_add_ref(FC(r_point_h, "Wh"), FC(x, "Uh"), c)  # discarded, as in original
    h_tilde = _mobius_add_ref(r, b_h[None, :], c)
    mh = _mobius_add_ref(-h, h_tilde, c)
    return _mobius_add_ref(h, _mobius_pw_mul_ref(mh, z, c), c)


# ----------------------------- demo -----------------------------------------

if __name__ == "__main__":
    B, INPUT_SIZE, HIDDEN_SIZE = 16, 48, 32
    C = 1.0

    key = jax.random.PRNGKey(0)
    k = jax.random.split(key, 8)
    fc_params = {
        "Wz": init_hyp_fc_params(k[0], HIDDEN_SIZE, HIDDEN_SIZE),
        "Uz": init_hyp_fc_params(k[1], HIDDEN_SIZE, INPUT_SIZE),
        "Wh": init_hyp_fc_params(k[2], HIDDEN_SIZE, HIDDEN_SIZE),
        "Uh": init_hyp_fc_params(k[3], HIDDEN_SIZE, INPUT_SIZE),
        "Wr": init_hyp_fc_params(k[4], HIDDEN_SIZE, HIDDEN_SIZE),
        "Ur": init_hyp_fc_params(k[5], HIDDEN_SIZE, INPUT_SIZE),
    }
    # b_z, b_r, b_h are ManifoldTensor(...).zero_() -> zeros
    biases = (jnp.zeros((HIDDEN_SIZE,), jnp.float32),
              jnp.zeros((HIDDEN_SIZE,), jnp.float32),
              jnp.zeros((HIDDEN_SIZE,), jnp.float32))

    # Inputs are points on the ball: expmap0 of small random tangent vectors.
    hyp_x = _expmap0_ref(0.1 * jax.random.normal(k[6], (B, INPUT_SIZE), jnp.float32), C)
    hidden = _expmap0_ref(0.1 * jax.random.normal(k[7], (B, HIDDEN_SIZE), jnp.float32), C)

    out = hyper_gru_cell_forward(hyp_x, hidden, fc_params, biases, C)
    out = jax.block_until_ready(out)

    ref = hyper_gru_cell_ref(hyp_x, hidden, fc_params, biases, C)
    err = float(jnp.max(jnp.abs(out - ref)))
    assert out.shape == (B, HIDDEN_SIZE) and out.dtype == jnp.float32
    assert err < 5e-3, f"max abs err too large: {err}"
    print("KERNEL_OK")
</pallas_src>

<mosaic_0001>
module attributes {stable_mosaic.version = 11 : i64} {
  func.func @kernel(%arg0: i32, %arg1: memref<16x48xf32, #tpu.memory_space<vmem>>, %arg2: memref<16x32xf32, #tpu.memory_space<vmem>>, %arg3: memref<32x256xf32, #tpu.memory_space<vmem>>, %arg4: memref<48x256xf32, #tpu.memory_space<vmem>>, %arg5: memref<6x128xf32, #tpu.memory_space<vmem>>, %arg6: memref<128x256xf32, #tpu.memory_space<vmem>>, %arg7: memref<1x32xf32, #tpu.memory_space<vmem>>, %arg8: memref<16x32xf32, #tpu.memory_space<vmem>>) attributes {dimension_semantics = [#tpu.dimension_semantics<parallel>], iteration_bounds = array<i64: 1>, scalar_prefetch = 0 : i64, scratch_operands = 0 : i64, tpu.core_type = #tpu.core_type<tc>, window_params = [{transform_indices = @transform_0, window_bounds = array<i64: 16, 48>}, {transform_indices = @transform_1, window_bounds = array<i64: 16, 32>}, {pipeline_mode = #tpu.pipeline_mode<synchronous>, transform_indices = @transform_2, window_bounds = array<i64: 32, 256>}, {pipeline_mode = #tpu.pipeline_mode<synchronous>, transform_indices = @transform_3, window_bounds = array<i64: 48, 256>}, {pipeline_mode = #tpu.pipeline_mode<synchronous>, transform_indices = @transform_4, window_bounds = array<i64: 6, 128>}, {pipeline_mode = #tpu.pipeline_mode<synchronous>, transform_indices = @transform_5, window_bounds = array<i64: 128, 256>}, {pipeline_mode = #tpu.pipeline_mode<synchronous>, transform_indices = @transform_6, window_bounds = array<i64: 1, 32>}, {transform_indices = @transform_7, window_bounds = array<i64: 16, 32>}]} {
    %c0 = arith.constant 0 : index
    %c0_0 = arith.constant 0 : index
    %0 = vector.load %arg1[%c0, %c0_0] : memref<16x48xf32, #tpu.memory_space<vmem>>, vector<16x48xf32>
    %c0_1 = arith.constant 0 : index
    %c0_2 = arith.constant 0 : index
    %1 = vector.load %arg2[%c0_1, %c0_2] : memref<16x32xf32, #tpu.memory_space<vmem>>, vector<16x32xf32>
    %c0_3 = arith.constant 0 : index
    %c0_4 = arith.constant 0 : index
    %2 = vector.load %arg6[%c0_3, %c0_4] : memref<128x256xf32, #tpu.memory_space<vmem>>, vector<128x128xf32>
    %c0_5 = arith.constant 0 : index
    %c128 = arith.constant 128 : index
    %3 = vector.load %arg6[%c0_5, %c128] : memref<128x256xf32, #tpu.memory_space<vmem>>, vector<128x128xf32>
    %c0_6 = arith.constant 0 : index
    %c0_7 = arith.constant 0 : index
    %4 = vector.load %arg5[%c0_6, %c0_7] : memref<6x128xf32, #tpu.memory_space<vmem>>, vector<1x128xf32>
    %c1 = arith.constant 1 : index
    %c0_8 = arith.constant 0 : index
    %5 = vector.load %arg5[%c1, %c0_8] : memref<6x128xf32, #tpu.memory_space<vmem>>, vector<1x128xf32>
    %c2 = arith.constant 2 : index
    %c0_9 = arith.constant 0 : index
    %6 = vector.load %arg5[%c2, %c0_9] : memref<6x128xf32, #tpu.memory_space<vmem>>, vector<1x128xf32>
    %c3 = arith.constant 3 : index
    %c0_10 = arith.constant 0 : index
    %7 = vector.load %arg5[%c3, %c0_10] : memref<6x128xf32, #tpu.memory_space<vmem>>, vector<1x128xf32>
    %c4 = arith.constant 4 : index
    %c0_11 = arith.constant 0 : index
    %8 = vector.load %arg5[%c4, %c0_11] : memref<6x128xf32, #tpu.memory_space<vmem>>, vector<1x128xf32>
    %c5 = arith.constant 5 : index
    %c0_12 = arith.constant 0 : index
    %9 = vector.load %arg5[%c5, %c0_12] : memref<6x128xf32, #tpu.memory_space<vmem>>, vector<1x128xf32>
    %10 = arith.mulf %1, %1 : vector<16x32xf32>
    %cst = arith.constant dense<0.000000e+00> : vector<16xf32>
    %11 = vector.multi_reduction <add>, %10, %cst [1] : vector<16x32xf32> to vector<16xf32>
    %12 = vector.shape_cast %11 : vector<16xf32> to vector<16x1xf32>
    %13 = arith.mulf %0, %0 : vector<16x48xf32>
    %cst_13 = arith.constant dense<0.000000e+00> : vector<16xf32>
    %14 = vector.multi_reduction <add>, %13, %cst_13 [1] : vector<16x48xf32> to vector<16xf32>
    %15 = vector.shape_cast %14 : vector<16xf32> to vector<16x1xf32>
    %c0_14 = arith.constant 0 : index
    %c0_15 = arith.constant 0 : index
    %16 = vector.load %arg3[%c0_14, %c0_15] : memref<32x256xf32, #tpu.memory_space<vmem>>, vector<32x256xf32>
    %cst_16 = arith.constant dense<0.000000e+00> : vector<16x256xf32>
    %17 = tpu.matmul %1, %16, %cst_16 {dimension_numbers = #tpu.dot_dimension_numbers<[1], [0], [0], [1], [0, 0, 1, 1], [], []>, precision = #tpu.contract_precision<fp32>} : vector<16x32xf32>, vector<32x256xf32>, vector<16x256xf32> -> vector<16x256xf32>
    %c0_17 = arith.constant 0 : index
    %c0_18 = arith.constant 0 : index
    %18 = vector.load %arg4[%c0_17, %c0_18] : memref<48x256xf32, #tpu.memory_space<vmem>>, vector<48x256xf32>
    %cst_19 = arith.constant dense<0.000000e+00> : vector<16x256xf32>
    %19 = tpu.matmul %0, %18, %cst_19 {dimension_numbers = #tpu.dot_dimension_numbers<[1], [0], [0], [1], [0, 0, 1, 1], [], []>, precision = #tpu.contract_precision<fp32>} : vector<16x48xf32>, vector<48x256xf32>, vector<16x256xf32> -> vector<16x256xf32>
    %20 = arith.addf %17, %19 : vector<16x256xf32>
    %21 = vector.extract_strided_slice %20 {offsets = [0, 0], sizes = [16, 128], strides = [1, 1]} : vector<16x256xf32> to vector<16x128xf32>
    %22 = vector.extract_strided_slice %20 {offsets = [0, 128], sizes = [16, 128], strides = [1, 1]} : vector<16x256xf32> to vector<16x128xf32>
    %23 = vector.broadcast %12 : vector<16x1xf32> to vector<16x128xf32>
    %24 = vector.broadcast %7 : vector<1x128xf32> to vector<16x128xf32>
    %25 = arith.mulf %23, %24 : vector<16x128xf32>
    %cst_20 = arith.constant 1.000000e+00 : f32
    %26 = vector.broadcast %cst_20 : f32 to vector<1x128xf32>
    %27 = arith.subf %26, %7 : vector<1x128xf32>
    %28 = vector.broadcast %15 : vector<16x1xf32> to vector<16x128xf32>
    %29 = vector.broadcast %27 : vector<1x128xf32> to vector<16x128xf32>
    %30 = arith.mulf %28, %29 : vector<16x128xf32>
    %31 = arith.addf %25, %30 : vector<16x128xf32>
    %cst_21 = arith.constant 2.000000e+00 : f32
    %32 = vector.broadcast %cst_21 : f32 to vector<16x128xf32>
    %33 = arith.mulf %32, %21 : vector<16x128xf32>
    %cst_22 = arith.constant 1.000000e+00 : f32
    %34 = vector.broadcast %cst_22 : f32 to vector<16x128xf32>
    %35 = arith.subf %34, %33 : vector<16x128xf32>
    %cst_23 = arith.constant 1.000000e+00 : f32
    %36 = vector.broadcast %cst_23 : f32 to vector<16x128xf32>
    %37 = arith.mulf %36, %31 : vector<16x128xf32>
    %38 = arith.addf %35, %37 : vector<16x128xf32>
    %cst_24 = arith.constant 1.000000e+00 : f32
    %39 = vector.broadcast %cst_24 : f32 to vector<1x128xf32>
    %40 = arith.mulf %39, %5 : vector<1x128xf32>
    %cst_25 = arith.constant 1.000000e+00 : f32
    %41 = vector.broadcast %cst_25 : f32 to vector<1x128xf32>
    %42 = arith.subf %41, %40 : vector<1x128xf32>
    %cst_26 = arith.constant 1.000000e+00 : f32
    %43 = vector.broadcast %cst_26 : f32 to vector<16x128xf32>
    %44 = arith.subf %43, %33 : vector<16x128xf32>
    %cst_27 = arith.constant 1.000000e+00 : f32
    %45 = vector.broadcast %cst_27 : f32 to vector<1x128xf32>
    %46 = arith.mulf %45, %5 : vector<1x128xf32>
    %47 = vector.broadcast %46 : vector<1x128xf32> to vector<16x128xf32>
    %48 = arith.mulf %47, %31 : vector<16x128xf32>
    %49 = arith.addf %44, %48 : vector<16x128xf32>
    %cst_28 = arith.constant 1.000000e-15 : f32
    %50 = vector.broadcast %cst_28 : f32 to vector<16x128xf32>
    %51 = arith.maximumf %49, %50 : vector<16x128xf32>
    %cst_29 = arith.constant 1.000000e+00 : f32
    %52 = vector.broadcast %cst_29 : f32 to vector<16x128xf32>
    %53 = arith.divf %52, %51 : vector<16x128xf32>
    %54 = arith.mulf %38, %38 : vector<16x128xf32>
    %55 = vector.broadcast %5 : vector<1x128xf32> to vector<16x128xf32>
    %56 = arith.mulf %54, %55 : vector<16x128xf32>
    %cst_30 = arith.constant 2.000000e+00 : f32
    %57 = vector.broadcast %cst_30 : f32 to vector<16x128xf32>
    %58 = arith.mulf %57, %38 : vector<16x128xf32>
    %59 = vector.broadcast %42 : vector<1x128xf32> to vector<16x128xf32>
    %60 = arith.mulf %58, %59 : vector<16x128xf32>
    %61 = arith.mulf %60, %21 : vector<16x128xf32>
    %62 = arith.subf %56, %61 : vector<16x128xf32>
    %63 = arith.mulf %42, %42 : vector<1x128xf32>
    %64 = vector.broadcast %63 : vector<1x128xf32> to vector<16x128xf32>
    %65 = arith.mulf %64, %31 : vector<16x128xf32>
    %66 = arith.addf %62, %65 : vector<16x128xf32>
    %67 = arith.mulf %53, %53 : vector<16x128xf32>
    %68 = arith.mulf %66, %67 : vector<16x128xf32>
    %69 = vector.broadcast %42 : vector<1x128xf32> to vector<16x128xf32>
    %70 = arith.mulf %69, %22 : vector<16x128xf32>
    %71 = vector.broadcast %6 : vector<1x128xf32> to vector<16x128xf32>
    %72 = arith.mulf %38, %71 : vector<16x128xf32>
    %73 = arith.subf %70, %72 : vector<16x128xf32>
    %74 = arith.mulf %73, %53 : vector<16x128xf32>
    %cst_31 = arith.constant 2.000000e+00 : f32
    %75 = vector.broadcast %cst_31 : f32 to vector<16x128xf32>
    %76 = arith.mulf %75, %74 : vector<16x128xf32>
    %cst_32 = arith.constant 1.000000e+00 : f32
    %77 = vector.broadcast %cst_32 : f32 to vector<16x128xf32>
    %78 = arith.subf %77, %68 : vector<16x128xf32>
    %79 = arith.divf %76, %78 : vector<16x128xf32>
    %cst_33 = arith.constant 2.000000e+00 : f32
    %80 = vector.broadcast %cst_33 : f32 to vector<1x128xf32>
    %81 = arith.mulf %80, %4 : vector<1x128xf32>
    %cst_34 = arith.constant -3.000000e+18 : f32
    %cst_35 = arith.constant 3.000000e+18 : f32
    %82 = vector.broadcast %cst_34 : f32 to vector<16x128xf32>
    %83 = arith.maximumf %82, %79 : vector<16x128xf32>
    %84 = vector.broadcast %cst_35 : f32 to vector<16x128xf32>
    %85 = arith.minimumf %84, %83 : vector<16x128xf32>
    %cst_36 = arith.constant 0.000000e+00 : f32
    %86 = vector.broadcast %cst_36 : f32 to vector<16x128xf32>
    %87 = arith.cmpf oge, %85, %86 : vector<16x128xf32>
    %cst_37 = arith.constant 1.000000e+00 : f32
    %cst_38 = arith.constant -1.000000e+00 : f32
    %88 = vector.broadcast %cst_37 : f32 to vector<16x128xf32>
    %89 = vector.broadcast %cst_38 : f32 to vector<16x128xf32>
    %90 = arith.select %87, %88, %89 : vector<16x128xi1>, vector<16x128xf32>
    %91 = math.absf %85 : vector<16x128xf32>
    %92 = arith.mulf %91, %91 : vector<16x128xf32>
    %cst_39 = arith.constant 1.000000e+00 : f32
    %93 = vector.broadcast %cst_39 : f32 to vector<16x128xf32>
    %94 = arith.addf %92, %93 : vector<16x128xf32>
    %95 = math.sqrt %94 : vector<16x128xf32>
    %96 = arith.addf %91, %95 : vector<16x128xf32>
    %97 = math.log %96 : vector<16x128xf32>
    %98 = arith.mulf %90, %97 : vector<16x128xf32>
    %99 = vector.broadcast %81 : vector<1x128xf32> to vector<16x128xf32>
    %100 = arith.mulf %99, %98 : vector<16x128xf32>
    %cst_40 = arith.constant 1.000000e+00 : f32
    %101 = vector.broadcast %cst_40 : f32 to vector<16x128xf32>
    %102 = arith.mulf %100, %101 : vector<16x128xf32>
    %103 = math.exp %102 : vector<16x128xf32>
    %cst_41 = arith.constant 0.000000e+00 : f32
    %104 = vector.broadcast %cst_41 : f32 to vector<16x128xf32>
    %105 = arith.subf %104, %102 : vector<16x128xf32>
    %106 = math.exp %105 : vector<16x128xf32>
    %107 = arith.subf %103, %106 : vector<16x128xf32>
    %cst_42 = arith.constant 5.000000e-01 : f32
    %108 = vector.broadcast %cst_42 : f32 to vector<16x128xf32>
    %109 = arith.mulf %108, %107 : vector<16x128xf32>
    %110 = arith.mulf %109, %109 : vector<16x128xf32>
    %cst_43 = arith.constant dense<0.000000e+00> : vector<16x128xf32>
    %111 = tpu.matmul %110, %2, %cst_43 {dimension_numbers = #tpu.dot_dimension_numbers<[1], [0], [0], [1], [0, 0, 1, 1], [], []>, precision = #tpu.contract_precision<fp32>} : vector<16x128xf32>, vector<128x128xf32>, vector<16x128xf32> -> vector<16x128xf32>
    %cst_44 = arith.constant 1.000000e+00 : f32
    %112 = vector.broadcast %cst_44 : f32 to vector<16x128xf32>
    %113 = arith.mulf %112, %111 : vector<16x128xf32>
    %114 = math.sqrt %113 : vector<16x128xf32>
    %cst_45 = arith.constant 1.000000e+00 : f32
    %115 = vector.broadcast %cst_45 : f32 to vector<16x128xf32>
    %116 = arith.addf %114, %115 : vector<16x128xf32>
    %117 = arith.mulf %116, %109 : vector<16x128xf32>
    %cst_46 = arith.constant dense<0.000000e+00> : vector<16x128xf32>
    %118 = tpu.matmul %117, %3, %cst_46 {dimension_numbers = #tpu.dot_dimension_numbers<[1], [0], [0], [1], [0, 0, 1, 1], [], []>, precision = #tpu.contract_precision<fp32>} : vector<16x128xf32>, vector<128x128xf32>, vector<16x128xf32> -> vector<16x128xf32>
    %119 = arith.mulf %117, %117 : vector<16x128xf32>
    %cst_47 = arith.constant dense<0.000000e+00> : vector<16x128xf32>
    %120 = tpu.matmul %119, %2, %cst_47 {dimension_numbers = #tpu.dot_dimension_numbers<[1], [0], [0], [1], [0, 0, 1, 1], [], []>, precision = #tpu.contract_precision<fp32>} : vector<16x128xf32>, vector<128x128xf32>, vector<16x128xf32> -> vector<16x128xf32>
    %121 = arith.mulf %118, %118 : vector<16x128xf32>
    %cst_48 = arith.constant dense<0.000000e+00> : vector<16x128xf32>
    %122 = tpu.matmul %121, %2, %cst_48 {dimension_numbers = #tpu.dot_dimension_numbers<[1], [0], [0], [1], [0, 0, 1, 1], [], []>, precision = #tpu.contract_precision<fp32>} : vector<16x128xf32>, vector<128x128xf32>, vector<16x128xf32> -> vector<16x128xf32>
    %123 = arith.mulf %117, %118 : vector<16x128xf32>
    %cst_49 = arith.constant dense<0.000000e+00> : vector<16x128xf32>
    %124 = tpu.matmul %123, %2, %cst_49 {dimension_numbers = #tpu.dot_dimension_numbers<[1], [0], [0], [1], [0, 0, 1, 1], [], []>, precision = #tpu.contract_precision<fp32>} : vector<16x128xf32>, vector<128x128xf32>, vector<16x128xf32> -> vector<16x128xf32>
    %cst_50 = arith.constant 2.000000e+00 : f32
    %125 = vector.broadcast %cst_50 : f32 to vector<16x128xf32>
    %126 = arith.mulf %125, %124 : vector<16x128xf32>
    %cst_51 = arith.constant 1.000000e+00 : f32
    %127 = vector.broadcast %cst_51 : f32 to vector<16x128xf32>
    %128 = arith.addf %127, %126 : vector<16x128xf32>
    %cst_52 = arith.constant 1.000000e+00 : f32
    %129 = vector.broadcast %cst_52 : f32 to vector<16x128xf32>
    %130 = arith.mulf %129, %120 : vector<16x128xf32>
    %131 = arith.mulf %130, %122 : vector<16x128xf32>
    %132 = arith.addf %128, %131 : vector<16x128xf32>
    %cst_53 = arith.constant 1.000000e-15 : f32
    %133 = vector.broadcast %cst_53 : f32 to vector<16x128xf32>
    %134 = arith.maximumf %132, %133 : vector<16x128xf32>
    %cst_54 = arith.constant 1.000000e+00 : f32
    %135 = vector.broadcast %cst_54 : f32 to vector<16x128xf32>
    %136 = arith.divf %135, %134 : vector<16x128xf32>
    %cst_55 = arith.constant 2.000000e+00 : f32
    %137 = vector.broadcast %cst_55 : f32 to vector<16x128xf32>
    %138 = arith.mulf %137, %124 : vector<16x128xf32>
    %cst_56 = arith.constant 1.000000e+00 : f32
    %139 = vector.broadcast %cst_56 : f32 to vector<16x128xf32>
    %140 = arith.addf %139, %138 : vector<16x128xf32>
    %cst_57 = arith.constant 1.000000e+00 : f32
    %141 = vector.broadcast %cst_57 : f32 to vector<16x128xf32>
    %142 = arith.mulf %141, %122 : vector<16x128xf32>
    %143 = arith.addf %140, %142 : vector<16x128xf32>
    %144 = arith.mulf %143, %136 : vector<16x128xf32>
    %145 = arith.mulf %144, %117 : vector<16x128xf32>
    %cst_58 = arith.constant 1.000000e+00 : f32
    %146 = vector.broadcast %cst_58 : f32 to vector<16x128xf32>
    %147 = arith.mulf %146, %120 : vector<16x128xf32>
    %cst_59 = arith.constant 1.000000e+00 : f32
    %148 = vector.broadcast %cst_59 : f32 to vector<16x128xf32>
    %149 = arith.subf %148, %147 : vector<16x128xf32>
    %150 = arith.mulf %149, %136 : vector<16x128xf32>
    %151 = arith.mulf %150, %118 : vector<16x128xf32>
    %152 = arith.addf %145, %151 : vector<16x128xf32>
    %153 = arith.mulf %152, %152 : vector<16x128xf32>
    %cst_60 = arith.constant dense<0.000000e+00> : vector<16x128xf32>
    %154 = tpu.matmul %153, %2, %cst_60 {dimension_numbers = #tpu.dot_dimension_numbers<[1], [0], [0], [1], [0, 0, 1, 1], [], []>, precision = #tpu.contract_precision<fp32>} : vector<16x128xf32>, vector<128x128xf32>, vector<16x128xf32> -> vector<16x128xf32>
    %155 = vector.broadcast %8 : vector<1x128xf32> to vector<16x128xf32>
    %156 = arith.mulf %152, %155 : vector<16x128xf32>
    %cst_61 = arith.constant dense<0.000000e+00> : vector<16x128xf32>
    %157 = tpu.matmul %156, %2, %cst_61 {dimension_numbers = #tpu.dot_dimension_numbers<[1], [0], [0], [1], [0, 0, 1, 1], [], []>, precision = #tpu.contract_precision<fp32>} : vector<16x128xf32>, vector<128x128xf32>, vector<16x128xf32> -> vector<16x128xf32>
    %cst_62 = arith.constant 2.000000e+00 : f32
    %158 = vector.broadcast %cst_62 : f32 to vector<16x128xf32>
    %159 = arith.mulf %158, %157 : vector<16x128xf32>
    %cst_63 = arith.constant 1.000000e+00 : f32
    %160 = vector.broadcast %cst_63 : f32 to vector<16x128xf32>
    %161 = arith.addf %160, %159 : vector<16x128xf32>
    %cst_64 = arith.constant 1.000000e+00 : f32
    %162 = vector.broadcast %cst_64 : f32 to vector<16x128xf32>
    %163 = arith.mulf %162, %154 : vector<16x128xf32>
    %164 = vector.broadcast %9 : vector<1x128xf32> to vector<16x128xf32>
    %165 = arith.mulf %163, %164 : vector<16x128xf32>
    %166 = arith.addf %161, %165 : vector<16x128xf32>
    %cst_65 = arith.constant 1.000000e-15 : f32
    %167 = vector.broadcast %cst_65 : f32 to vector<16x128xf32>
    %168 = arith.maximumf %166, %167 : vector<16x128xf32>
    %cst_66 = arith.constant 1.000000e+00 : f32
    %169 = vector.broadcast %cst_66 : f32 to vector<16x128xf32>
    %170 = arith.divf %169, %168 : vector<16x128xf32>
    %cst_67 = arith.constant 2.000000e+00 : f32
    %171 = vector.broadcast %cst_67 : f32 to vector<16x128xf32>
    %172 = arith.mulf %171, %157 : vector<16x128xf32>
    %cst_68 = arith.constant 1.000000e+00 : f32
    %173 = vector.broadcast %cst_68 : f32 to vector<16x128xf32>
    %174 = arith.addf %173, %172 : vector<16x128xf32>
    %cst_69 = arith.constant 1.000000e+00 : f32
    %175 = vector.broadcast %cst_69 : f32 to vector<1x128xf32>
    %176 = arith.mulf %175, %9 : vector<1x128xf32>
    %177 = vector.broadcast %176 : vector<1x128xf32> to vector<16x128xf32>
    %178 = arith.addf %174, %177 : vector<16x128xf32>
    %179 = arith.mulf %178, %170 : vector<16x128xf32>
    %180 = arith.mulf %179, %152 : vector<16x128xf32>
    %cst_70 = arith.constant 1.000000e+00 : f32
    %181 = vector.broadcast %cst_70 : f32 to vector<16x128xf32>
    %182 = arith.mulf %181, %154 : vector<16x128xf32>
    %cst_71 = arith.constant 1.000000e+00 : f32
    %183 = vector.broadcast %cst_71 : f32 to vector<16x128xf32>
    %184 = arith.subf %183, %182 : vector<16x128xf32>
    %185 = arith.mulf %184, %170 : vector<16x128xf32>
    %186 = vector.broadcast %8 : vector<1x128xf32> to vector<16x128xf32>
    %187 = arith.mulf %185, %186 : vector<16x128xf32>
    %188 = arith.addf %180, %187 : vector<16x128xf32>
    %189 = arith.mulf %188, %188 : vector<16x128xf32>
    %cst_72 = arith.constant dense<0.000000e+00> : vector<16x128xf32>
    %190 = tpu.matmul %189, %2, %cst_72 {dimension_numbers = #tpu.dot_dimension_numbers<[1], [0], [0], [1], [0, 0, 1, 1], [], []>, precision = #tpu.contract_precision<fp32>} : vector<16x128xf32>, vector<128x128xf32>, vector<16x128xf32> -> vector<16x128xf32>
    %191 = math.sqrt %190 : vector<16x128xf32>
    %cst_73 = arith.constant 1.000000e-15 : f32
    %192 = vector.broadcast %cst_73 : f32 to vector<16x128xf32>
    %193 = arith.maximumf %191, %192 : vector<16x128xf32>
    %cst_74 = arith.constant 1.000000e+00 : f32
    %194 = vector.broadcast %cst_74 : f32 to vector<16x128xf32>
    %195 = arith.mulf %194, %193 : vector<16x128xf32>
    %cst_75 = arith.constant -0.99999988 : f32
    %cst_76 = arith.constant 0.99999988 : f32
    %196 = vector.broadcast %cst_75 : f32 to vector<16x128xf32>
    %197 = arith.maximumf %196, %195 : vector<16x128xf32>
    %198 = vector.broadcast %cst_76 : f32 to vector<16x128xf32>
    %199 = arith.minimumf %198, %197 : vector<16x128xf32>
    %cst_77 = arith.constant 1.000000e+00 : f32
    %200 = vector.broadcast %cst_77 : f32 to vector<16x128xf32>
    %201 = arith.addf %200, %199 : vector<16x128xf32>
    %cst_78 = arith.constant 1.000000e+00 : f32
    %202 = vector.broadcast %cst_78 : f32 to vector<16x128xf32>
    %203 = arith.subf %202, %199 : vector<16x128xf32>
    %204 = arith.divf %201, %203 : vector<16x128xf32>
    %205 = math.log %204 : vector<16x128xf32>
    %cst_79 = arith.constant 5.000000e-01 : f32
    %206 = vector.broadcast %cst_79 : f32 to vector<16x128xf32>
    %207 = arith.mulf %206, %205 : vector<16x128xf32>
    %cst_80 = arith.constant 1.000000e+00 : f32
    %208 = vector.broadcast %cst_80 : f32 to vector<16x128xf32>
    %209 = arith.mulf %208, %193 : vector<16x128xf32>
    %210 = arith.divf %207, %209 : vector<16x128xf32>
    %211 = arith.mulf %210, %188 : vector<16x128xf32>
    %cst_81 = arith.constant 5.000000e-01 : f32
    %212 = vector.broadcast %cst_81 : f32 to vector<16x128xf32>
    %213 = arith.mulf %212, %211 : vector<16x128xf32>
    %214 = math.tanh %213 : vector<16x128xf32>
    %cst_82 = arith.constant 1.000000e+00 : f32
    %215 = vector.broadcast %cst_82 : f32 to vector<16x128xf32>
    %216 = arith.addf %214, %215 : vector<16x128xf32>
    %cst_83 = arith.constant 5.000000e-01 : f32
    %217 = vector.broadcast %cst_83 : f32 to vector<16x128xf32>
    %218 = arith.mulf %217, %216 : vector<16x128xf32>
    %219 = vector.extract_strided_slice %218 {offsets = [0, 0], sizes = [16, 32], strides = [1, 1]} : vector<16x128xf32> to vector<16x32xf32>
    %220 = vector.extract_strided_slice %218 {offsets = [0, 32], sizes = [16, 32], strides = [1, 1]} : vector<16x128xf32> to vector<16x32xf32>
    %c0_84 = arith.constant 0 : index
    %c0_85 = arith.constant 0 : index
    %221 = vector.load %arg7[%c0_84, %c0_85] : memref<1x32xf32, #tpu.memory_space<vmem>>, vector<1x32xf32>
    %222 = arith.mulf %221, %221 : vector<1x32xf32>
    %cst_86 = arith.constant dense<0.000000e+00> : vector<1xf32>
    %223 = vector.multi_reduction <add>, %222, %cst_86 [1] : vector<1x32xf32> to vector<1xf32>
    %224 = vector.shape_cast %223 : vector<1xf32> to vector<1x1xf32>
    %225 = arith.mulf %220, %220 : vector<16x32xf32>
    %cst_87 = arith.constant dense<0.000000e+00> : vector<16xf32>
    %226 = vector.multi_reduction <add>, %225, %cst_87 [1] : vector<16x32xf32> to vector<16xf32>
    %227 = vector.shape_cast %226 : vector<16xf32> to vector<16x1xf32>
    %228 = vector.broadcast %221 : vector<1x32xf32> to vector<16x32xf32>
    %229 = arith.mulf %220, %228 : vector<16x32xf32>
    %cst_88 = arith.constant dense<0.000000e+00> : vector<16xf32>
    %230 = vector.multi_reduction <add>, %229, %cst_88 [1] : vector<16x32xf32> to vector<16xf32>
    %231 = vector.shape_cast %230 : vector<16xf32> to vector<16x1xf32>
    %cst_89 = arith.constant 2.000000e+00 : f32
    %232 = vector.broadcast %cst_89 : f32 to vector<16x1xf32>
    %233 = arith.mulf %232, %231 : vector<16x1xf32>
    %cst_90 = arith.constant 1.000000e+00 : f32
    %234 = vector.broadcast %cst_90 : f32 to vector<16x1xf32>
    %235 = arith.addf %234, %233 : vector<16x1xf32>
    %cst_91 = arith.constant 1.000000e+00 : f32
    %236 = vector.broadcast %cst_91 : f32 to vector<16x1xf32>
    %237 = arith.mulf %236, %227 : vector<16x1xf32>
    %238 = vector.broadcast %224 : vector<1x1xf32> to vector<16x1xf32>
    %239 = arith.mulf %237, %238 : vector<16x1xf32>
    %240 = arith.addf %235, %239 : vector<16x1xf32>
    %cst_92 = arith.constant 1.000000e-15 : f32
    %241 = vector.broadcast %cst_92 : f32 to vector<16x1xf32>
    %242 = arith.maximumf %240, %241 : vector<16x1xf32>
    %cst_93 = arith.constant 1.000000e+00 : f32
    %243 = vector.broadcast %cst_93 : f32 to vector<16x1xf32>
    %244 = arith.divf %243, %242 : vector<16x1xf32>
    %cst_94 = arith.constant 2.000000e+00 : f32
    %245 = vector.broadcast %cst_94 : f32 to vector<16x1xf32>
    %246 = arith.mulf %245, %231 : vector<16x1xf32>
    %cst_95 = arith.constant 1.000000e+00 : f32
    %247 = vector.broadcast %cst_95 : f32 to vector<16x1xf32>
    %248 = arith.addf %247, %246 : vector<16x1xf32>
    %cst_96 = arith.constant 1.000000e+00 : f32
    %249 = vector.broadcast %cst_96 : f32 to vector<1x1xf32>
    %250 = arith.mulf %249, %224 : vector<1x1xf32>
    %251 = vector.broadcast %250 : vector<1x1xf32> to vector<16x1xf32>
    %252 = arith.addf %248, %251 : vector<16x1xf32>
    %253 = arith.mulf %252, %244 : vector<16x1xf32>
    %254 = vector.broadcast %253 : vector<16x1xf32> to vector<16x32xf32>
    %255 = arith.mulf %254, %220 : vector<16x32xf32>
    %cst_97 = arith.constant 1.000000e+00 : f32
    %256 = vector.broadcast %cst_97 : f32 to vector<16x1xf32>
    %257 = arith.mulf %256, %227 : vector<16x1xf32>
    %cst_98 = arith.constant 1.000000e+00 : f32
    %258 = vector.broadcast %cst_98 : f32 to vector<16x1xf32>
    %259 = arith.subf %258, %257 : vector<16x1xf32>
    %260 = arith.mulf %259, %244 : vector<16x1xf32>
    %261 = vector.broadcast %260 : vector<16x1xf32> to vector<16x32xf32>
    %262 = vector.broadcast %221 : vector<1x32xf32> to vector<16x32xf32>
    %263 = arith.mulf %261, %262 : vector<16x32xf32>
    %264 = arith.addf %255, %263 : vector<16x32xf32>
    %cst_99 = arith.constant 0.000000e+00 : f32
    %265 = vector.broadcast %cst_99 : f32 to vector<16x32xf32>
    %266 = arith.subf %265, %1 : vector<16x32xf32>
    %267 = arith.mulf %264, %264 : vector<16x32xf32>
    %cst_100 = arith.constant dense<0.000000e+00> : vector<16xf32>
    %268 = vector.multi_reduction <add>, %267, %cst_100 [1] : vector<16x32xf32> to vector<16xf32>
    %269 = vector.shape_cast %268 : vector<16xf32> to vector<16x1xf32>
    %270 = arith.mulf %266, %264 : vector<16x32xf32>
    %cst_101 = arith.constant dense<0.000000e+00> : vector<16xf32>
    %271 = vector.multi_reduction <add>, %270, %cst_101 [1] : vector<16x32xf32> to vector<16xf32>
    %272 = vector.shape_cast %271 : vector<16xf32> to vector<16x1xf32>
    %cst_102 = arith.constant 2.000000e+00 : f32
    %273 = vector.broadcast %cst_102 : f32 to vector<16x1xf32>
    %274 = arith.mulf %273, %272 : vector<16x1xf32>
    %cst_103 = arith.constant 1.000000e+00 : f32
    %275 = vector.broadcast %cst_103 : f32 to vector<16x1xf32>
    %276 = arith.addf %275, %274 : vector<16x1xf32>
    %cst_104 = arith.constant 1.000000e+00 : f32
    %277 = vector.broadcast %cst_104 : f32 to vector<16x1xf32>
    %278 = arith.mulf %277, %12 : vector<16x1xf32>
    %279 = arith.mulf %278, %269 : vector<16x1xf32>
    %280 = arith.addf %276, %279 : vector<16x1xf32>
    %cst_105 = arith.constant 1.000000e-15 : f32
    %281 = vector.broadcast %cst_105 : f32 to vector<16x1xf32>
    %282 = arith.maximumf %280, %281 : vector<16x1xf32>
    %cst_106 = arith.constant 1.000000e+00 : f32
    %283 = vector.broadcast %cst_106 : f32 to vector<16x1xf32>
    %284 = arith.divf %283, %282 : vector<16x1xf32>
    %cst_107 = arith.constant 2.000000e+00 : f32
    %285 = vector.broadcast %cst_107 : f32 to vector<16x1xf32>
    %286 = arith.mulf %285, %272 : vector<16x1xf32>
    %cst_108 = arith.constant 1.000000e+00 : f32
    %287 = vector.broadcast %cst_108 : f32 to vector<16x1xf32>
    %288 = arith.addf %287, %286 : vector<16x1xf32>
    %cst_109 = arith.constant 1.000000e+00 : f32
    %289 = vector.broadcast %cst_109 : f32 to vector<16x1xf32>
    %290 = arith.mulf %289, %269 : vector<16x1xf32>
    %291 = arith.addf %288, %290 : vector<16x1xf32>
    %292 = arith.mulf %291, %284 : vector<16x1xf32>
    %293 = vector.broadcast %292 : vector<16x1xf32> to vector<16x32xf32>
    %294 = arith.mulf %293, %266 : vector<16x32xf32>
    %cst_110 = arith.constant 1.000000e+00 : f32
    %295 = vector.broadcast %cst_110 : f32 to vector<16x1xf32>
    %296 = arith.mulf %295, %12 : vector<16x1xf32>
    %cst_111 = arith.constant 1.000000e+00 : f32
    %297 = vector.broadcast %cst_111 : f32 to vector<16x1xf32>
    %298 = arith.subf %297, %296 : vector<16x1xf32>
    %299 = arith.mulf %298, %284 : vector<16x1xf32>
    %300 = vector.broadcast %299 : vector<16x1xf32> to vector<16x32xf32>
    %301 = arith.mulf %300, %264 : vector<16x32xf32>
    %302 = arith.addf %294, %301 : vector<16x32xf32>
    %303 = arith.mulf %219, %219 : vector<16x32xf32>
    %cst_112 = arith.constant dense<0.000000e+00> : vector<16xf32>
    %304 = vector.multi_reduction <add>, %303, %cst_112 [1] : vector<16x32xf32> to vector<16xf32>
    %305 = vector.shape_cast %304 : vector<16xf32> to vector<16x1xf32>
    %306 = math.sqrt %305 : vector<16x1xf32>
    %cst_113 = arith.constant 1.000000e-15 : f32
    %307 = vector.broadcast %cst_113 : f32 to vector<16x1xf32>
    %308 = arith.maximumf %306, %307 : vector<16x1xf32>
    %309 = arith.mulf %302, %219 : vector<16x32xf32>
    %310 = arith.mulf %309, %309 : vector<16x32xf32>
    %cst_114 = arith.constant dense<0.000000e+00> : vector<16xf32>
    %311 = vector.multi_reduction <add>, %310, %cst_114 [1] : vector<16x32xf32> to vector<16xf32>
    %312 = vector.shape_cast %311 : vector<16xf32> to vector<16x1xf32>
    %313 = math.sqrt %312 : vector<16x1xf32>
    %cst_115 = arith.constant 1.000000e-15 : f32
    %314 = vector.broadcast %cst_115 : f32 to vector<16x1xf32>
    %315 = arith.maximumf %313, %314 : vector<16x1xf32>
    %316 = arith.divf %315, %308 : vector<16x1xf32>
    %cst_116 = arith.constant 1.000000e+00 : f32
    %317 = vector.broadcast %cst_116 : f32 to vector<16x1xf32>
    %318 = arith.mulf %317, %308 : vector<16x1xf32>
    %cst_117 = arith.constant -0.99999988 : f32
    %cst_118 = arith.constant 0.99999988 : f32
    %319 = vector.broadcast %cst_117 : f32 to vector<16x1xf32>
    %320 = arith.maximumf %319, %318 : vector<16x1xf32>
    %321 = vector.broadcast %cst_118 : f32 to vector<16x1xf32>
    %322 = arith.minimumf %321, %320 : vector<16x1xf32>
    %cst_119 = arith.constant 1.000000e+00 : f32
    %323 = vector.broadcast %cst_119 : f32 to vector<16x1xf32>
    %324 = arith.addf %323, %322 : vector<16x1xf32>
    %cst_120 = arith.constant 1.000000e+00 : f32
    %325 = vector.broadcast %cst_120 : f32 to vector<16x1xf32>
    %326 = arith.subf %325, %322 : vector<16x1xf32>
    %327 = arith.divf %324, %326 : vector<16x1xf32>
    %328 = math.log %327 : vector<16x1xf32>
    %cst_121 = arith.constant 5.000000e-01 : f32
    %329 = vector.broadcast %cst_121 : f32 to vector<16x1xf32>
    %330 = arith.mulf %329, %328 : vector<16x1xf32>
    %cst_122 = arith.constant 1.000000e+00 : f32
    %331 = vector.broadcast %cst_122 : f32 to vector<16x1xf32>
    %332 = arith.divf %330, %331 : vector<16x1xf32>
    %333 = arith.mulf %316, %332 : vector<16x1xf32>
    %cst_123 = arith.constant 1.000000e+00 : f32
    %334 = vector.broadcast %cst_123 : f32 to vector<16x1xf32>
    %335 = arith.mulf %334, %333 : vector<16x1xf32>
    %336 = math.tanh %335 : vector<16x1xf32>
    %cst_124 = arith.constant 1.000000e+00 : f32
    %337 = vector.broadcast %cst_124 : f32 to vector<16x1xf32>
    %338 = arith.divf %336, %337 : vector<16x1xf32>
    %339 = arith.divf %338, %315 : vector<16x1xf32>
    %340 = vector.broadcast %339 : vector<16x1xf32> to vector<16x32xf32>
    %341 = arith.mulf %340, %309 : vector<16x32xf32>
    %342 = arith.mulf %341, %341 : vector<16x32xf32>
    %cst_125 = arith.constant dense<0.000000e+00> : vector<16xf32>
    %343 = vector.multi_reduction <add>, %342, %cst_125 [1] : vector<16x32xf32> to vector<16xf32>
    %344 = vector.shape_cast %343 : vector<16xf32> to vector<16x1xf32>
    %345 = arith.mulf %1, %341 : vector<16x32xf32>
    %cst_126 = arith.constant dense<0.000000e+00> : vector<16xf32>
    %346 = vector.multi_reduction <add>, %345, %cst_126 [1] : vector<16x32xf32> to vector<16xf32>
    %347 = vector.shape_cast %346 : vector<16xf32> to vector<16x1xf32>
    %cst_127 = arith.constant 2.000000e+00 : f32
    %348 = vector.broadcast %cst_127 : f32 to vector<16x1xf32>
    %349 = arith.mulf %348, %347 : vector<16x1xf32>
    %cst_128 = arith.constant 1.000000e+00 : f32
    %350 = vector.broadcast %cst_128 : f32 to vector<16x1xf32>
    %351 = arith.addf %350, %349 : vector<16x1xf32>
    %cst_129 = arith.constant 1.000000e+00 : f32
    %352 = vector.broadcast %cst_129 : f32 to vector<16x1xf32>
    %353 = arith.mulf %352, %12 : vector<16x1xf32>
    %354 = arith.mulf %353, %344 : vector<16x1xf32>
    %355 = arith.addf %351, %354 : vector<16x1xf32>
    %cst_130 = arith.constant 1.000000e-15 : f32
    %356 = vector.broadcast %cst_130 : f32 to vector<16x1xf32>
    %357 = arith.maximumf %355, %356 : vector<16x1xf32>
    %cst_131 = arith.constant 1.000000e+00 : f32
    %358 = vector.broadcast %cst_131 : f32 to vector<16x1xf32>
    %359 = arith.divf %358, %357 : vector<16x1xf32>
    %cst_132 = arith.constant 2.000000e+00 : f32
    %360 = vector.broadcast %cst_132 : f32 to vector<16x1xf32>
    %361 = arith.mulf %360, %347 : vector<16x1xf32>
    %cst_133 = arith.constant 1.000000e+00 : f32
    %362 = vector.broadcast %cst_133 : f32 to vector<16x1xf32>
    %363 = arith.addf %362, %361 : vector<16x1xf32>
    %cst_134 = arith.constant 1.000000e+00 : f32
    %364 = vector.broadcast %cst_134 : f32 to vector<16x1xf32>
    %365 = arith.mulf %364, %344 : vector<16x1xf32>
    %366 = arith.addf %363, %365 : vector<16x1xf32>
    %367 = arith.mulf %366, %359 : vector<16x1xf32>
    %368 = vector.broadcast %367 : vector<16x1xf32> to vector<16x32xf32>
    %369 = arith.mulf %368, %1 : vector<16x32xf32>
    %cst_135 = arith.constant 1.000000e+00 : f32
    %370 = vector.broadcast %cst_135 : f32 to vector<16x1xf32>
    %371 = arith.mulf %370, %12 : vector<16x1xf32>
    %cst_136 = arith.constant 1.000000e+00 : f32
    %372 = vector.broadcast %cst_136 : f32 to vector<16x1xf32>
    %373 = arith.subf %372, %371 : vector<16x1xf32>
    %374 = arith.mulf %373, %359 : vector<16x1xf32>
    %375 = vector.broadcast %374 : vector<16x1xf32> to vector<16x32xf32>
    %376 = arith.mulf %375, %341 : vector<16x32xf32>
    %377 = arith.addf %369, %376 : vector<16x32xf32>
    %c0_137 = arith.constant 0 : index
    %c0_138 = arith.constant 0 : index
    %378 = vector.load %arg8[%c0_137, %c0_138] : memref<16x32xf32, #tpu.memory_space<vmem>>, vector<16x32xf32>
    tpu.vector_store %arg8[%c0_137, %c0_138], %377 {strides = array<i32>} : memref<16x32xf32, #tpu.memory_space<vmem>>, vector<16x32xf32>,
    return
  }
  func.func @transform_0(%arg0: i32) -> (i32, i32) {
    %c0_i32 = arith.constant 0 : i32
    %c0_i32_0 = arith.constant 0 : i32
    return %arg0, %c0_i32 : i32, i32
  }
  func.func @transform_1(%arg0: i32) -> (i32, i32) {
    %c0_i32 = arith.constant 0 : i32
    %c0_i32_0 = arith.constant 0 : i32
    return %arg0, %c0_i32 : i32, i32
  }
  func.func @transform_2(%arg0: i32) -> (i32, i32) {
    %c0_i32 = arith.constant 0 : i32
    %c0_i32_0 = arith.constant 0 : i32
    %c0_i32_1 = arith.constant 0 : i32
    return %c0_i32, %c0_i32_0 : i32, i32
  }
  func.func @transform_3(%arg0: i32) -> (i32, i32) {
    %c0_i32 = arith.constant 0 : i32
    %c0_i32_0 = arith.constant 0 : i32
    %c0_i32_1 = arith.constant 0 : i32
    return %c0_i32, %c0_i32_0 : i32, i32
  }
  func.func @transform_4(%arg0: i32) -> (i32, i32) {
    %c0_i32 = arith.constant 0 : i32
    %c0_i32_0 = arith.constant 0 : i32
    %c0_i32_1 = arith.constant 0 : i32
    return %c0_i32, %c0_i32_0 : i32, i32
  }
  func.func @transform_5(%arg0: i32) -> (i32, i32) {
    %c0_i32 = arith.constant 0 : i32
    %c0_i32_0 = arith.constant 0 : i32
    %c0_i32_1 = arith.constant 0 : i32
    return %c0_i32, %c0_i32_0 : i32, i32
  }
  func.func @transform_6(%arg0: i32) -> (i32, i32) {
    %c0_i32 = arith.constant 0 : i32
    %c0_i32_0 = arith.constant 0 : i32
    %c0_i32_1 = arith.constant 0 : i32
    return %c0_i32, %c0_i32_0 : i32, i32
  }
  func.func @transform_7(%arg0: i32) -> (i32, i32) {
    %c0_i32 = arith.constant 0 : i32
    %c0_i32_0 = arith.constant 0 : i32
    return %arg0, %c0_i32 : i32, i32
  }
}

</mosaic_0001>

<bundles_post_ra>
// kernel: tpu_custom_call.1
= control target key start
LH: loop header
LB: loop body
LE: loop exit
PB: predicated region body
PF: predicated region fallthrough
CT: control target
= control target key end

     0   :  { %12 = vsyncpa [#allocation3], 0  ;;  %s14148_s0 = inlined_call_operand.hbm [shape: f32[16,48], index: 0, kind: input, shape index: {}]   ;;  %s14149_s1 = inlined_call_operand.hbm [shape: f32[16,32], index: 1, kind: input, shape index: {}]   ;;  %s14150_s2 = inlined_call_operand.hbm [shape: f32[32,256], index: 2, kind: input, shape index: {}]   ;;  %s14151_s3 = inlined_call_operand.hbm [shape: f32[48,256], index: 3, kind: input, shape index: {}]   ;;  %s14152_s4 = inlined_call_operand.vmem [shape: f32[6,128], index: 4, kind: input, shape index: {}]   ;;  %s14153_s5 = inlined_call_operand.hbm [shape: f32[128,256], index: 5, kind: input, shape index: {}]   ;;  %s14154_s6 = inlined_call_operand.vmem [shape: f32[1,32], index: 6, kind: input, shape index: {}]   ;;  %s14155_s7 = inlined_call_operand.hbm [shape: f32[16,32], index: 7, kind: output, shape index: {}]  }
   0x1   :  { %13 = vsyncpa [#allocation6], 0 }
   0x2   :  { %14 = vsyncpa [#allocation9], 0 }
   0x3   :  { %15 = vsyncpa [#allocation4], 0  ;;  %s12066_s24 = smov [#allocation5]   ;;  %s11926_s28 = scalar_lea.hbm %s14149_s1, 256 }
   0x4   :  { %s33_s25 = sshll.u32 %s12066_s24, 4  ;;  %p11927_p0 = scmp.ne.s32.totalorder %s14149_s1, %s11926_s28  ;;  %s34_s25 = int_to_ptr.vmem [resolvable:$true] %s33_s25 }
   0x5   :  { %p11930_p1 = scmp.lt.u32.totalorder %s11926_s28, %s14149_s1 }
   0x7   :  { %p11932_p2 = pnand %p11930_p1, %p11927_p0 }
   0x9   :  { %11935 = shalt.err (!%p11932_p2)
}
   0xa   :  { %s11936_s10 = scalar_lea.vmem %s34_s25, 256  ;;  %p11941_p4 = scmp.lt.s32.totalorder %s34_s25, %s34_s25 }
   0xb   :  { %p11937_p3 = scmp.ne.s32.totalorder %s34_s25, %s11936_s10  ;;  %p11942_p5 = scmp.lt.s32.totalorder %s11936_s10, %s11936_s10 }
   0xd   :  { %p11943_p6 = por %p11942_p5, %p11941_p4 }
   0xf   :  { %p11944_p7 = pnand %p11943_p6, %p11937_p3 }
  0x11   :  { %11947 = shalt.err (!%p11944_p7)
}
  0x12   :  { %s12067_s11 = smov 128   ;;  %s12068_s12 = smov 8  }
  0x13   :  { %39 = dma.hbm_to_vmem [thread:$0]  %s14149_s1, 256, %s34_s25, [#allocation6], %s12067_s11, %s12067_s11, %s12068_s12  }
  0x14   :  { %s12069_s15 = smov [#allocation8]   ;;  %s12070_s17 = smov [#allocation2]  }
  0x15   :  { %s57_s16 = sshll.u32 %s12069_s15, 4  ;;  %s21_s18 = sshll.u32 %s12070_s17, 4  ;;  %s58_s16 = int_to_ptr.vmem [resolvable:$true] %s57_s16  ;;  %s22_s18 = int_to_ptr.vmem [resolvable:$true] %s21_s18 }
  0x16   :  { %s11948_s21 = scalar_lea.hbm %s14151_s3, 1536 }
  0x17   :  { %p11949_p8 = scmp.ne.s32.totalorder %s14151_s3, %s11948_s21  ;;  %p11952_p9 = scmp.lt.u32.totalorder %s11948_s21, %s14151_s3 }
  0x19   :  { %p11954_p10 = pnand %p11952_p9, %p11949_p8 }
  0x1b   :  { %11957 = shalt.err (!%p11954_p10)
}
  0x1c   :  { %s11958_s1 = scalar_lea.vmem %s58_s16, 1536  ;;  %p11963_p12 = scmp.lt.s32.totalorder %s58_s16, %s58_s16 }
  0x1d   :  { %p11959_p11 = scmp.ne.s32.totalorder %s58_s16, %s11958_s1  ;;  %p11964_p13 = scmp.lt.s32.totalorder %s11958_s1, %s11958_s1 }
  0x1f   :  { %p11965_p0 = por %p11964_p13, %p11963_p12 }
  0x21   :  { %p11966_p1 = pnand %p11965_p0, %p11959_p11 }
  0x23   :  { %11969 = shalt.err (!%p11966_p1)
}
  0x24   :  { %s12071_s25 = smov 256   ;;  %s12072_s27 = smov 16  }
  0x25   :  { %63 = dma.hbm_to_vmem [thread:$0]  %s14151_s3, 1536, %s58_s16, [#allocation9], %s12071_s25, %s12071_s25, %s12072_s27  }
  0x26   :  { %s11970_s9 = scalar_lea.hbm %s14148_s0, 256 }
  0x27   :  { %p11971_p2 = scmp.ne.s32.totalorder %s14148_s0, %s11970_s9  ;;  %p11974_p3 = scmp.lt.u32.totalorder %s11970_s9, %s14148_s0 }
  0x29   :  { %p11976_p4 = pnand %p11974_p3, %p11971_p2 }
  0x2b   :  { %11979 = shalt.err (!%p11976_p4)
}
  0x2c   :  { %s11980_s17 = scalar_lea.vmem %s22_s18, 256  ;;  %p11985_p6 = scmp.lt.s32.totalorder %s22_s18, %s22_s18 }
  0x2d   :  { %p11981_p5 = scmp.ne.s32.totalorder %s22_s18, %s11980_s17  ;;  %p11986_p7 = scmp.lt.s32.totalorder %s11980_s17, %s11980_s17 }
  0x2f   :  { %p11987_p8 = por %p11986_p7, %p11985_p6 }
  0x31   :  { %p11988_p9 = pnand %p11987_p8, %p11981_p5 }
  0x33   :  { %11991 = shalt.err (!%p11988_p9)
}
  0x34   :  { %27 = dma.hbm_to_vmem [thread:$0]  %s14148_s0, 256, %s22_s18, [#allocation3], %s12067_s11, %s12067_s11, %s12068_s12  }
  0x35   :  { %s12073_s19 = smov [#allocation7]   ;;  %s12074_s21 = smov [#allocation10]  }
  0x36   :  { %s45_s20 = sshll.u32 %s12073_s19, 4  ;;  %s71_s22 = sshll.u32 %s12074_s21, 4  ;;  %s46_s20 = int_to_ptr.vmem [resolvable:$true] %s45_s20  ;;  %s72_s22 = int_to_ptr.vmem [resolvable:$true] %s71_s22 }
  0x37   :  { %s11992_s26 = scalar_lea.hbm %s14150_s2, 1024 }
  0x38   :  { %p11993_p10 = scmp.ne.s32.totalorder %s14150_s2, %s11992_s26  ;;  %p11996_p11 = scmp.lt.u32.totalorder %s11992_s26, %s14150_s2 }
  0x3a   :  { %p11998_p12 = pnand %p11996_p11, %p11993_p10 }
  0x3c   :  { %12001 = shalt.err (!%p11998_p12)
}
  0x3d   :  { %s12002_s0 = scalar_lea.vmem %s46_s20, 1024  ;;  %p12007_p0 = scmp.lt.s32.totalorder %s46_s20, %s46_s20 }
  0x3e   :  { %p12003_p13 = scmp.ne.s32.totalorder %s46_s20, %s12002_s0  ;;  %p12008_p1 = scmp.lt.s32.totalorder %s12002_s0, %s12002_s0 }
  0x40   :  { %p12009_p2 = por %p12008_p1, %p12007_p0 }
  0x42   :  { %p12010_p3 = pnand %p12009_p2, %p12003_p13 }
  0x44   :  { %12013 = shalt.err (!%p12010_p3)
}
  0x45   :  { %51 = dma.hbm_to_vmem [thread:$0]  %s14150_s2, 1024, %s46_s20, [#allocation6], %s12071_s25, %s12071_s25, %s12072_s27  }
  0x46   :  { %s12014_s13 = scalar_lea.hbm %s14153_s5, 4096 }
  0x47   :  { %p12015_p4 = scmp.ne.s32.totalorder %s14153_s5, %s12014_s13  ;;  %p12018_p5 = scmp.lt.u32.totalorder %s12014_s13, %s14153_s5 }
  0x49   :  { %p12020_p6 = pnand %p12018_p5, %p12015_p4 }
  0x4b   :  { %12023 = shalt.err (!%p12020_p6)
}
  0x4c   :  { %s12024_s16 = scalar_lea.vmem %s72_s22, 4096  ;;  %p12029_p8 = scmp.lt.s32.totalorder %s72_s22, %s72_s22 }
  0x4d   :  { %p12025_p7 = scmp.ne.s32.totalorder %s72_s22, %s12024_s16  ;;  %p12030_p9 = scmp.lt.s32.totalorder %s12024_s16, %s12024_s16 }
  0x4f   :  { %p12031_p10 = por %p12030_p9, %p12029_p8 }
  0x51   :  { %p12032_p11 = pnand %p12031_p10, %p12025_p7 }
  0x53   :  { %12035 = shalt.err (!%p12032_p11)
}
  0x54   :  { %77 = dma.hbm_to_vmem [thread:$0]  %s14153_s5, 4096, %s72_s22, [#allocation9], %s12071_s25, %s12071_s25, %s12072_s27  }
  0x55   :  { %12058 = dma.done.wait [#allocation3], 256  }
  0x56   :  { %12059 = vsyncadd [#allocation3], 4294967040 }
  0x57   :  { %12060 = dma.done.wait [#allocation6], 1280  }
  0x58   :  { %12061 = vsyncadd [#allocation6], 4294966016 }
  0x59   :  { %12062 = dma.done.wait [#allocation9], 5632  }
  0x5a   :  { %12063 = vsyncadd [#allocation9], 4294961664  ;;  %v12075_v0 = vmov 0.0   ;;  %v164_v1 = vld [vmem:[#allocation8 + $0x8] sm:$0xff]  ;;  %v166_v2 = vld [vmem:[#allocation8 + $0x18] sm:$0xff]  ;;  %vm148_vm0 = vcmask 392192  }
  0x5b   :  { %257 = vmatprep.mubr.f32.mxu0 %v12075_v0  ;;  %v163_v3 = vld [vmem:[#allocation8] sm:$0xff]  ;;  %v181_v4 = vand.u32 4294901760, %v164_v1  ;;  %v185_v5 = vand.u32 4294901760, %v166_v2  ;;  %v165_v6 = vld [vmem:[#allocation8 + $0x10] sm:$0xff]  ;;  %v168_v8 = vld [vmem:[#allocation8 + $0x28] sm:$0xff]  ;;  %vm139_vm1 = vcmask 261120  }
  0x5c   :  { %v183_v7 = vand.u32 4294901760, %v163_v3  ;;  %v170_v9 = vld [vmem:[#allocation8 + $0x38] sm:$0xff]  ;;  %v187_v10 = vand.u32 4294901760, %v165_v6  ;;  %v189_v11 = vand.u32 4294901760, %v168_v8  ;;  %v167_v13 = vld [vmem:[#allocation8 + $0x20] sm:$0xff]  ;;  %v169_v14 = vld [vmem:[#allocation8 + $0x30] sm:$0xff] }
  0x5d   :  { %v193_v12 = vand.u32 4294901760, %v170_v9  ;;  %v172_v15 = vld [vmem:[#allocation8 + $0x48] sm:$0xff]  ;;  %v12196_v16 = vpack.c.bf16 %v185_v5, %v181_v4  ;;  %v12198_v17 = vsub.f32 %v164_v1, %v181_v4  ;;  %v12200_v18 = vsub.f32 %v166_v2, %v185_v5  ;;  %v174_v20 = vld [vmem:[#allocation8 + $0x58] sm:$0xff]  ;;  %v171_v21 = vld [vmem:[#allocation8 + $0x40] sm:$0xff]  ;;  %s12077_s0 = smov 32   ;;  %s12079_s18 = smov [#allocation11]  }
  0x5e   :  { %v12202_v19 = vsub.f32 %v163_v3, %v183_v7  ;;  %v173_v22 = vld [vmem:[#allocation8 + $0x50] sm:$0xff]  ;;  %v12204_v23 = vpack.c.bf16 %v187_v10, %v183_v7  ;;  %v12206_v24 = vsub.f32 %v165_v6, %v187_v10  ;;  %v12210_v26 = vsub.f32 %v168_v8, %v189_v11  ;;  %v12217_v35 = vld [vmem:[#allocation2] sm:$0xff]  ;;  %v12277_v5 = vld [vmem:[#allocation2 + $0x8] sm:$0xff]  ;;  %s7467_s8 = sshll.u32 %s12079_s18, 4  ;;  %s7468_s8 = int_to_ptr.vmem [resolvable:$true] %s7467_s8 }
  0x5f   :  { %v12208_v25 = vpack.c.bf16 %v193_v12, %v189_v11  ;;  %10035 = vmatprep.subr.bf16.mxu0 %v12196_v16  ;;  %v12213_v27 = vsub.f32 %v170_v9, %v193_v12  ;;  %v191_v28 = vand.u32 4294901760, %v167_v13  ;;  %v195_v29 = vand.u32 4294901760, %v169_v14  ;;  %s12036_s9 = scalar_lea.vmem %s7468_s8, 256  ;;  %p12041_p13 = scmp.lt.s32.totalorder %s7468_s8, %s7468_s8 }
  0x60   :  { %v197_v30 = vand.u32 4294901760, %v172_v15  ;;  %10037 = vmatpush1.bf16.msra.mxu0 %v12204_v23  ;;  %v201_v31 = vand.u32 4294901760, %v174_v20  ;;  %v199_v32 = vand.u32 4294901760, %v171_v21  ;;  %v203_v33 = vand.u32 4294901760, %v173_v22  ;;  %p12037_p12 = scmp.ne.s32.totalorder %s7468_s8, %s12036_s9  ;;  %p12042_p0 = scmp.lt.s32.totalorder %s12036_s9, %s12036_s9 }
  0x61   :  { %v282_v34 = vand.u32 4294901760, %v12198_v17  ;;  %10039 = vmatprep.subr.bf16.mxu0 %v12208_v25  ;;  %v12220_v36 = vpack.c.bf16 %v195_v29, %v191_v28  ;;  %v12222_v37 = vsub.f32 %v167_v13, %v191_v28  ;;  %v12224_v38 = vsub.f32 %v169_v14, %v195_v29 }
  0x62   :  { %v12226_v39 = vsub.f32 %v172_v15, %v197_v30  ;;  %v12228_v40 = vpack.c.bf16 %v201_v31, %v197_v30  ;;  %v12230_v41 = vsub.f32 %v174_v20, %v201_v31  ;;  %v12232_v42 = vpack.c.bf16 %v203_v33, %v199_v32  ;;  %p12043_p1 = por %p12042_p0, %p12041_p13 }
  0x63   :  { %v12234_v43 = vsub.f32 %v171_v21, %v199_v32  ;;  %v12236_v44 = vsub.f32 %v173_v22, %v203_v33  ;;  %v283_v45 = vsub.f32 %v12198_v17, %v282_v34  ;;  %v294_v46 = vand.u32 4294901760, %v12200_v18 }
  0x64   :  { %v176_v47 = vsel %vm148_vm0, %v12217_v35, 0  ;;  %10041 = vmatpush1.bf16.msra.mxu0 %v12220_v36  ;;  %v288_v49 = vand.u32 4294901760, %v12202_v19  ;;  %v300_v50 = vand.u32 4294901760, %v12206_v24  ;;  %v306_v51 = vand.u32 4294901760, %v12210_v26  ;;  %p12044_p2 = pnand %p12043_p1, %p12037_p12 }
  0x65   :  { %v12245_v48 = vand.u32 4294901760, %v176_v47  ;;  %10043 = vmatprep.subr.bf16.mxu0 %v12228_v40  ;;  %v284_v52 = vand.u32 4294901760, %v283_v45  ;;  %v295_v53 = vsub.f32 %v12200_v18, %v294_v46  ;;  %v318_v54 = vand.u32 4294901760, %v12213_v27 }
  0x66   :  { %v312_v55 = vand.u32 4294901760, %v12222_v37  ;;  %v289_v57 = vsub.f32 %v12202_v19, %v288_v49  ;;  %v301_v58 = vsub.f32 %v12206_v24, %v300_v50  ;;  %v307_v59 = vsub.f32 %v12210_v26, %v306_v51 }
  0x67   :  { %v12257_v56 = vsub.f32 %v176_v47, %v12245_v48  ;;  %v296_v60 = vand.u32 4294901760, %v295_v53  ;;  %v319_v61 = vsub.f32 %v12213_v27, %v318_v54  ;;  %v324_v63 = vand.u32 4294901760, %v12224_v38 }
  0x68   :  { %v313_v62 = vsub.f32 %v12222_v37, %v312_v55  ;;  %10045 = vmatpush1.bf16.msra.mxu0 %v12232_v42  ;;  %v290_v2 = vand.u32 4294901760, %v289_v57  ;;  %v302_v3 = vand.u32 4294901760, %v301_v58  ;;  %v308_v4 = vand.u32 4294901760, %v307_v59 }
  0x69   :  { %v260_v1 = vand.u32 4294901760, %v12257_v56  ;;  %v10046_v6 = vpack.c.bf16 %v296_v60, %v284_v52  ;;  %v320_v7 = vand.u32 4294901760, %v319_v61  ;;  %v325_v9 = vsub.f32 %v12224_v38, %v324_v63 }
  0x6a   :  { %v314_v8 = vand.u32 4294901760, %v313_v62  ;;  %v10048_v11 = vpack.c.bf16 %v302_v3, %v290_v2  ;;  %v330_v12 = vand.u32 4294901760, %v12226_v39  ;;  %v342_v13 = vand.u32 4294901760, %v12230_v41 }
  0x6b   :  { %v261_v10 = vsub.f32 %v12257_v56, %v260_v1  ;;  %10047 = vmatprep.subr.bf16.mxu0 %v10046_v6  ;;  %v10050_v14 = vpack.c.bf16 %v320_v7, %v308_v4  ;;  %v326_v15 = vand.u32 4294901760, %v325_v9  ;;  %v179_v20 = vsel %vm148_vm0, %v12277_v5, 0 }
  0x6c   :  { %v336_v21 = vand.u32 4294901760, %v12234_v43  ;;  %v331_v28 = vsub.f32 %v12226_v39, %v330_v12  ;;  %v343_v29 = vsub.f32 %v12230_v41, %v342_v13  ;;  %v12296_v30 = vand.u32 4294901760, %v179_v20 }
  0x6d   :  { %v262_v22 = vand.u32 4294901760, %v261_v10  ;;  %v348_v32 = vand.u32 4294901760, %v12236_v44  ;;  %v10052_v52 = vpack.c.bf16 %v326_v15, %v314_v8  ;;  %v10058_v3 = vpack.c.bf16 %v12200_v18, %v12198_v17  ;;  %v97_v10 = vld [vmem:[#allocation5] sm:$0xff] }
  0x6e   :  { %v337_v31 = vsub.f32 %v12234_v43, %v336_v21  ;;  %v332_v33 = vand.u32 4294901760, %v331_v28  ;;  %v344_v45 = vand.u32 4294901760, %v343_v29  ;;  %v12303_v47 = vsub.f32 %v179_v20, %v12296_v30 }
  0x6f   :  { %263 = vmatmul.mubr.f32.vlgmr.msra.gmra.mrb[0].mxu0 %v262_v22  ;;  %v349_v57 = vsub.f32 %v12236_v44, %v348_v32  ;;  %v10060_v4 = vpack.c.bf16 %v12206_v24, %v12202_v19  ;;  %v10062_v6 = vpack.c.bf16 %v12213_v27, %v12210_v26  ;;  %v10064_v7 = vpack.c.bf16 %v12224_v38, %v12222_v37  ;;  %v156_v19 = vld [vmem:[#allocation7 + $0x8] sm:$0xff]  ;;  %v158_v24 = vld [vmem:[#allocation7 + $0x18] sm:$0xff]  ;;  %v155_v27 = vld [vmem:[#allocation7] sm:$0xff] }
  0x70   :  { %10049 = vmatpush1.bf16.msra.mxu0 %v10048_v11  ;;  %268 = vmatprep.mubr.f32.mxu0 %v12075_v0  ;;  %v338_v53 = vand.u32 4294901760, %v337_v31  ;;  %v10054_v58 = vpack.c.bf16 %v344_v45, %v332_v33  ;;  %v271_v59 = vand.u32 4294901760, %v12303_v47  ;;  %v10066_v8 = vpack.c.bf16 %v12230_v41, %v12226_v39  ;;  %v12328_v11 = vld [vmem:[#allocation5 + $0x8] sm:$0xff]  ;;  %v157_v38 = vld [vmem:[#allocation7 + $0x10] sm:$0xff]  ;;  %v160_v39 = vld [vmem:[#allocation7 + $0x28] sm:$0xff] }
  0x71   :  { %10051 = vmatprep.subr.bf16.mxu0 %v10050_v14  ;;  %v350_v60 = vand.u32 4294901760, %v349_v57  ;;  %v10068_v9 = vpack.c.bf16 %v12236_v44, %v12234_v43  ;;  %v137_v14 = vmul.f32 %v97_v10, %v97_v10  ;;  %v138_v15 = vmul.f32 %v12328_v11, %v12328_v11 }
  0x72   :  { %v272_v61 = vsub.f32 %v12303_v47, %v271_v59  ;;  %v146_v20 = vmul.f32 %v12217_v35, %v12217_v35  ;;  %v147_v29 = vmul.f32 %v12277_v5, %v12277_v5  ;;  %v10082_v5 = vpack.c.bf16 %v294_v46, %v282_v34  ;;  %v162_v46 = vld [vmem:[#allocation7 + $0x38] sm:$0xff] }
  0x73   :  { %v10056_v62 = vpack.c.bf16 %v350_v60, %v338_v53  ;;  %v140_v22 = vsel %vm139_vm1, %v137_v14, 0.0  ;;  %v143_v28 = vsel %vm139_vm1, %v138_v15, 0.0  ;;  %v10084_v33 = vpack.c.bf16 %v300_v50, %v288_v49 }
  0x74   :  { %10053 = vmatpush1.bf16.msra.mxu0 %v10052_v52  ;;  %v273_v2 = vand.u32 4294901760, %v272_v61  ;;  %141 = vadd.xlane.f32.xlu0 %v140_v22  ;;  %v149_v31 = vsel %vm148_vm0, %v146_v20, 0.0  ;;  %v152_v35 = vsel %vm148_vm0, %v147_v29, 0.0  ;;  %v10086_v45 = vpack.c.bf16 %v318_v54, %v306_v51 }
  0x75   :  { %10055 = vmatprep.subr.bf16.mxu0 %v10054_v58  ;;  %144 = vadd.xlane.f32.xlu1 %v143_v28  ;;  %v10088_v17 = vpack.c.bf16 %v324_v63, %v312_v55  ;;  %v10090_v18 = vpack.c.bf16 %v342_v13, %v330_v12  ;;  %v10092_v26 = vpack.c.bf16 %v348_v32, %v336_v21  ;;  %v831_v34 = vand.u32 4294901760, %v156_v19  ;;  %v159_v55 = vld [vmem:[#allocation7 + $0x20] sm:$0xff] }
  0x76   :  { %274 = vmatmul.mubr.f32.gmra.mrb[2].mxu0 %v273_v2  ;;  %v835_v37 = vand.u32 4294901760, %v158_v24  ;;  %v833_v41 = vand.u32 4294901760, %v155_v27  ;;  %v837_v49 = vand.u32 4294901760, %v157_v38  ;;  %v826_v50 = vsel %vm139_vm1, %v97_v10, 0 }
  0x77   :  { %404 = vmatprep.mubr.f32.mxu0 %v12075_v0  ;;  %v12380_v43 = vsub.f32 %v156_v19, %v831_v34  ;;  %v839_v51 = vand.u32 4294901760, %v160_v39  ;;  %v843_v54 = vand.u32 4294901760, %v162_v46  ;;  %v829_v21 = vsel %vm139_vm1, %v12328_v11, 0 }
  0x78   :  { %10057 = vmatpush1.bf16.msra.mxu0 %v10056_v62  ;;  %150 = vadd.xlane.f32.xlu0 %v149_v31  ;;  %v12382_v44 = vsub.f32 %v158_v24, %v835_v37  ;;  %v12385_v63 = vsub.f32 %v155_v27, %v833_v41  ;;  %v12391_v12 = vsub.f32 %v157_v38, %v837_v49  ;;  %v12408_v58 = vand.u32 4294901760, %v829_v21 }
  0x79   :  { %10059 = vmatprep.subr.bf16.mxu0 %v10058_v3  ;;  %153 = vadd.xlane.f32.xlu1 %v152_v35  ;;  %v12396_v32 = vsub.f32 %v160_v39, %v839_v51  ;;  %v928_v52 = vand.u32 4294901760, %v12380_v43  ;;  %vm7183_vm0 = vcmask 253952  }
  0x7a   :  { %v940_v53 = vand.u32 4294901760, %v12382_v44  ;;  %v934_v60 = vand.u32 4294901760, %v12385_v63  ;;  %v946_v61 = vand.u32 4294901760, %v12391_v12  ;;  %v10124_v39 = vpack.c.bf16 %v12391_v12, %v12385_v63 }
  0x7b   :  { %406 = vmatmul.mubr.f32.vlgmr.msra.gmra.mrb[0].mxu0 %v12245_v48  ;;  %v929_v62 = vsub.f32 %v12380_v43, %v928_v52  ;;  %v952_v2 = vand.u32 4294901760, %v12396_v32 }
  0x7c   :  { %10061 = vmatpush1.bf16.msra.mxu0 %v10060_v4  ;;  %411 = vmatprep.mubr.f32.mxu0 %v12075_v0  ;;  %v12427_v4 = vpack.c.bf16 %v837_v49, %v833_v41  ;;  %v10138_v49 = vpack.c.bf16 %v940_v53, %v928_v52 }
  0x7d   :  { %10063 = vmatprep.subr.bf16.mxu0 %v10062_v6  ;;  %v12429_v6 = vpack.c.bf16 %v843_v54, %v839_v51  ;;  %v930_v14 = vand.u32 4294901760, %v929_v62  ;;  %v99_v51 = vld [vmem:[#allocation10] sm:$0xff] }
  0x7f   :  { %413 = vmatmul.mubr.f32.gmra.mrb[2].mxu0 %v12296_v30 }
  0x80   :  { %10065 = vmatpush1.bf16.msra.mxu0 %v10064_v7  ;;  %507 = vmatprep.mubr.f32.mxu0 %v12075_v0 }
  0x81   :  { %10067 = vmatprep.subr.bf16.mxu0 %v10066_v8  ;;  %v935_v8 = vsub.f32 %v12385_v63, %v934_v60 }
  0x83   :  { %v936_v31 = vand.u32 4294901760, %v935_v8  ;;  %v12577_v8 = vld [vmem:[#allocation10 + $0xd0] sm:$0xff] }
  0x84   :  { %10069 = vmatpush1.bf16.msra.mxu0 %v10068_v9  ;;  %v947_v9 = vsub.f32 %v12391_v12, %v946_v61  ;;  %v101_v12 = vld [vmem:[#allocation10 + $0x20] sm:$0xff] }
  0x85   :  { %10071 = vmatprep.subr.bf16.mxu0 %v12196_v16 }
  0x86   :  { %v948_v35 = vand.u32 4294901760, %v947_v9 }
  0x87   :  { %510 = vmatmul.mubr.f32.vlgmr.msra.gmra.mrb[0].mxu0 %v12257_v56  ;;  %v161_v56 = vld [vmem:[#allocation7 + $0x30] sm:$0xff] }
  0x88   :  { %10073 = vmatpush1.bf16.msra.mxu0 %v12204_v23  ;;  %515 = vmatprep.mubr.f32.mxu0 %v12075_v0  ;;  %v845_v13 = vand.u32 4294901760, %v161_v56  ;;  %v10116_v24 = vpack.c.bf16 %v948_v35, %v936_v31 }
  0x89   :  { %10075 = vmatprep.subr.bf16.mxu0 %v12208_v25 }
  0x8b   :  { %518 = vmatmul.mubr.f32.gmra.mrb[2].mxu0 %v12303_v47  ;;  %v12398_v47 = vsub.f32 %v162_v46, %v843_v54  ;;  %v100_v54 = vld [vmem:[#allocation10 + $0x10] sm:$0xff] }
  0x8c   :  { %10077 = vmatpush1.bf16.msra.mxu0 %v12220_v36  ;;  %600 = vmatprep.mubr.f32.mxu0 %v12075_v0 }
  0x8d   :  { %10079 = vmatprep.subr.bf16.mxu0 %v12228_v40  ;;  %v964_v3 = vand.u32 4294901760, %v12398_v47  ;;  %v10126_v46 = vpack.c.bf16 %v12398_v47, %v12396_v32 }
  0x8f   :  { %v965_v20 = vsub.f32 %v12398_v47, %v964_v3 }
  0x90   :  { %10081 = vmatpush1.bf16.msra.mxu0 %v12232_v42 }
  0x91   :  { %10083 = vmatprep.subr.bf16.mxu0 %v10082_v5 }
  0x93   :  { %604 = vmatmul.mubr.f32.vlgmr.msra.gmra.mrb[0].mxu0 %v260_v1  ;;  %v12387_v1 = vand.u32 4294901760, %v826_v50 }
  0x94   :  { %10085 = vmatpush1.bf16.msra.mxu0 %v10084_v33  ;;  %609 = vmatprep.mubr.f32.mxu0 %v12075_v0 }
  0x95   :  { %10087 = vmatprep.subr.bf16.mxu0 %v10086_v45  ;;  %v12406_v57 = vsub.f32 %v826_v50, %v12387_v1  ;;  %v10140_v50 = vpack.c.bf16 %v946_v61, %v934_v60  ;;  %v12550_v60 = vld [vmem:[#allocation10 + $0x90] sm:$0xff] }
  0x96   :  { %v1595_v62 = vand.u32 4294901760, %v12550_v60 }
  0x97   :  { %613 = vmatmul.mubr.f32.gmra.mrb[2].mxu0 %v271_v59  ;;  %v12414_v59 = vsub.f32 %v161_v56, %v845_v13  ;;  %v906_v7 = vand.u32 4294901760, %v12406_v57  ;;  %v1571_v56 = vand.u32 4294901760, %v100_v54 }
  0x98   :  { %10089 = vmatpush1.bf16.msra.mxu0 %v10088_v17  ;;  %719 = vmatprep.mubr.f32.mxu0 %v12075_v0  ;;  %v966_v17 = vand.u32 4294901760, %v965_v20 }
  0x99   :  { %10091 = vmatprep.subr.bf16.mxu0 %v10090_v18  ;;  %v970_v11 = vand.u32 4294901760, %v12414_v59  ;;  %v907_v28 = vsub.f32 %v12406_v57, %v906_v7  ;;  %v12613_v35 = vsub.f32 %v100_v54, %v1571_v56 }
  0x9b   :  { %v908_v18 = vand.u32 4294901760, %v907_v28  ;;  %v1423_v28 = vlaneseq }
  0x9c   :  { %10093 = vmatpush1.bf16.msra.mxu0 %v10092_v26 }
  0x9d   :  { %10095 = vmatprep.subr.bf16.mxu0 %v12196_v16  ;;  %v841_v16 = vand.u32 4294901760, %v159_v55 }
  0x9f   :  { %721 = vmatmul.mubr.f32.vlgmr.msra.gmra.mrb[0].mxu0 %v12245_v48  ;;  %v12452_v22 = vpack.c.bf16 %v845_v13, %v841_v16  ;;  %v1574_v13 = vand.u32 4294901760, %v101_v12 }
  0xa0   :  { %10097 = vmatpush1.bf16.msra.mxu0 %v12204_v23  ;;  %726 = vmatprep.mubr.f32.mxu0 %v12075_v0  ;;  %v12403_v23 = vpack.c.bf16 %v835_v37, %v831_v34 }
  0xa1   :  { %10099 = vmatprep.subr.bf16.mxu0 %v12208_v25  ;;  %v12412_v25 = vsub.f32 %v159_v55, %v841_v16  ;;  %v1568_v55 = vand.u32 4294901760, %v99_v51  ;;  %v102_v16 = vld [vmem:[#allocation10 + $0x30] sm:$0xff] }
  0xa3   :  { %728 = vmatmul.mubr.f32.gmra.mrb[2].mxu0 %v12296_v30  ;;  %v958_v10 = vand.u32 4294901760, %v12412_v25  ;;  %v10128_v41 = vpack.c.bf16 %v12414_v59, %v12412_v25  ;;  %v12524_v63 = vpack.c.bf16 %v1571_v56, %v1568_v55  ;;  %v12611_v31 = vsub.f32 %v99_v51, %v1568_v55 }
  0xa4   :  { %10101 = vmatpush1.bf16.msra.mxu0 %v12220_v36  ;;  %810 = vmatprep.mubr.f32.mxu0 %v12075_v0  ;;  %v941_v36 = vsub.f32 %v12382_v44, %v940_v53  ;;  %v12538_v53 = vld [vmem:[#allocation10 + $0x60] sm:$0xff] }
  0xa5   :  { %10103 = vmatprep.subr.bf16.mxu0 %v12228_v40  ;;  %v12433_v40 = vsub.f32 %v829_v21, %v12408_v58  ;;  %v959_v5 = vsub.f32 %v12412_v25, %v958_v10  ;;  %10155 = vmatprep.subr.bf16.mxu1 %v12524_v63  ;;  %v1577_v21 = vand.u32 4294901760, %v102_v16  ;;  %v1586_v25 = vand.u32 4294901760, %v12538_v53 }
  0xa6   :  { %v942_v15 = vand.u32 4294901760, %v941_v36  ;;  %10157 = vmatpush3.bf16.msra.mxu1 %v12524_v63  ;;  %v12554_v36 = vld [vmem:[#allocation10 + $0xa0] sm:$0xff] }
  0xa7   :  { %v917_v29 = vand.u32 4294901760, %v12433_v40  ;;  %v960_v26 = vand.u32 4294901760, %v959_v5  ;;  %v1424_v5 = vshrl.u32 %v1423_v28, 7 }
  0xa8   :  { %10105 = vmatpush1.bf16.msra.mxu0 %v12232_v42  ;;  %v953_v42 = vsub.f32 %v12396_v32, %v952_v2  ;;  %v10114_v33 = vpack.c.bf16 %v942_v15, %v930_v14  ;;  %v12528_v32 = vpack.c.bf16 %v1577_v21, %v1574_v13  ;;  %v12589_v14 = vld [vmem:[#allocation10 + $0xe0] sm:$0xff]  ;;  %v12591_v15 = vld [vmem:[#allocation10 + $0xf0] sm:$0xff] }
  0xa9   :  { %10107 = vmatprep.subr.bf16.mxu0 %v12403_v23  ;;  %v918_v19 = vsub.f32 %v12433_v40, %v917_v29  ;;  %v1610_v20 = vand.u32 4294901760, %v12589_v14 }
  0xaa   :  { %v954_v45 = vand.u32 4294901760, %v953_v42  ;;  %10159 = vmatprep.subr.bf16.mxu1 %v12528_v32 }
  0xab   :  { %812 = vmatmul.mubr.f32.vlgmr.msra.gmra.mrb[0].mxu0 %v12245_v48  ;;  %v971_v48 = vsub.f32 %v12414_v59, %v970_v11  ;;  %v919_v37 = vand.u32 4294901760, %v918_v19  ;;  %10161 = vmatpush3.bf16.msra.mxu1 %v12528_v32 }
  0xac   :  { %10109 = vmatpush1.bf16.msra.mxu0 %v12427_v4  ;;  %817 = vmatprep.mubr.f32.mxu0 %v12075_v0  ;;  %v10118_v34 = vpack.c.bf16 %v966_v17, %v954_v45  ;;  %v14166_v45 = vand.u32 4294901760, %v12613_v35 }
  0xad   :  { %10111 = vmatprep.subr.bf16.mxu0 %v12429_v6  ;;  %v972_v27 = vand.u32 4294901760, %v971_v48  ;;  %v134_v48 = vld [vmem:[%s14152_s4 + $0x3] sm:$0x1] }
  0xae   :  { %v1679_v19 = vsub.f32 %v12613_v35, %v14166_v45 }
  0xaf   :  { %819 = vmatmul.mubr.f32.gmra.mrb[2].mxu0 %v12296_v30  ;;  %v10120_v38 = vpack.c.bf16 %v972_v27, %v960_v26  ;;  %v10122_v30 = vpack.c.bf16 %v12382_v44, %v12380_v43  ;;  %v10142_v43 = vpack.c.bf16 %v964_v3, %v952_v2  ;;  %v10144_v44 = vpack.c.bf16 %v970_v11, %v958_v10  ;;  %v12556_v2 = vld [vmem:[#allocation10 + $0xb0] sm:$0xff] }
  0xb0   :  { %10113 = vmatpush1.bf16.msra.mxu0 %v12452_v22  ;;  %903 = vmatprep.mubr.f32.mxu0 %v12075_v0  ;;  %v1607_v11 = vand.u32 4294901760, %v12577_v8  ;;  %v12632_v26 = vsub.f32 %v102_v16, %v1577_v21  ;;  %v12634_v27 = vsub.s32 0, %v1424_v5 }
  0xb1   :  { %10115 = vmatprep.subr.bf16.mxu0 %v10114_v33  ;;  %v14167_v33 = vand.u32 4294901760, %v12611_v31 }
  0xb2   :  { %14210 = vst [vmem:[#allocation17_spill] sm:$0xff] %v12634_v27 }
  0xb3   :  { %909 = vmatmul.mubr.f32.vlgmr.msra.gmra.mrb[0].mxu0 %v908_v18  ;;  %v1672_v18 = vsub.f32 %v12611_v31, %v14167_v33 }
  0xb4   :  { %10117 = vmatpush1.bf16.msra.mxu0 %v10116_v24  ;;  %914 = vmatprep.mubr.f32.mxu0 %v12075_v0  ;;  %v12630_v24 = vsub.f32 %v101_v12, %v1574_v13 }
  0xb5   :  { %10119 = vmatprep.subr.bf16.mxu0 %v10118_v34  ;;  %v1429_v34 = vsub.f32 1.0, %v134_v48 }
  0xb7   :  { %920 = vmatmul.mubr.f32.gmra.mrb[2].mxu0 %v919_v37  ;;  %v1673_v37 = vand.u32 4294901760, %v1672_v18 }
  0xb8   :  { %10121 = vmatpush1.bf16.msra.mxu0 %v10120_v38  ;;  %1030 = vmatprep.mubr.f32.mxu0 %v12075_v0  ;;  %v1680_v38 = vand.u32 4294901760, %v1679_v19 }
  0xb9   :  { %10123 = vmatprep.subr.bf16.mxu0 %v10122_v30  ;;  %v14165_v30 = vand.u32 4294901760, %v12630_v24 }
  0xbb   :  { %1032 = vmatmul.mubr.f32.vlgmr.msra.gmra.mrb[0].mxu0 %v12387_v1 }
  0xbc   :  { %10125 = vmatpush1.bf16.msra.mxu0 %v10124_v39  ;;  %1037 = vmatprep.mubr.f32.mxu0 %v12075_v0  ;;  %v14164_v39 = vand.u32 4294901760, %v12632_v26 }
  0xbd   :  { %10127 = vmatprep.subr.bf16.mxu0 %v10126_v46  ;;  %v12639_v46 = vpack.c.bf16 %v1680_v38, %v1673_v37  ;;  %v12700_v38 = vsub.f32 %v12550_v60, %v1595_v62 }
  0xbf   :  { %1039 = vmatmul.mubr.f32.gmra.mrb[2].mxu0 %v12408_v58 }
  0xc0   :  { %10129 = vmatpush1.bf16.msra.mxu0 %v10128_v41  ;;  %1125 = vmatprep.mubr.f32.mxu0 %v12075_v0  ;;  %v1686_v41 = vsub.f32 %v12630_v24, %v14165_v30 }
  0xc1   :  { %10131 = vmatprep.subr.bf16.mxu0 %v12403_v23 }
  0xc2   :  { %v1687_v56 = vand.u32 4294901760, %v1686_v41 }
  0xc3   :  { %1128 = vmatmul.mubr.f32.vlgmr.msra.gmra.mrb[0].mxu0 %v12406_v57  ;;  %v12542_v57 = vld [vmem:[#allocation10 + $0x80] sm:$0xff] }
  0xc4   :  { %10133 = vmatpush1.bf16.msra.mxu0 %v12427_v4  ;;  %1133 = vmatprep.mubr.f32.mxu0 %v12075_v0  ;;  %v1592_v61 = vand.u32 4294901760, %v12542_v57 }
  0xc5   :  { %10135 = vmatprep.subr.bf16.mxu0 %v12429_v6 }
  0xc6   :  { %v12695_v37 = vsub.f32 %v12542_v57, %v1592_v61 }
  0xc7   :  { %1136 = vmatmul.mubr.f32.gmra.mrb[2].mxu0 %v12433_v40  ;;  %v12575_v40 = vld [vmem:[#allocation10 + $0xc0] sm:$0xff] }
  0xc8   :  { %10137 = vmatpush1.bf16.msra.mxu0 %v12452_v22  ;;  %1214 = vmatprep.mubr.f32.mxu0 %v12075_v0  ;;  %v1604_v10 = vand.u32 4294901760, %v12575_v40 }
  0xc9   :  { %10139 = vmatprep.subr.bf16.mxu0 %v10138_v49  ;;  %v1693_v49 = vsub.f32 %v12632_v26, %v14164_v39 }
  0xca   :  { %v12599_v42 = vpack.c.bf16 %v1607_v11, %v1604_v10 }
  0xcb   :  { %1218 = vmatmul.mubr.f32.vlgmr.msra.gmra.mrb[0].mxu0 %v906_v7  ;;  %v1601_v7 = vand.u32 4294901760, %v12556_v2  ;;  %v1694_v12 = vand.u32 4294901760, %v1693_v49 }
  0xcc   :  { %10141 = vmatpush1.bf16.msra.mxu0 %v10140_v50  ;;  %1223 = vmatprep.mubr.f32.mxu0 %v12075_v0 }
  0xcd   :  { %10143 = vmatprep.subr.bf16.mxu0 %v10142_v43  ;;  %v1426_v43 = vrot.slane %v134_v48, %v12634_v27  ;;  %v12662_v21 = vpack.c.bf16 %v1694_v12, %v1687_v56 }
  0xcf   :  { %1227 = vmatmul.mubr.f32.gmra.mrb[2].mxu0 %v917_v29 }
  0xd0   :  { %10145 = vmatpush1.bf16.msra.mxu0 %v10144_v44  ;;  %1321 = vmatprep.mubr.f32.mxu0 %v12075_v0  ;;  %v1433_v44 = vrot.slane %v1429_v34, %v12634_v27 }
  0xd1   :  { %10147 = vmatprep.subr.bf16.mxu0 %v12403_v23  ;;  %v12540_v23 = vld [vmem:[#allocation10 + $0x70] sm:$0xff] }
  0xd2   :  { %v1589_v59 = vand.u32 4294901760, %v12540_v23 }
  0xd3   :  { %1323 = vmatmul.mubr.f32.vlgmr.msra.gmra.mrb[0].mxu0 %v12387_v1 }
  0xd4   :  { %10149 = vmatpush1.bf16.msra.mxu0 %v12427_v4  ;;  %1328 = vmatprep.mubr.f32.mxu0 %v12075_v0  ;;  %v12563_v3 = vpack.c.bf16 %v1589_v59, %v1586_v25  ;;  %v12571_v4 = vpack.c.bf16 %v1595_v62, %v1592_v61 }
  0xd5   :  { %10151 = vmatprep.subr.bf16.mxu0 %v12429_v6  ;;  %v1598_v6 = vand.u32 4294901760, %v12554_v36 }
  0xd7   :  { %1330 = vmatmul.mubr.f32.gmra.mrb[2].mxu0 %v12408_v58  ;;  %v12585_v9 = vpack.c.bf16 %v1601_v7, %v1598_v6 }
  0xd8   :  { %10153 = vmatpush1.bf16.msra.mxu0 %v12452_v22  ;;  %1408 = vmatprep.mubr.f32.mxu0 %v12075_v0  ;;  %v14168_v22 = vand.u32 4294901760, %v12591_v15 }
  0xda   :  { %v12609_v29 = vpack.c.bf16 %v14168_v22, %v1610_v20 }
  0xdb   :  { %1410 = vmatmul.mubr.f32.vlgmr.msra.gmra.mrb[0].mxu0 %v12387_v1  ;;  %v12530_v1 = vld [vmem:[#allocation10 + $0x40] sm:$0xff] }
  0xdc   :  { %1415 = vmatprep.mubr.f32.mxu0 %v12075_v0  ;;  %v12532_v0 = vld [vmem:[#allocation10 + $0x50] sm:$0xff]  ;;  %v1580_v47 = vand.u32 4294901760, %v12530_v1 }
  0xdd   :  { %v1583_v52 = vand.u32 4294901760, %v12532_v0 }
  0xde   :  { %v12648_v50 = vsub.f32 %v12530_v1, %v1580_v47 }
  0xdf   :  { %1417 = vmatmul.mubr.f32.gmra.mrb[2].mxu0 %v12408_v58  ;;  %v12546_v58 = vpack.c.bf16 %v1583_v52, %v1580_v47  ;;  %v12655_v51 = vsub.f32 %v12532_v0, %v1583_v52  ;;  %v12670_v0 = vsub.f32 %v12538_v53, %v1586_v25  ;;  %v12675_v47 = vsub.f32 %v12540_v23, %v1589_v59  ;;  %v132_v53 = vld [vmem:[%s14152_s4 + $0x1] sm:$0x1] }
  0xe0   :  { %v14163_v16 = vand.u32 4294901760, %v12648_v50  ;;  %v12705_v49 = vrot.slane %v132_v53, %v12634_v27 }
  0xe1   :  { %10163 = vmatprep.subr.bf16.mxu1 %v12546_v58  ;;  %v14161_v13 = vand.u32 4294901760, %v12655_v51  ;;  %v14160_v18 = vand.u32 4294901760, %v12670_v0  ;;  %v14156_v19 = vand.u32 4294901760, %v12675_v47 }
  0xe2   :  { %10165 = vmatpush3.bf16.msra.mxu1 %v12546_v58  ;;  %v1700_v1 = vsub.f32 %v12648_v50, %v14163_v16 }
  0xe3   :  { %10167 = vmatprep.subr.bf16.mxu1 %v12563_v3  ;;  %v1707_v5 = vsub.f32 %v12655_v51, %v14161_v13  ;;  %v1714_v23 = vsub.f32 %v12670_v0, %v14160_v18  ;;  %v1721_v59 = vsub.f32 %v12675_v47, %v14156_v19 }
  0xe4   :  { %v1701_v48 = vand.u32 4294901760, %v1700_v1  ;;  %v14159_v1 = vand.u32 4294901760, %v12695_v37 }
  0xe5   :  { %v1708_v34 = vand.u32 4294901760, %v1707_v5  ;;  %v1715_v56 = vand.u32 4294901760, %v1714_v23  ;;  %v1722_v12 = vand.u32 4294901760, %v1721_v59  ;;  %v14157_v5 = vand.u32 4294901760, %v12700_v38 }
  0xe6   :  { %10169 = vmatpush3.bf16.msra.mxu1 %v12563_v3  ;;  %v1728_v60 = vsub.f32 %v12695_v37, %v14159_v1 }
  0xe7   :  { %10171 = vmatprep.subr.bf16.mxu1 %v12571_v4  ;;  %v12712_v19 = vpack.c.bf16 %v1722_v12, %v1715_v56  ;;  %v1735_v62 = vsub.f32 %v12700_v38, %v14157_v5 }
  0xe8   :  { %v1729_v23 = vand.u32 4294901760, %v1728_v60 }
  0xe9   :  { %v1736_v59 = vand.u32 4294901760, %v1735_v62 }
  0xea   :  { %10173 = vmatpush3.bf16.msra.mxu1 %v12571_v4 }
  0xeb   :  { %10175 = vmatprep.subr.bf16.mxu1 %v12585_v9  ;;  %v12737_v5 = vpack.c.bf16 %v1736_v59, %v1729_v23 }
  0xee   :  { %10177 = vmatpush3.bf16.msra.mxu1 %v12585_v9 }
  0xef   :  { %10179 = vmatprep.subr.bf16.mxu1 %v12599_v42 }
  0xf2   :  { %10181 = vmatpush3.bf16.msra.mxu1 %v12599_v42 }
  0xf3   :  { %10183 = vmatprep.subr.bf16.mxu1 %v12609_v29 }
  0xf6   :  { %10185 = vmatpush3.bf16.msra.mxu1 %v12609_v29 }
  0xf7   :  { %10187 = vmatprep.subr.bf16.mxu1 %v12639_v46 }
 0x101   :  { %v12621_v17 = vpop.xlane.xlu0 %141 }
 0x102   :  { %14209 = vst [vmem:[#allocation16_spill] sm:$0xff] %v12621_v17  ;;  %v12657_v54 = vpop.xlane.xlu1 %144  ;;  %v1427_v52 = vmul.f32 %v1426_v43, %v12621_v17 }
 0x103   :  { %14211 = vst [vmem:[#allocation18_spill] sm:$0xff] %v12657_v54  ;;  %v1428_v57 = vmul.f32 %v1426_v43, %v12657_v54 }
 0x105   :  { %v151_v55 = vpop.xlane.xlu0 %150 }
 0x106   :  { %v1434_v28 = vmul.f32 %v1433_v44, %v151_v55  ;;  %v154_v25 = vpop.xlane.xlu1 %153  ;;  %v12707_v55 = vpack.c.bf16 %v1708_v34, %v1701_v48 }
 0x107   :  { %v1435_v61 = vmul.f32 %v1433_v44, %v154_v25  ;;  %v12730_v44 = vsub.f32 %v12556_v2, %v1601_v7  ;;  %v12745_v7 = vsub.f32 %v12575_v40, %v1604_v10 }
 0x108   :  { %v12702_v41 = vadd.f32 %v1434_v28, %v1427_v52  ;;  %v12723_v52 = vsub.f32 %v12554_v36, %v1598_v6  ;;  %v1444_v28 = vsub.f32 1.0, %v132_v53 }
 0x109   :  { %v12733_v12 = vadd.f32 %v1435_v61, %v1428_v57  ;;  %v14162_v6 = vand.u32 4294901760, %v12730_v44  ;;  %v7481_v57 = vld [vmem:[%s14152_s4 + $0x2] ss:$0 sm:$0xff]  ;;  %v14169_v18 = vand.u32 4294901760, %v12745_v7 }
 0x10a   :  { %v1449_v43 = vmul.f32 %v12705_v49, %v12702_v41  ;;  %v14158_v56 = vand.u32 4294901760, %v12723_v52  ;;  %v1468_v36 = vrot.slane %v1444_v28, %v12634_v27  ;;  %v1475_v60 = vmul.f32 %v1444_v28, %v1444_v28 }
 0x10b   :  { %v1749_v62 = vsub.f32 %v12730_v44, %v14162_v6 }
 0x10c   :  { %v1742_v2 = vsub.f32 %v12723_v52, %v14158_v56  ;;  %v1450_v56 = vmul.f32 %v12705_v49, %v12733_v12 }
 0x10d   :  { %v1750_v1 = vand.u32 4294901760, %v1749_v62 }
 0x10e   :  { %v1743_v28 = vand.u32 4294901760, %v1742_v2 }
 0x1ae   :  { %v1411_v48 = vpop.f32.mrb[0].mxu0 }
 0x1af   :  { %v1438_v34 = vmul.f32 2.0, %v1411_v48  ;;  %v1413_v25 = vpop.f32.mrb[1].mxu0 }
 0x1b0   :  { %v1488_v39 = vmul.f32 %v1468_v36, %v1413_v25 }
 0x1b1   :  { %v1440_v53 = vsub.f32 1.0, %v1438_v34  ;;  %v12756_v34 = vsub.f32 %v12577_v8, %v1607_v11  ;;  %v12763_v11 = vpack.c.bf16 %v1750_v1, %v1743_v28  ;;  %v12775_v1 = vsub.f32 %v12589_v14, %v1610_v20 }
 0x1b2   :  { %v1418_v61 = vpop.f32.mrb[2].mxu0  ;;  %v14212_v28 = vand.u32 4294901760, %v12591_v15 }
 0x1b3   :  { %v1442_v23 = vadd.f32 %v1440_v53, %v12702_v41  ;;  %v1451_v59 = vadd.f32 %v1449_v43, %v1440_v53  ;;  %v1439_v40 = vmul.f32 2.0, %v1418_v61  ;;  %v1420_v10 = vpop.f32.mrb[3].mxu0  ;;  %v14172_v13 = vand.u32 4294901760, %v12756_v34 }
 0x1b4   :  { %v1756_v43 = vsub.f32 %v12745_v7, %v14169_v18  ;;  %v12780_v18 = vsub.f32 %v12591_v15, %v14212_v28 }
 0x1b5   :  { %v1453_v6 = vmax.f32 %v1451_v59, 1e-15  ;;  %v1463_v16 = vmul.f32 2.0, %v1442_v23  ;;  %v1494_v30 = vmul.f32 %v7481_v57, %v1442_v23  ;;  %v1441_v8 = vsub.f32 1.0, %v1439_v40 }
 0x1b6   :  { %v1763_v53 = vsub.f32 %v12756_v34, %v14172_v13  ;;  %v1459_v2 = vmul.f32 %v1442_v23, %v1442_v23  ;;  %v1757_v25 = vand.u32 4294901760, %v1756_v43  ;;  %v1489_v40 = vmul.f32 %v1468_v36, %v1420_v10 }
 0x1b7   :  { %11828 = vrcp.f32 %v1453_v6  ;;  %v1469_v62 = vmul.f32 %v1468_v36, %v1463_v16  ;;  %v1496_v45 = vsub.f32 %v1488_v39, %v1494_v30  ;;  %v1443_v59 = vadd.f32 %v1441_v8, %v12733_v12 }
 0x1b8   :  { %v1452_v33 = vadd.f32 %v1450_v56, %v1441_v8  ;;  %v1764_v22 = vand.u32 4294901760, %v1763_v53  ;;  %v1479_v39 = vrot.slane %v1475_v60, %v12634_v27  ;;  %v14171_v10 = vand.u32 4294901760, %v12775_v1 }
 0x1b9   :  { %v1471_v6 = vmul.f32 %v1469_v62, %v1411_v48  ;;  %v1464_v16 = vmul.f32 2.0, %v1443_v59  ;;  %v1495_v30 = vmul.f32 %v7481_v57, %v1443_v59  ;;  %v14170_v8 = vand.u32 4294901760, %v12780_v18 }
 0x1ba   :  { %v1454_v23 = vmax.f32 %v1452_v33, 1e-15  ;;  %v12783_v56 = vpack.c.bf16 %v1764_v22, %v1757_v25  ;;  %v1461_v14 = vmul.f32 %v1459_v2, %v12705_v49  ;;  %v1460_v53 = vmul.f32 %v1443_v59, %v1443_v59 }
 0x1bb   :  { %v1470_v20 = vmul.f32 %v1468_v36, %v1464_v16  ;;  %v1497_v43 = vsub.f32 %v1489_v40, %v1495_v30  ;;  %v1770_v15 = vsub.f32 %v12775_v1, %v14171_v10  ;;  %v1777_v33 = vsub.f32 %v12780_v18, %v14170_v8 }
 0x1bc   :  { %11830 = vrcp.f32 %v1454_v23  ;;  %v1473_v22 = vsub.f32 %v1461_v14, %v1471_v6  ;;  %v1480_v62 = vmul.f32 %v1479_v39, %v12702_v41  ;;  %v1462_v2 = vmul.f32 %v1460_v53, %v12705_v49 }
 0x1bd   :  { %v1472_v48 = vmul.f32 %v1470_v20, %v1418_v61  ;;  %v1771_v60 = vand.u32 4294901760, %v1770_v15  ;;  %v1778_v57 = vand.u32 4294901760, %v1777_v33  ;;  %v12800_v59 = vpack.c.bf16 %v12613_v35, %v12611_v31 }
 0x1be   :  { %v1482_v40 = vadd.f32 %v1480_v62, %v1473_v22  ;;  %v12804_v61 = vpack.c.bf16 %v12632_v26, %v12630_v24  ;;  %v1481_v41 = vmul.f32 %v1479_v39, %v12733_v12  ;;  %v12809_v15 = vpack.c.bf16 %v12655_v51, %v12648_v50 }
 0x1bf   :  { %v12796_v36 = vpack.c.bf16 %v1778_v57, %v1771_v60  ;;  %v1474_v16 = vsub.f32 %v1462_v2, %v1472_v48  ;;  %v12813_v22 = vpack.c.bf16 %v12675_v47, %v12670_v0  ;;  %v12817_v12 = vpack.c.bf16 %v12700_v38, %v12695_v37 }
 0x1c0   :  { %14213 = vst [vmem:[#allocation19_spill] sm:$0xff] %v12809_v15 }
 0x1c1   :  { %v11829_v25 = vpop.eup %11828  ;;  %v1483_v49 = vadd.f32 %v1481_v41, %v1474_v16  ;;  %14214 = vst [vmem:[#allocation20_spill] sm:$0xff] %v12813_v22  ;;  %14215 = vst [vmem:[#allocation21_spill] sm:$0xff] %v12817_v12 }
 0x1c2   :  { %v1484_v28 = vmul.f32 %v11829_v25, %v11829_v25  ;;  %v1498_v23 = vmul.f32 %v11829_v25, %v1496_v45 }
 0x1c4   :  { %v1486_v30 = vmul.f32 %v1484_v28, %v1482_v40  ;;  %v1500_v39 = vmul.f32 2.0, %v1498_v23  ;;  %v12825_v28 = vpack.c.bf16 %v12756_v34, %v12745_v7  ;;  %v12829_v23 = vpack.c.bf16 %v12780_v18, %v12775_v1 }
 0x1c6   :  { %v11831_v6 = vpop.eup %11830  ;;  %v1502_v14 = vsub.f32 1.0, %v1486_v30  ;;  %14217 = vst [vmem:[#allocation23_spill] sm:$0xff] %v12825_v28  ;;  %14218 = vst [vmem:[#allocation24_spill] sm:$0xff] %v12829_v23 }
 0x1c7   :  { %v1485_v20 = vmul.f32 %v11831_v6, %v11831_v6  ;;  %v1499_v53 = vmul.f32 %v11831_v6, %v1497_v43  ;;  %v12821_v43 = vpack.c.bf16 %v12730_v44, %v12723_v52 }
 0x1c8   :  { %11832 = vrcp.f32 %v1502_v14 }
 0x1c9   :  { %v1487_v33 = vmul.f32 %v1485_v20, %v1483_v49  ;;  %14216 = vst [vmem:[#allocation22_spill] sm:$0xff] %v12821_v43  ;;  %v1501_v62 = vmul.f32 2.0, %v1499_v53 }
 0x1cb   :  { %v1503_v45 = vsub.f32 1.0, %v1487_v33 }
 0x1cd   :  { %11834 = vrcp.f32 %v1503_v45 }
 0x1d2   :  { %v11833_v48 = vpop.eup %11832 }
 0x1d3   :  { %v1505_v60 = vmul.f32 %v11833_v48, %v1500_v39 }
 0x1d5   :  { %v7482_v57 = vclamps-f32 %v1505_v60, 3e+18 }
 0x1d7   :  { %v11835_v25 = vpop.eup %11834  ;;  %v1517_v2 = vand.u32 2147483647, %v7482_v57  ;;  %vm1513_vm6 = vcmp.ge.f32.partialorder %v7482_v57, 0.0 }
 0x1d8   :  { %v1507_v40 = vmul.f32 %v11835_v25, %v1501_v62 }
 0x1d9   :  { %v1519_v16 = vmul.f32 %v1517_v2, %v1517_v2 }
 0x1da   :  { %v7483_v30 = vclamps-f32 %v1507_v40, 3e+18 }
 0x1db   :  { %v1521_v41 = vadd.f32 1.0, %v1519_v16 }
 0x1dc   :  { %v1518_v6 = vand.u32 2147483647, %v7483_v30  ;;  %vm1514_vm7 = vcmp.ge.f32.partialorder %v7483_v30, 0.0 }
 0x1dd   :  { %11836 = vrsqrt.f32 %v1521_v41  ;;  %vm1525_vm2 = vcmp.eq.f32.partialorder %v1521_v41, inf  ;;  %v1528_v33 = vand.u32 2147483648, %v1521_v41  ;;  %vm1527_vm3 = vcmp.eq.f32.partialorder %v1521_v41, 0.0 }
 0x1de   :  { %v1520_v14 = vmul.f32 %v1518_v6, %v1518_v6 }
 0x1e0   :  { %v1522_v49 = vadd.f32 1.0, %v1520_v14  ;;  %v131_v14 = vld [vmem:[%s14152_s4] sm:$0x1] }
 0x1e2   :  { %11838 = vrsqrt.f32 %v1522_v49  ;;  %vm1532_vm4 = vcmp.eq.f32.partialorder %v1522_v49, inf  ;;  %v1535_v25 = vand.u32 2147483648, %v1522_v49  ;;  %vm1534_vm5 = vcmp.eq.f32.partialorder %v1522_v49, 0.0 }
 0x1e7   :  { %v11837_v20 = vpop.eup %11836 }
 0x1e8   :  { %v1524_v53 = vmul.f32 %v11837_v20, %v1521_v41  ;;  %v1508_v20 = vmul.f32 2.0, %v131_v14 }
 0x1ea   :  { %v1526_v45 = vsel %vm1525_vm2, %v1521_v41, %v1524_v53 }
 0x1eb   :  { %v1529_v39 = vsel %vm1527_vm3, %v1528_v33, %v1526_v45  ;;  %v1548_v33 = vrot.slane %v1508_v20, %v12634_v27 }
 0x1ec   :  { %v11839_v48 = vpop.eup %11838  ;;  %v1537_v60 = vadd.f32 %v1529_v39, %v1517_v2  ;;  %v12076_v2 = vmov -1.0  }
 0x1ed   :  { %v1531_v62 = vmul.f32 %v11839_v48, %v1522_v49  ;;  %v1515_v45 = vsel %vm1513_vm6, 1.0, %v12076_v2 }
 0x1ee   :  { %11840 = vlog2.f32 %v1537_v60 }
 0x1ef   :  { %v1533_v40 = vsel %vm1532_vm4, %v1522_v49, %v1531_v62 }
 0x1f0   :  { %v1536_v16 = vsel %vm1534_vm5, %v1535_v25, %v1533_v40  ;;  %v1516_v25 = vsel %vm1514_vm7, 1.0, %v12076_v2 }
 0x1f1   :  { %v1538_v8 = vadd.f32 %v1536_v16, %v1518_v6 }
 0x1f3   :  { %11842 = vlog2.f32 %v1538_v8 }
 0x1f8   :  { %v11841_v53 = vpop.eup %11840 }
 0x1f9   :  { %v1540_v41 = vmul.f32 0.6931472, %v11841_v53 }
 0x1fb   :  { %v1543_v39 = vmul.f32 %v1540_v41, %v1515_v45 }
 0x1fd   :  { %v11843_v48 = vpop.eup %11842  ;;  %v1549_v60 = vmul.f32 %v1548_v33, %v1543_v39 }
 0x1fe   :  { %v1542_v49 = vmul.f32 0.6931472, %v11843_v48 }
 0x1ff   :  { %v1551_v62 = vmul.f32 1.442695, %v1549_v60  ;;  %v1555_v6 = vsub.f32 0.0, %v1549_v60 }
 0x200   :  { %v1544_v40 = vmul.f32 %v1542_v49, %v1516_v25 }
 0x201   :  { %v1557_v16 = vmul.f32 1.442695, %v1555_v6  ;;  %11844 = vpow2.f32 %v1551_v62 }
 0x202   :  { %v1550_v8 = vmul.f32 %v1548_v33, %v1544_v40 }
 0x203   :  { %11846 = vpow2.f32 %v1557_v16 }
 0x204   :  { %v1553_v57 = vmul.f32 1.442695, %v1550_v8  ;;  %v1556_v14 = vsub.f32 0.0, %v1550_v8 }
 0x206   :  { %v1559_v53 = vmul.f32 1.442695, %v1556_v14  ;;  %11848 = vpow2.f32 %v1553_v57 }
 0x208   :  { %11850 = vpow2.f32 %v1559_v53  ;;  %v115_v53 = vld [vmem:[#allocation10 + $0x8] sm:$0xff] }
 0x20b   :  { %v11845_v20 = vpop.eup %11844 }
 0x20d   :  { %v11847_v10 = vpop.eup %11846 }
 0x20e   :  { %v1561_v41 = vsub.f32 %v11845_v20, %v11847_v10  ;;  %v116_v20 = vld [vmem:[#allocation10 + $0x18] sm:$0xff] }
 0x210   :  { %v12835_v30 = vmul.f32 0.5, %v1561_v41  ;;  %v11849_v45 = vpop.eup %11848  ;;  %v117_v41 = vld [vmem:[#allocation10 + $0x28] sm:$0xff] }
 0x212   :  { %v11851_v39 = vpop.eup %11850  ;;  %v1565_v2 = vmul.f32 %v12835_v30, %v12835_v30 }
 0x213   :  { %v1562_v48 = vsub.f32 %v11849_v45, %v11851_v39  ;;  %v2270_v45 = vand.u32 4294901760, %v115_v53  ;;  %v2273_v39 = vand.u32 4294901760, %v116_v20 }
 0x214   :  { %v12839_v60 = vand.u32 4294901760, %v1565_v2 }
 0x215   :  { %v12841_v33 = vmul.f32 0.5, %v1562_v48  ;;  %v2276_v48 = vand.u32 4294901760, %v117_v41 }
 0x216   :  { %v12844_v49 = vsub.f32 %v1565_v2, %v12839_v60  ;;  %v118_v2 = vld [vmem:[#allocation10 + $0x38] sm:$0xff] }
 0x217   :  { %v1566_v62 = vmul.f32 %v12841_v33, %v12841_v33 }
 0x218   :  { %v14174_v10 = vand.u32 4294901760, %v12844_v49 }
 0x219   :  { %v12849_v6 = vand.u32 4294901760, %v1566_v62 }
 0x21a   :  { %v1651_v25 = vsub.f32 %v12844_v49, %v14174_v10 }
 0x21b   :  { %v12855_v40 = vsub.f32 %v1566_v62, %v12849_v6  ;;  %v2279_v62 = vand.u32 4294901760, %v118_v2 }
 0x21c   :  { %v1652_v16 = vand.u32 4294901760, %v1651_v25  ;;  %v12882_v25 = vpack.c.bf16 %v2273_v39, %v2270_v45 }
 0x21d   :  { %v14173_v8 = vand.u32 4294901760, %v12855_v40  ;;  %v12890_v13 = vpack.c.bf16 %v2279_v62, %v2276_v48 }
 0x21e   :  { %8386 = vmatprep.mubr.f32.mxu1 %v1652_v16  ;;  %v12884_v16 = vsub.f32 %v115_v53, %v2270_v45 }
 0x21f   :  { %v1661_v57 = vsub.f32 %v12855_v40, %v14173_v8  ;;  %v12892_v8 = vsub.f32 %v118_v2, %v2279_v62 }
 0x221   :  { %v1662_v14 = vand.u32 4294901760, %v1661_v57  ;;  %v12886_v57 = vsub.f32 %v116_v20, %v2273_v39  ;;  %v14223_v20 = vand.u32 4294901760, %v12630_v24  ;;  %v14226_v39 = vand.u32 4294901760, %v12855_v40 }
 0x222   :  { %v14230_v24 = vand.u32 4294901760, %v12670_v0  ;;  %v14236_v0 = vand.u32 4294901760, %v12723_v52  ;;  %v14242_v52 = vand.u32 4294901760, %v12775_v1 }
 0x223   :  { %8387 = vmatmul.mubr.f32.vlgmr.msra.gmra.mrb[0].mxu1 %v1662_v14  ;;  %v12888_v14 = vsub.f32 %v117_v41, %v2276_v48  ;;  %v10410_v10 = vpack.c.bf16 %v12886_v57, %v12884_v16  ;;  %v14224_v41 = vand.u32 4294901760, %v12632_v26  ;;  %v14231_v26 = vand.u32 4294901760, %v12675_v47 }
 0x224   :  { %10189 = vmatpush3.bf16.msra.mxu1 %v12639_v46  ;;  %8421 = vmatprep.mubr.f32.mxu1 %v12839_v60  ;;  %v14237_v47 = vand.u32 4294901760, %v12730_v44  ;;  %v14243_v44 = vand.u32 4294901760, %v12780_v18  ;;  %v119_v18 = vld [vmem:[#allocation10 + $0x48] sm:$0xff] }
 0x225   :  { %10191 = vmatprep.subr.bf16.mxu1 %v12662_v21  ;;  %v10414_v54 = vpack.c.bf16 %v12892_v8, %v12888_v14  ;;  %10411 = vmatprep.subr.bf16.mxu0 %v10410_v10  ;;  %v12941_v45 = vpack.c.bf16 %v14224_v41, %v14223_v20  ;;  %v121_v20 = vld [vmem:[#allocation10 + $0x68] sm:$0xff]  ;;  %v122_v41 = vld [vmem:[#allocation10 + $0x78] sm:$0xff] }
 0x226   :  { %10413 = vmatpush3.bf16.msra.mxu0 %v10410_v10  ;;  %v14221_v10 = vand.u32 4294901760, %v12613_v35  ;;  %v14228_v35 = vand.u32 4294901760, %v12655_v51  ;;  %v14234_v51 = vand.u32 4294901760, %v12700_v38  ;;  %v12976_v62 = vpack.c.bf16 %v14237_v47, %v14236_v0 }
 0x227   :  { %10415 = vmatprep.subr.bf16.mxu0 %v10414_v54  ;;  %14225 = vst [vmem:[#allocation26_spill] sm:$0xff] %v12941_v45  ;;  %v14240_v38 = vand.u32 4294901760, %v12756_v34  ;;  %v2282_v34 = vand.u32 4294901760, %v119_v18 }
 0x228   :  { %10193 = vmatpush3.bf16.msra.mxu1 %v12662_v21  ;;  %14238 = vst [vmem:[#allocation30_spill] sm:$0xff] %v12976_v62 }
 0x229   :  { %10195 = vmatprep.subr.bf16.mxu1 %v12707_v55 }
 0x22a   :  { %10417 = vmatpush3.bf16.msra.mxu0 %v10414_v54  ;;  %v14219_v54 = vand.u32 4294901760, %v12844_v49 }
 0x22c   :  { %10197 = vmatpush3.bf16.msra.mxu1 %v12707_v55 }
 0x22d   :  { %10199 = vmatprep.subr.bf16.mxu1 %v12712_v19 }
 0x230   :  { %10201 = vmatpush3.bf16.msra.mxu1 %v12712_v19 }
 0x231   :  { %10203 = vmatprep.subr.bf16.mxu1 %v12737_v5 }
 0x234   :  { %10205 = vmatpush3.bf16.msra.mxu1 %v12737_v5 }
 0x235   :  { %10207 = vmatprep.subr.bf16.mxu1 %v12763_v11 }
 0x238   :  { %10209 = vmatpush3.bf16.msra.mxu1 %v12763_v11 }
 0x239   :  { %10211 = vmatprep.subr.bf16.mxu1 %v12783_v56 }
 0x23c   :  { %10213 = vmatpush3.bf16.msra.mxu1 %v12783_v56 }
 0x23d   :  { %10215 = vmatprep.subr.bf16.mxu1 %v12796_v36 }
 0x240   :  { %10217 = vmatpush3.bf16.msra.mxu1 %v12796_v36 }
 0x241   :  { %10219 = vmatprep.subr.bf16.mxu1 %v12800_v59 }
 0x243   :  { %8422 = vmatmul.mubr.f32.vlgmr.msra.gmra.mrb[0].mxu1 %v12849_v6 }
 0x244   :  { %10221 = vmatpush3.bf16.msra.mxu1 %v12800_v59  ;;  %8456 = vmatprep.mubr.f32.mxu1 %v12844_v49  ;;  %v14220_v49 = vand.u32 4294901760, %v12611_v31  ;;  %v14227_v31 = vand.u32 4294901760, %v12648_v50  ;;  %v14233_v50 = vand.u32 4294901760, %v12695_v37  ;;  %v14239_v37 = vand.u32 4294901760, %v12745_v7  ;;  %v120_v7 = vld [vmem:[#allocation10 + $0x58] sm:$0xff] }
 0x245   :  { %10223 = vmatprep.subr.bf16.mxu1 %v12804_v61  ;;  %v2285_v1 = vand.u32 4294901760, %v120_v7 }
 0x246   :  { %v12933_v53 = vpack.c.bf16 %v14221_v10, %v14220_v49  ;;  %v12952_v2 = vpack.c.bf16 %v14228_v35, %v14227_v31  ;;  %v12968_v48 = vpack.c.bf16 %v14234_v51, %v14233_v50  ;;  %v12992_v49 = vpack.c.bf16 %v14243_v44, %v14242_v52  ;;  %v124_v50 = vld [vmem:[#allocation10 + $0x98] sm:$0xff]  ;;  %v125_v44 = vld [vmem:[#allocation10 + $0xa8] sm:$0xff] }
 0x247   :  { %v13022_v10 = vsub.f32 %v120_v7, %v2285_v1  ;;  %v2291_v31 = vand.u32 4294901760, %v122_v41  ;;  %v2297_v47 = vand.u32 4294901760, %v124_v50 }
 0x248   :  { %10225 = vmatpush3.bf16.msra.mxu1 %v12804_v61  ;;  %14222 = vst [vmem:[#allocation25_spill] sm:$0xff] %v12933_v53  ;;  %14229 = vst [vmem:[#allocation27_spill] sm:$0xff] %v12952_v2 }
 0x249   :  { %10227 = vmatprep.subr.bf16.mxu1 %v12809_v15  ;;  %14235 = vst [vmem:[#allocation29_spill] sm:$0xff] %v12968_v48  ;;  %14244 = vst [vmem:[#allocation32_spill] sm:$0xff] %v12992_v49  ;;  %v13036_v52 = vsub.f32 %v124_v50, %v2297_v47  ;;  %v128_v50 = vld [vmem:[#allocation10 + $0xd8] sm:$0xff] }
 0x24a   :  { %v2309_v27 = vand.u32 4294901760, %v128_v50 }
 0x24c   :  { %10229 = vmatpush3.bf16.msra.mxu1 %v12809_v15 }
 0x24d   :  { %10231 = vmatprep.subr.bf16.mxu1 %v12813_v22 }
 0x250   :  { %10233 = vmatpush3.bf16.msra.mxu1 %v12813_v22 }
 0x251   :  { %10235 = vmatprep.subr.bf16.mxu1 %v12817_v12 }
 0x254   :  { %10237 = vmatpush3.bf16.msra.mxu1 %v12817_v12 }
 0x255   :  { %10239 = vmatprep.subr.bf16.mxu1 %v12821_v43 }
 0x258   :  { %10241 = vmatpush3.bf16.msra.mxu1 %v12821_v43 }
 0x259   :  { %10243 = vmatprep.subr.bf16.mxu1 %v12825_v28 }
 0x25c   :  { %10245 = vmatpush3.bf16.msra.mxu1 %v12825_v28 }
 0x25d   :  { %10247 = vmatprep.subr.bf16.mxu1 %v12829_v23 }
 0x260   :  { %10249 = vmatpush3.bf16.msra.mxu1 %v12829_v23 }
 0x261   :  { %10251 = vmatprep.subr.bf16.mxu1 %v12524_v63 }
 0x263   :  { %8457 = vmatmul.mubr.f32.vlgmr.msra.gmra.mrb[0].mxu1 %v12855_v40  ;;  %v12960_v40 = vpack.c.bf16 %v14231_v26, %v14230_v24  ;;  %v13028_v24 = vsub.f32 %v122_v41, %v2291_v31  ;;  %v123_v26 = vld [vmem:[#allocation10 + $0x88] sm:$0xff] }
 0x264   :  { %10253 = vmatpush3.bf16.msra.mxu1 %v12524_v63  ;;  %8491 = vmatprep.mubr.f32.mxu1 %v14219_v54  ;;  %v12984_v54 = vpack.c.bf16 %v14240_v38, %v14239_v37  ;;  %v2294_v0 = vand.u32 4294901760, %v123_v26  ;;  %v13032_v37 = vpack.c.bf16 %v2285_v1, %v2282_v34 }
 0x265   :  { %10255 = vmatprep.subr.bf16.mxu1 %v12528_v32  ;;  %14232 = vst [vmem:[#allocation28_spill] sm:$0xff] %v12960_v40 }
 0x266   :  { %14241 = vst [vmem:[#allocation31_spill] sm:$0xff] %v12984_v54  ;;  %v13034_v38 = vsub.f32 %v123_v26, %v2294_v0  ;;  %v127_v26 = vld [vmem:[#allocation10 + $0xc8] sm:$0xff] }
 0x267   :  { %v2306_v17 = vand.u32 4294901760, %v127_v26 }
 0x268   :  { %10257 = vmatpush3.bf16.msra.mxu1 %v12528_v32  ;;  %v10426_v7 = vpack.c.bf16 %v13036_v52, %v13034_v38  ;;  %v2429_v23 = vand.u32 4294901760, %v13034_v38 }
 0x269   :  { %10259 = vmatprep.subr.bf16.mxu1 %v12546_v58 }
 0x26c   :  { %10261 = vmatpush3.bf16.msra.mxu1 %v12546_v58 }
 0x26d   :  { %10263 = vmatprep.subr.bf16.mxu1 %v12563_v3 }
 0x270   :  { %10265 = vmatpush3.bf16.msra.mxu1 %v12563_v3 }
 0x271   :  { %10267 = vmatprep.subr.bf16.mxu1 %v12571_v4 }
 0x274   :  { %10269 = vmatpush3.bf16.msra.mxu1 %v12571_v4 }
 0x275   :  { %10271 = vmatprep.subr.bf16.mxu1 %v12585_v9 }
 0x278   :  { %10273 = vmatpush3.bf16.msra.mxu1 %v12585_v9 }
 0x279   :  { %10275 = vmatprep.subr.bf16.mxu1 %v12599_v42 }
 0x27c   :  { %10277 = vmatpush3.bf16.msra.mxu1 %v12599_v42 }
 0x27d   :  { %10279 = vmatprep.subr.bf16.mxu1 %v12609_v29 }
 0x280   :  { %10281 = vmatpush3.bf16.msra.mxu1 %v12609_v29 }
 0x281   :  { %10283 = vmatprep.subr.bf16.mxu1 %v12933_v53 }
 0x283   :  { %8492 = vmatmul.mubr.f32.vlgmr.msra.gmra.mrb[0].mxu1 %v14226_v39 }
 0x284   :  { %10285 = vmatpush3.bf16.msra.mxu1 %v12933_v53  ;;  %8526 = vmatprep.mubr.f32.mxu1 %v12839_v60 }
 0x285   :  { %10287 = vmatprep.subr.bf16.mxu1 %v12941_v45 }
 0x288   :  { %10289 = vmatpush3.bf16.msra.mxu1 %v12941_v45  ;;  %v2422_v45 = vand.u32 4294901760, %v13028_v24 }
 0x289   :  { %10291 = vmatprep.subr.bf16.mxu1 %v12952_v2 }
 0x28c   :  { %10293 = vmatpush3.bf16.msra.mxu1 %v12952_v2 }
 0x28d   :  { %10295 = vmatprep.subr.bf16.mxu1 %v12960_v40 }
 0x290   :  { %10297 = vmatpush3.bf16.msra.mxu1 %v12960_v40 }
 0x291   :  { %10299 = vmatprep.subr.bf16.mxu1 %v12968_v48 }
 0x294   :  { %10301 = vmatpush3.bf16.msra.mxu1 %v12968_v48 }
 0x295   :  { %10303 = vmatprep.subr.bf16.mxu1 %v12976_v62 }
 0x298   :  { %10305 = vmatpush3.bf16.msra.mxu1 %v12976_v62 }
 0x299   :  { %10307 = vmatprep.subr.bf16.mxu1 %v12984_v54 }
 0x29c   :  { %10309 = vmatpush3.bf16.msra.mxu1 %v12984_v54 }
 0x29d   :  { %10311 = vmatprep.subr.bf16.mxu1 %v12992_v49 }
 0x2a0   :  { %10313 = vmatpush3.bf16.msra.mxu1 %v12992_v49  ;;  %v13052_v49 = vpack.c.bf16 %v2297_v47, %v2294_v0 }
 0x2a1   :  { %10315 = vmatprep.subr.bf16.mxu1 %v12524_v63 }
 0x2a3   :  { %8527 = vmatmul.mubr.f32.vlgmr.msra.gmra.mrb[0].mxu1 %v12849_v6 }
 0x2a4   :  { %10317 = vmatpush3.bf16.msra.mxu1 %v12524_v63  ;;  %8561 = vmatprep.mubr.f32.mxu1 %v12839_v60  ;;  %v13020_v60 = vsub.f32 %v119_v18, %v2282_v34  ;;  %v126_v18 = vld [vmem:[#allocation10 + $0xb8] sm:$0xff] }
 0x2a5   :  { %10319 = vmatprep.subr.bf16.mxu1 %v12528_v32  ;;  %v2303_v41 = vand.u32 4294901760, %v126_v18 }
 0x2a6   :  { %v10418_v39 = vpack.c.bf16 %v13022_v10, %v13020_v60 }
 0x2a7   :  { %v13046_v1 = vsub.f32 %v126_v18, %v2303_v41  ;;  %v130_v18 = vld [vmem:[#allocation10 + $0xf8] sm:$0xff] }
 0x2a8   :  { %10321 = vmatpush3.bf16.msra.mxu1 %v12528_v32  ;;  %10419 = vmatprep.subr.bf16.mxu0 %v10418_v39  ;;  %v2315_v62 = vand.u32 4294901760, %v130_v18 }
 0x2a9   :  { %10323 = vmatprep.subr.bf16.mxu1 %v12546_v58  ;;  %10421 = vmatpush3.bf16.msra.mxu0 %v10418_v39 }
 0x2aa   :  { %v13066_v47 = vsub.f32 %v130_v18, %v2315_v62  ;;  %v2401_v18 = vand.u32 4294901760, %v13020_v60 }
 0x2ac   :  { %10325 = vmatpush3.bf16.msra.mxu1 %v12546_v58 }
 0x2ad   :  { %10327 = vmatprep.subr.bf16.mxu1 %v12563_v3 }
 0x2b0   :  { %10329 = vmatpush3.bf16.msra.mxu1 %v12563_v3 }
 0x2b1   :  { %10331 = vmatprep.subr.bf16.mxu1 %v12571_v4 }
 0x2b4   :  { %10333 = vmatpush3.bf16.msra.mxu1 %v12571_v4 }
 0x2b5   :  { %10335 = vmatprep.subr.bf16.mxu1 %v12585_v9 }
 0x2b8   :  { %10337 = vmatpush3.bf16.msra.mxu1 %v12585_v9 }
 0x2b9   :  { %10339 = vmatprep.subr.bf16.mxu1 %v12599_v42 }
 0x2bc   :  { %10341 = vmatpush3.bf16.msra.mxu1 %v12599_v42 }
 0x2bd   :  { %10343 = vmatprep.subr.bf16.mxu1 %v12609_v29 }
 0x2c0   :  { %10345 = vmatpush3.bf16.msra.mxu1 %v12609_v29 }
 0x2c1   :  { %10347 = vmatprep.subr.bf16.mxu1 %v12882_v25 }
 0x2c3   :  { %8562 = vmatmul.mubr.f32.vlgmr.msra.gmra.mrb[0].mxu1 %v12849_v6  ;;  %v2288_v6 = vand.u32 4294901760, %v121_v20 }
 0x2c4   :  { %10349 = vmatpush3.bf16.msra.mxu1 %v12882_v25 }
 0x2c5   :  { %10351 = vmatprep.subr.bf16.mxu1 %v12890_v13  ;;  %v13026_v35 = vsub.f32 %v121_v20, %v2288_v6  ;;  %v2300_v20 = vand.u32 4294901760, %v125_v44  ;;  %v13042_v39 = vpack.c.bf16 %v2291_v31, %v2288_v6  ;;  %v13054_v6 = vsub.f32 %v127_v26, %v2306_v17 }
 0x2c6   :  { %v13056_v31 = vsub.f32 %v128_v50, %v2309_v27  ;;  %v13068_v26 = vpack.c.bf16 %v2309_v27, %v2306_v17  ;;  %v2373_v17 = vand.u32 4294901760, %v12884_v16  ;;  %v2380_v27 = vand.u32 4294901760, %v12886_v57 }
 0x2c7   :  { %v10422_v51 = vpack.c.bf16 %v13028_v24, %v13026_v35  ;;  %v13044_v34 = vsub.f32 %v125_v44, %v2300_v20  ;;  %v129_v44 = vld [vmem:[#allocation10 + $0xe8] sm:$0xff]  ;;  %v13062_v48 = vpack.c.bf16 %v2303_v41, %v2300_v20 }
 0x2c8   :  { %10353 = vmatpush3.bf16.msra.mxu1 %v12890_v13  ;;  %v2312_v54 = vand.u32 4294901760, %v129_v44  ;;  %v2374_v20 = vsub.f32 %v12884_v16, %v2373_v17  ;;  %v2381_v41 = vsub.f32 %v12886_v57, %v2380_v27  ;;  %v2415_v57 = vand.u32 4294901760, %v13026_v35 }
 0x2c9   :  { %10423 = vmatprep.subr.bf16.mxu0 %v10422_v51  ;;  %10355 = vmatprep.subr.bf16.mxu1 %v13032_v37 }
 0x2ca   :  { %10425 = vmatpush3.bf16.msra.mxu0 %v10422_v51  ;;  %v10430_v51 = vpack.c.bf16 %v13046_v1, %v13044_v34  ;;  %v13064_v0 = vsub.f32 %v129_v44, %v2312_v54 }
 0x2cb   :  { %10427 = vmatprep.subr.bf16.mxu0 %v10426_v7 }
 0x2cc   :  { %10357 = vmatpush3.bf16.msra.mxu1 %v13032_v37  ;;  %v10438_v50 = vpack.c.bf16 %v13066_v47, %v13064_v0 }
 0x2cd   :  { %10359 = vmatprep.subr.bf16.mxu1 %v13042_v39 }
 0x2ce   :  { %10429 = vmatpush3.bf16.msra.mxu0 %v10426_v7  ;;  %v10434_v7 = vpack.c.bf16 %v13056_v31, %v13054_v6 }
 0x2cf   :  { %10431 = vmatprep.subr.bf16.mxu0 %v10430_v51 }
 0x2d0   :  { %10361 = vmatpush3.bf16.msra.mxu1 %v13042_v39 }
 0x2d1   :  { %10363 = vmatprep.subr.bf16.mxu1 %v13052_v49 }
 0x2d2   :  { %10433 = vmatpush3.bf16.msra.mxu0 %v10430_v51  ;;  %v13074_v51 = vpack.c.bf16 %v2315_v62, %v2312_v54  ;;  %v2375_v62 = vand.u32 4294901760, %v2374_v20  ;;  %v2382_v54 = vand.u32 4294901760, %v2381_v41  ;;  %v2416_v41 = vsub.f32 %v13026_v35, %v2415_v57 }
 0x2d3   :  { %10435 = vmatprep.subr.bf16.mxu0 %v10434_v7  ;;  %v2450_v35 = vand.u32 4294901760, %v13046_v1 }
 0x2d4   :  { %10365 = vmatpush3.bf16.msra.mxu1 %v13052_v49  ;;  %v13085_v44 = vpack.c.bf16 %v2382_v54, %v2375_v62  ;;  %v2423_v62 = vsub.f32 %v13028_v24, %v2422_v45  ;;  %v2417_v54 = vand.u32 4294901760, %v2416_v41 }
 0x2d5   :  { %10367 = vmatprep.subr.bf16.mxu1 %v13062_v48  ;;  %v2451_v41 = vsub.f32 %v13046_v1, %v2450_v35 }
 0x2d6   :  { %10437 = vmatpush3.bf16.msra.mxu0 %v10434_v7  ;;  %v2408_v7 = vand.u32 4294901760, %v13022_v10  ;;  %v2424_v53 = vand.u32 4294901760, %v2423_v62 }
 0x2d7   :  { %10439 = vmatprep.subr.bf16.mxu0 %v10438_v50  ;;  %v2452_v12 = vand.u32 4294901760, %v2451_v41  ;;  %v13122_v41 = vpack.c.bf16 %v2380_v27, %v2373_v17 }
 0x2d8   :  { %10369 = vmatpush3.bf16.msra.mxu1 %v13062_v48  ;;  %v2409_v40 = vsub.f32 %v13022_v10, %v2408_v7  ;;  %v13100_v28 = vpack.c.bf16 %v2424_v53, %v2417_v54  ;;  %v2457_v53 = vand.u32 4294901760, %v13054_v6 }
 0x2d9   :  { %10371 = vmatprep.subr.bf16.mxu1 %v13068_v26 }
 0x2da   :  { %10441 = vmatpush3.bf16.msra.mxu0 %v10438_v50  ;;  %v2402_v50 = vsub.f32 %v13020_v60, %v2401_v18  ;;  %v2410_v16 = vand.u32 4294901760, %v2409_v40  ;;  %v2436_v60 = vand.u32 4294901760, %v13036_v52  ;;  %v2430_v40 = vsub.f32 %v13034_v38, %v2429_v23 }
 0x2db   :  { %10443 = vmatprep.subr.bf16.mxu0 %v12882_v25  ;;  %v2464_v38 = vand.u32 4294901760, %v13056_v31 }
 0x2dc   :  { %10373 = vmatpush3.bf16.msra.mxu1 %v13068_v26  ;;  %v2403_v2 = vand.u32 4294901760, %v2402_v50  ;;  %v2437_v10 = vsub.f32 %v13036_v52, %v2436_v60  ;;  %v2431_v50 = vand.u32 4294901760, %v2430_v40  ;;  %v2458_v52 = vsub.f32 %v13054_v6, %v2457_v53 }
 0x2dd   :  { %10375 = vmatprep.subr.bf16.mxu1 %v13074_v51  ;;  %v2465_v40 = vsub.f32 %v13056_v31, %v2464_v38  ;;  %v13126_v6 = vpack.c.bf16 %v2408_v7, %v2401_v18  ;;  %v13128_v31 = vpack.c.bf16 %v2422_v45, %v2415_v57 }
 0x2de   :  { %v13094_v20 = vpack.c.bf16 %v2410_v16, %v2403_v2  ;;  %v2438_v43 = vand.u32 4294901760, %v2437_v10  ;;  %v2443_v2 = vand.u32 4294901760, %v13044_v34  ;;  %v2459_v10 = vand.u32 4294901760, %v2458_v52 }
 0x2df   :  { %v2466_v22 = vand.u32 4294901760, %v2465_v40  ;;  %v13130_v52 = vpack.c.bf16 %v2436_v60, %v2429_v23 }
 0x2e0   :  { %10377 = vmatpush3.bf16.msra.mxu1 %v13074_v51  ;;  %v13106_v16 = vpack.c.bf16 %v2438_v43, %v2431_v50  ;;  %v2444_v24 = vsub.f32 %v13044_v34, %v2443_v2  ;;  %v2471_v43 = vand.u32 4294901760, %v13064_v0  ;;  %v2478_v34 = vand.u32 4294901760, %v13066_v47 }
 0x2e1   :  { %10379 = vmatprep.subr.bf16.mxu1 %v13085_v44  ;;  %v13118_v50 = vpack.c.bf16 %v2466_v22, %v2459_v10  ;;  %v13132_v40 = vpack.c.bf16 %v2450_v35, %v2443_v2  ;;  %v13134_v22 = vpack.c.bf16 %v2464_v38, %v2457_v53 }
 0x2e2   :  { %v2445_v62 = vand.u32 4294901760, %v2444_v24  ;;  %v2472_v1 = vsub.f32 %v13064_v0, %v2471_v43  ;;  %v2479_v24 = vsub.f32 %v13066_v47, %v2478_v34  ;;  %v13136_v10 = vpack.c.bf16 %v2478_v34, %v2471_v43 }
 0x2e3   :  { %v2387_v43 = vand.u32 4294901760, %v12888_v14  ;;  %v2394_v34 = vand.u32 4294901760, %v12892_v8 }
 0x2e4   :  { %v13112_v54 = vpack.c.bf16 %v2452_v12, %v2445_v62  ;;  %v2473_v12 = vand.u32 4294901760, %v2472_v1  ;;  %v2480_v62 = vand.u32 4294901760, %v2479_v24 }
 0x2e6   :  { %v13124_v15 = vpack.c.bf16 %v2480_v62, %v2473_v12 }
 0x396   :  { %v8563_v0 = vpop.f32.mrb[0].mxu1 }
 0x397   :  { %11852 = vrsqrt.f32 %v8563_v0  ;;  %v2241_v47 = vpop.f32.mrb[1].mxu1  ;;  %vm2260_vm8 = vcmp.eq.f32.partialorder %v8563_v0, inf  ;;  %v2263_v18 = vand.u32 2147483648, %v8563_v0  ;;  %vm2262_vm9 = vcmp.eq.f32.partialorder %v8563_v0, 0.0 }
 0x398   :  { %11854 = vrsqrt.f32 %v2241_v47  ;;  %vm2253_vm10 = vcmp.eq.f32.partialorder %v2241_v47, inf  ;;  %v2256_v23 = vand.u32 2147483648, %v2241_v47  ;;  %vm2255_vm11 = vcmp.eq.f32.partialorder %v2241_v47, 0.0 }
 0x3a1   :  { %v11853_v17 = vpop.eup %11852 }
 0x3a2   :  { %v11855_v27 = vpop.eup %11854  ;;  %v2259_v1 = vmul.f32 %v11853_v17, %v8563_v0 }
 0x3a3   :  { %v2252_v7 = vmul.f32 %v11855_v27, %v2241_v47 }
 0x3a4   :  { %v2261_v45 = vsel %vm2260_vm8, %v8563_v0, %v2259_v1 }
 0x3a5   :  { %v2264_v57 = vsel %vm2262_vm9, %v2263_v18, %v2261_v45  ;;  %v2254_v60 = vsel %vm2253_vm10, %v2241_v47, %v2252_v7  ;;  %v2388_v47 = vsub.f32 %v12888_v14, %v2387_v43 }
 0x3a6   :  { %v2266_v2 = vadd.f32 1.0, %v2264_v57  ;;  %v2257_v35 = vsel %vm2255_vm11, %v2256_v23, %v2254_v60 }
 0x3a7   :  { %v2265_v53 = vadd.f32 1.0, %v2257_v35  ;;  %v2389_v18 = vand.u32 4294901760, %v2388_v47  ;;  %v14257_v35 = vld [vmem:[#allocation31_spill] sm:$0xff] }
 0x3a8   :  { %v13139_v38 = vmul.f32 %v2266_v2, %v12841_v33  ;;  %v2395_v33 = vsub.f32 %v12892_v8, %v2394_v34  ;;  %v14256_v2 = vld [vmem:[#allocation30_spill] sm:$0xff] }
 0x3a9   :  { %v13144_v24 = vmul.f32 %v2265_v53, %v12835_v30  ;;  %v14258_v53 = vld [vmem:[#allocation32_spill] sm:$0xff] }
 0x3aa   :  { %v13147_v12 = vand.u32 4294901760, %v13139_v38  ;;  %v2396_v7 = vand.u32 4294901760, %v2395_v33 }
 0x3ab   :  { %v13150_v62 = vand.u32 4294901760, %v13144_v24  ;;  %v2953_v8 = vmul.f32 %v13144_v24, %v13144_v24 }
 0x3ac   :  { %v2361_v0 = vsub.f32 %v13139_v38, %v13147_v12  ;;  %v10382_v57 = vpack.c.bf16 %v2396_v7, %v2389_v18 }
 0x3ad   :  { %v2351_v17 = vsub.f32 %v13144_v24, %v13150_v62 }
 0x3ae   :  { %v2362_v27 = vand.u32 4294901760, %v2361_v0 }
 0x3af   :  { %8666 = vmatprep.mubr.f32.mxu0 %v2351_v17  ;;  %v2352_v30 = vand.u32 4294901760, %v2351_v17 }
 0x3b0   :  { %8667 = vmatmul.mubr.f32.vlgmr.msra.gmra.mrb[4].mxu0 %v2361_v0  ;;  %v2363_v1 = vsub.f32 %v2361_v0, %v2362_v27 }
 0x3b1   :  { %10445 = vmatpush3.bf16.msra.mxu0 %v12882_v25  ;;  %8701 = vmatprep.mubr.f32.mxu0 %v2352_v30  ;;  %v2353_v45 = vsub.f32 %v2351_v17, %v2352_v30 }
 0x3b2   :  { %10447 = vmatprep.subr.bf16.mxu0 %v12890_v13  ;;  %v2364_v14 = vand.u32 4294901760, %v2363_v1 }
 0x3b3   :  { %v2354_v23 = vand.u32 4294901760, %v2353_v45 }
 0x3b5   :  { %10449 = vmatpush3.bf16.msra.mxu0 %v12890_v13  ;;  %8596 = vmatprep.mubr.f32.mxu1 %v2354_v23 }
 0x3b6   :  { %8597 = vmatmul.mubr.f32.vlgmr.msra.gmra.mrb[2].mxu1 %v2364_v14  ;;  %10451 = vmatprep.subr.bf16.mxu0 %v13032_v37 }
 0x3b7   :  { %10381 = vmatpush3.bf16.msra.mxu1 %v13085_v44  ;;  %8631 = vmatprep.mubr.f32.mxu1 %v13150_v62  ;;  %v13178_v44 = vand.u32 4294901760, %v2953_v8 }
 0x3b8   :  { %10383 = vmatprep.subr.bf16.mxu1 %v10382_v57 }
 0x3b9   :  { %10453 = vmatpush3.bf16.msra.mxu0 %v13032_v37 }
 0x3ba   :  { %10455 = vmatprep.subr.bf16.mxu0 %v13042_v39 }
 0x3bb   :  { %10385 = vmatpush3.bf16.msra.mxu1 %v10382_v57 }
 0x3bc   :  { %10387 = vmatprep.subr.bf16.mxu1 %v13094_v20 }
 0x3bd   :  { %10457 = vmatpush3.bf16.msra.mxu0 %v13042_v39 }
 0x3be   :  { %10459 = vmatprep.subr.bf16.mxu0 %v13052_v49 }
 0x3bf   :  { %10389 = vmatpush3.bf16.msra.mxu1 %v13094_v20  ;;  %v13185_v20 = vsub.f32 %v2953_v8, %v13178_v44 }
 0x3c0   :  { %10391 = vmatprep.subr.bf16.mxu1 %v13100_v28 }
 0x3c1   :  { %10461 = vmatpush3.bf16.msra.mxu0 %v13052_v49 }
 0x3c2   :  { %10463 = vmatprep.subr.bf16.mxu0 %v13062_v48 }
 0x3c3   :  { %10393 = vmatpush3.bf16.msra.mxu1 %v13100_v28  ;;  %v3038_v28 = vand.u32 4294901760, %v13185_v20 }
 0x3c4   :  { %10395 = vmatprep.subr.bf16.mxu1 %v13106_v16 }
 0x3c5   :  { %10465 = vmatpush3.bf16.msra.mxu0 %v13062_v48 }
 0x3c6   :  { %10467 = vmatprep.subr.bf16.mxu0 %v13068_v26 }
 0x3c7   :  { %10397 = vmatpush3.bf16.msra.mxu1 %v13106_v16  ;;  %v10478_v16 = vpack.c.bf16 %v2394_v34, %v2387_v43 }
 0x3c8   :  { %10399 = vmatprep.subr.bf16.mxu1 %v13112_v54 }
 0x3c9   :  { %10469 = vmatpush3.bf16.msra.mxu0 %v13068_v26 }
 0x3ca   :  { %10471 = vmatprep.subr.bf16.mxu0 %v13074_v51 }
 0x3cb   :  { %10401 = vmatpush3.bf16.msra.mxu1 %v13112_v54  ;;  %v3039_v54 = vsub.f32 %v13185_v20, %v3038_v28 }
 0x3cc   :  { %10403 = vmatprep.subr.bf16.mxu1 %v13118_v50 }
 0x3cd   :  { %10473 = vmatpush3.bf16.msra.mxu0 %v13074_v51  ;;  %v3040_v60 = vand.u32 4294901760, %v3039_v54 }
 0x3ce   :  { %10475 = vmatprep.subr.bf16.mxu0 %v13122_v41 }
 0x3cf   :  { %10405 = vmatpush3.bf16.msra.mxu1 %v13118_v50 }
 0x3d0   :  { %8702 = vmatmul.mubr.f32.vlgmr.msra.gmra.mrb[4].mxu0 %v2362_v27  ;;  %10407 = vmatprep.subr.bf16.mxu1 %v13124_v15 }
 0x3d1   :  { %10477 = vmatpush3.bf16.msra.mxu0 %v13122_v41  ;;  %8736 = vmatprep.mubr.f32.mxu0 %v13150_v62 }
 0x3d2   :  { %10479 = vmatprep.subr.bf16.mxu0 %v10478_v16 }
 0x3d3   :  { %10409 = vmatpush3.bf16.msra.mxu1 %v13124_v15  ;;  %v2954_v15 = vmul.f32 %v13139_v38, %v13139_v38 }
 0x3d4   :  { %10539 = vmatprep.subr.bf16.mxu1 %v12524_v63 }
 0x3d5   :  { %10481 = vmatpush3.bf16.msra.mxu0 %v10478_v16  ;;  %v13220_v50 = vand.u32 4294901760, %v2954_v15 }
 0x3d6   :  { %8632 = vmatmul.mubr.f32.vlgmr.msra.gmra.mrb[2].mxu1 %v13147_v12  ;;  %10483 = vmatprep.subr.bf16.mxu0 %v13126_v6 }
 0x3d7   :  { %10541 = vmatpush3.bf16.msra.mxu1 %v12524_v63  ;;  %8806 = vmatprep.mubr.f32.mxu1 %v3040_v60  ;;  %v13227_v41 = vsub.f32 %v2954_v15, %v13220_v50 }
 0x3d8   :  { %10543 = vmatprep.subr.bf16.mxu1 %v12528_v32 }
 0x3d9   :  { %10485 = vmatpush3.bf16.msra.mxu0 %v13126_v6  ;;  %v3048_v6 = vand.u32 4294901760, %v13227_v41 }
 0x3da   :  { %10487 = vmatprep.subr.bf16.mxu0 %v13128_v31 }
 0x3db   :  { %10545 = vmatpush3.bf16.msra.mxu1 %v12528_v32 }
 0x3dc   :  { %10547 = vmatprep.subr.bf16.mxu1 %v12546_v58 }
 0x3dd   :  { %10489 = vmatpush3.bf16.msra.mxu0 %v13128_v31  ;;  %v3049_v31 = vsub.f32 %v13227_v41, %v3048_v6 }
 0x3de   :  { %10491 = vmatprep.subr.bf16.mxu0 %v13130_v52 }
 0x3df   :  { %10549 = vmatpush3.bf16.msra.mxu1 %v12546_v58 }
 0x3e0   :  { %10551 = vmatprep.subr.bf16.mxu1 %v12563_v3 }
 0x3e1   :  { %10493 = vmatpush3.bf16.msra.mxu0 %v13130_v52  ;;  %v3050_v52 = vand.u32 4294901760, %v3049_v31 }
 0x3e2   :  { %10495 = vmatprep.subr.bf16.mxu0 %v13132_v40 }
 0x3e3   :  { %10553 = vmatpush3.bf16.msra.mxu1 %v12563_v3 }
 0x3e4   :  { %10555 = vmatprep.subr.bf16.mxu1 %v12571_v4 }
 0x3e5   :  { %10497 = vmatpush3.bf16.msra.mxu0 %v13132_v40  ;;  %v14253_v40 = vld [vmem:[#allocation27_spill] sm:$0xff] }
 0x3e6   :  { %10499 = vmatprep.subr.bf16.mxu0 %v13134_v22 }
 0x3e7   :  { %10557 = vmatpush3.bf16.msra.mxu1 %v12571_v4 }
 0x3e8   :  { %10559 = vmatprep.subr.bf16.mxu1 %v12585_v9 }
 0x3e9   :  { %10501 = vmatpush3.bf16.msra.mxu0 %v13134_v22  ;;  %v14254_v22 = vld [vmem:[#allocation28_spill] sm:$0xff] }
 0x3ea   :  { %10503 = vmatprep.subr.bf16.mxu0 %v13136_v10 }
 0x3eb   :  { %10561 = vmatpush3.bf16.msra.mxu1 %v12585_v9 }
 0x3ec   :  { %10563 = vmatprep.subr.bf16.mxu1 %v12599_v42 }
 0x3ed   :  { %10505 = vmatpush3.bf16.msra.mxu0 %v13136_v10  ;;  %v14255_v10 = vld [vmem:[#allocation29_spill] sm:$0xff] }
 0x3ee   :  { %10507 = vmatprep.subr.bf16.mxu0 %v12882_v25 }
 0x3ef   :  { %10565 = vmatpush3.bf16.msra.mxu1 %v12599_v42 }
 0x3f0   :  { %8737 = vmatmul.mubr.f32.vlgmr.msra.gmra.mrb[4].mxu0 %v13147_v12  ;;  %10567 = vmatprep.subr.bf16.mxu1 %v12609_v29 }
 0x3f1   :  { %10509 = vmatpush3.bf16.msra.mxu0 %v12882_v25  ;;  %8771 = vmatprep.mubr.f32.mxu0 %v13150_v62  ;;  %v14246_v25 = vld [vmem:[#allocation20_spill] sm:$0xff] }
 0x3f2   :  { %10511 = vmatprep.subr.bf16.mxu0 %v12890_v13 }
 0x3f3   :  { %10569 = vmatpush3.bf16.msra.mxu1 %v12609_v29 }
 0x3f4   :  { %10571 = vmatprep.subr.bf16.mxu1 %v12639_v46 }
 0x3f5   :  { %10513 = vmatpush3.bf16.msra.mxu0 %v12890_v13  ;;  %v14245_v13 = vld [vmem:[#allocation19_spill] sm:$0xff] }
 0x3f6   :  { %8807 = vmatmul.mubr.f32.vlgmr.msra.gmra.mrb[4].mxu1 %v3050_v52  ;;  %10515 = vmatprep.subr.bf16.mxu0 %v13032_v37 }
 0x3f7   :  { %10573 = vmatpush3.bf16.msra.mxu1 %v12639_v46  ;;  %8841 = vmatprep.mubr.f32.mxu1 %v13178_v44 }
 0x3f8   :  { %10575 = vmatprep.subr.bf16.mxu1 %v12662_v21 }
 0x3f9   :  { %10517 = vmatpush3.bf16.msra.mxu0 %v13032_v37  ;;  %v14249_v37 = vld [vmem:[#allocation23_spill] sm:$0xff] }
 0x3fa   :  { %10519 = vmatprep.subr.bf16.mxu0 %v13042_v39 }
 0x3fb   :  { %10577 = vmatpush3.bf16.msra.mxu1 %v12662_v21 }
 0x3fc   :  { %10579 = vmatprep.subr.bf16.mxu1 %v12707_v55 }
 0x3fd   :  { %10521 = vmatpush3.bf16.msra.mxu0 %v13042_v39  ;;  %v14250_v39 = vld [vmem:[#allocation24_spill] sm:$0xff] }
 0x3fe   :  { %10523 = vmatprep.subr.bf16.mxu0 %v13052_v49 }
 0x3ff   :  { %10581 = vmatpush3.bf16.msra.mxu1 %v12707_v55 }
 0x400   :  { %10583 = vmatprep.subr.bf16.mxu1 %v12712_v19 }
 0x401   :  { %10525 = vmatpush3.bf16.msra.mxu0 %v13052_v49  ;;  %v14248_v49 = vld [vmem:[#allocation22_spill] sm:$0xff] }
 0x402   :  { %10527 = vmatprep.subr.bf16.mxu0 %v13062_v48 }
 0x403   :  { %10585 = vmatpush3.bf16.msra.mxu1 %v12712_v19 }
 0x404   :  { %10587 = vmatprep.subr.bf16.mxu1 %v12737_v5 }
 0x405   :  { %10529 = vmatpush3.bf16.msra.mxu0 %v13062_v48  ;;  %v14247_v48 = vld [vmem:[#allocation21_spill] sm:$0xff] }
 0x406   :  { %10531 = vmatprep.subr.bf16.mxu0 %v13068_v26 }
 0x407   :  { %10589 = vmatpush3.bf16.msra.mxu1 %v12737_v5 }
 0x408   :  { %10591 = vmatprep.subr.bf16.mxu1 %v12763_v11 }
 0x409   :  { %10533 = vmatpush3.bf16.msra.mxu0 %v13068_v26  ;;  %v14251_v26 = vld [vmem:[#allocation25_spill] sm:$0xff] }
 0x40a   :  { %10535 = vmatprep.subr.bf16.mxu0 %v13074_v51 }
 0x40b   :  { %10593 = vmatpush3.bf16.msra.mxu1 %v12763_v11 }
 0x40c   :  { %10595 = vmatprep.subr.bf16.mxu1 %v12783_v56 }
 0x40d   :  { %10537 = vmatpush3.bf16.msra.mxu0 %v13074_v51  ;;  %v14252_v51 = vld [vmem:[#allocation26_spill] sm:$0xff] }
 0x40e   :  { %10731 = vmatprep.subr.bf16.mxu0 %v12524_v63 }
 0x40f   :  { %10597 = vmatpush3.bf16.msra.mxu1 %v12783_v56 }
 0x410   :  { %8772 = vmatmul.mubr.f32.vlgmr.msra.gmra.mrb[4].mxu0 %v13147_v12  ;;  %10599 = vmatprep.subr.bf16.mxu1 %v12796_v36 }
 0x411   :  { %10733 = vmatpush3.bf16.msra.mxu0 %v12524_v63 }
 0x412   :  { %10735 = vmatprep.subr.bf16.mxu0 %v12528_v32 }
 0x413   :  { %10601 = vmatpush3.bf16.msra.mxu1 %v12796_v36 }
 0x414   :  { %10603 = vmatprep.subr.bf16.mxu1 %v12800_v59 }
 0x415   :  { %10737 = vmatpush3.bf16.msra.mxu0 %v12528_v32 }
 0x416   :  { %8842 = vmatmul.mubr.f32.vlgmr.msra.gmra.mrb[4].mxu1 %v13220_v50  ;;  %10739 = vmatprep.subr.bf16.mxu0 %v12546_v58 }
 0x417   :  { %10605 = vmatpush3.bf16.msra.mxu1 %v12800_v59  ;;  %8876 = vmatprep.mubr.f32.mxu1 %v13185_v20 }
 0x418   :  { %10607 = vmatprep.subr.bf16.mxu1 %v12804_v61 }
 0x419   :  { %10741 = vmatpush3.bf16.msra.mxu0 %v12546_v58 }
 0x41a   :  { %10743 = vmatprep.subr.bf16.mxu0 %v12563_v3 }
 0x41b   :  { %10609 = vmatpush3.bf16.msra.mxu1 %v12804_v61 }
 0x41c   :  { %10611 = vmatprep.subr.bf16.mxu1 %v14245_v13 }
 0x41d   :  { %10745 = vmatpush3.bf16.msra.mxu0 %v12563_v3 }
 0x41e   :  { %10747 = vmatprep.subr.bf16.mxu0 %v12571_v4 }
 0x41f   :  { %10613 = vmatpush3.bf16.msra.mxu1 %v14245_v13 }
 0x420   :  { %10615 = vmatprep.subr.bf16.mxu1 %v14246_v25 }
 0x421   :  { %10749 = vmatpush3.bf16.msra.mxu0 %v12571_v4 }
 0x422   :  { %10751 = vmatprep.subr.bf16.mxu0 %v12585_v9 }
 0x423   :  { %10617 = vmatpush3.bf16.msra.mxu1 %v14246_v25 }
 0x424   :  { %10619 = vmatprep.subr.bf16.mxu1 %v14247_v48 }
 0x425   :  { %10753 = vmatpush3.bf16.msra.mxu0 %v12585_v9 }
 0x426   :  { %10755 = vmatprep.subr.bf16.mxu0 %v12599_v42 }
 0x427   :  { %10621 = vmatpush3.bf16.msra.mxu1 %v14247_v48 }
 0x428   :  { %10623 = vmatprep.subr.bf16.mxu1 %v14248_v49 }
 0x429   :  { %10757 = vmatpush3.bf16.msra.mxu0 %v12599_v42 }
 0x42a   :  { %10759 = vmatprep.subr.bf16.mxu0 %v12609_v29 }
 0x42b   :  { %10625 = vmatpush3.bf16.msra.mxu1 %v14248_v49 }
 0x42c   :  { %10627 = vmatprep.subr.bf16.mxu1 %v14249_v37 }
 0x42d   :  { %10761 = vmatpush3.bf16.msra.mxu0 %v12609_v29 }
 0x42e   :  { %10763 = vmatprep.subr.bf16.mxu0 %v12639_v46 }
 0x42f   :  { %10629 = vmatpush3.bf16.msra.mxu1 %v14249_v37 }
 0x430   :  { %10631 = vmatprep.subr.bf16.mxu1 %v14250_v39 }
 0x433   :  { %10633 = vmatpush3.bf16.msra.mxu1 %v14250_v39 }
 0x434   :  { %10635 = vmatprep.subr.bf16.mxu1 %v12524_v63 }
 0x436   :  { %8877 = vmatmul.mubr.f32.vlgmr.msra.gmra.mrb[4].mxu1 %v13227_v41 }
 0x437   :  { %10637 = vmatpush3.bf16.msra.mxu1 %v12524_v63  ;;  %8911 = vmatprep.mubr.f32.mxu1 %v3038_v28 }
 0x438   :  { %10639 = vmatprep.subr.bf16.mxu1 %v12528_v32 }
 0x43b   :  { %10641 = vmatpush3.bf16.msra.mxu1 %v12528_v32 }
 0x43c   :  { %10643 = vmatprep.subr.bf16.mxu1 %v12546_v58 }
 0x43f   :  { %10645 = vmatpush3.bf16.msra.mxu1 %v12546_v58 }
 0x440   :  { %10647 = vmatprep.subr.bf16.mxu1 %v12563_v3 }
 0x443   :  { %10649 = vmatpush3.bf16.msra.mxu1 %v12563_v3 }
 0x444   :  { %10651 = vmatprep.subr.bf16.mxu1 %v12571_v4 }
 0x447   :  { %10653 = vmatpush3.bf16.msra.mxu1 %v12571_v4 }
 0x448   :  { %10655 = vmatprep.subr.bf16.mxu1 %v12585_v9 }
 0x44b   :  { %10657 = vmatpush3.bf16.msra.mxu1 %v12585_v9 }
 0x44c   :  { %10659 = vmatprep.subr.bf16.mxu1 %v12599_v42 }
 0x44f   :  { %10661 = vmatpush3.bf16.msra.mxu1 %v12599_v42 }
 0x450   :  { %10663 = vmatprep.subr.bf16.mxu1 %v12609_v29 }
 0x453   :  { %10665 = vmatpush3.bf16.msra.mxu1 %v12609_v29 }
 0x454   :  { %10667 = vmatprep.subr.bf16.mxu1 %v14251_v26 }
 0x456   :  { %8912 = vmatmul.mubr.f32.vlgmr.msra.gmra.mrb[4].mxu1 %v3048_v6 }
 0x457   :  { %10669 = vmatpush3.bf16.msra.mxu1 %v14251_v26  ;;  %8946 = vmatprep.mubr.f32.mxu1 %v13178_v44 }
 0x458   :  { %10671 = vmatprep.subr.bf16.mxu1 %v14252_v51 }
 0x45b   :  { %10673 = vmatpush3.bf16.msra.mxu1 %v14252_v51 }
 0x45c   :  { %10675 = vmatprep.subr.bf16.mxu1 %v14253_v40 }
 0x45f   :  { %10677 = vmatpush3.bf16.msra.mxu1 %v14253_v40 }
 0x460   :  { %10679 = vmatprep.subr.bf16.mxu1 %v14254_v22 }
 0x463   :  { %10681 = vmatpush3.bf16.msra.mxu1 %v14254_v22 }
 0x464   :  { %10683 = vmatprep.subr.bf16.mxu1 %v14255_v10 }
 0x467   :  { %10685 = vmatpush3.bf16.msra.mxu1 %v14255_v10 }
 0x468   :  { %10687 = vmatprep.subr.bf16.mxu1 %v14256_v2 }
 0x46b   :  { %10689 = vmatpush3.bf16.msra.mxu1 %v14256_v2 }
 0x46c   :  { %10691 = vmatprep.subr.bf16.mxu1 %v14257_v35 }
 0x46f   :  { %10693 = vmatpush3.bf16.msra.mxu1 %v14257_v35 }
 0x470   :  { %10695 = vmatprep.subr.bf16.mxu1 %v14258_v53 }
 0x473   :  { %10697 = vmatpush3.bf16.msra.mxu1 %v14258_v53 }
 0x474   :  { %10699 = vmatprep.subr.bf16.mxu1 %v12524_v63 }
 0x476   :  { %8947 = vmatmul.mubr.f32.vlgmr.msra.gmra.mrb[4].mxu1 %v13220_v50 }
 0x477   :  { %10701 = vmatpush3.bf16.msra.mxu1 %v12524_v63  ;;  %8981 = vmatprep.mubr.f32.mxu1 %v13178_v44 }
 0x478   :  { %10703 = vmatprep.subr.bf16.mxu1 %v12528_v32 }
 0x47b   :  { %10705 = vmatpush3.bf16.msra.mxu1 %v12528_v32 }
 0x47c   :  { %10707 = vmatprep.subr.bf16.mxu1 %v12546_v58 }
 0x47f   :  { %10709 = vmatpush3.bf16.msra.mxu1 %v12546_v58 }
 0x480   :  { %10711 = vmatprep.subr.bf16.mxu1 %v12563_v3 }
 0x483   :  { %10713 = vmatpush3.bf16.msra.mxu1 %v12563_v3 }
 0x484   :  { %10715 = vmatprep.subr.bf16.mxu1 %v12571_v4 }
 0x487   :  { %10717 = vmatpush3.bf16.msra.mxu1 %v12571_v4 }
 0x488   :  { %10719 = vmatprep.subr.bf16.mxu1 %v12585_v9 }
 0x48b   :  { %10721 = vmatpush3.bf16.msra.mxu1 %v12585_v9 }
 0x48c   :  { %10723 = vmatprep.subr.bf16.mxu1 %v12599_v42 }
 0x48f   :  { %10725 = vmatpush3.bf16.msra.mxu1 %v12599_v42 }
 0x490   :  { %10727 = vmatprep.subr.bf16.mxu1 %v12609_v29 }
 0x493   :  { %10729 = vmatpush3.bf16.msra.mxu1 %v12609_v29 }
 0x494   :  { %10923 = vmatprep.subr.bf16.mxu1 %v12524_v63 }
 0x496   :  { %8982 = vmatmul.mubr.f32.vlgmr.msra.gmra.mrb[4].mxu1 %v13220_v50 }
 0x497   :  { %10925 = vmatpush3.bf16.msra.mxu1 %v12524_v63 }
 0x498   :  { %10927 = vmatprep.subr.bf16.mxu1 %v12528_v32 }
 0x49b   :  { %10929 = vmatpush3.bf16.msra.mxu1 %v12528_v32 }
 0x49c   :  { %10931 = vmatprep.subr.bf16.mxu1 %v12546_v58 }
 0x49f   :  { %10933 = vmatpush3.bf16.msra.mxu1 %v12546_v58 }
 0x4a0   :  { %10935 = vmatprep.subr.bf16.mxu1 %v12563_v3 }
 0x4a3   :  { %10937 = vmatpush3.bf16.msra.mxu1 %v12563_v3 }
 0x4a4   :  { %10939 = vmatprep.subr.bf16.mxu1 %v12571_v4 }
 0x4a7   :  { %10941 = vmatpush3.bf16.msra.mxu1 %v12571_v4 }
 0x4a8   :  { %10943 = vmatprep.subr.bf16.mxu1 %v12585_v9 }
 0x4a9   :  { %v8633_v43 = vpop.f32.mrb[2].mxu1 }
 0x4aa   :  { %v2517_v34 = vpop.f32.mrb[3].mxu1 }
 0x4ab   :  { %10945 = vmatpush3.bf16.msra.mxu1 %v12585_v9 }
 0x4ac   :  { %10947 = vmatprep.subr.bf16.mxu1 %v12599_v42 }
 0x4af   :  { %10949 = vmatpush3.bf16.msra.mxu1 %v12599_v42 }
 0x4b0   :  { %10951 = vmatprep.subr.bf16.mxu1 %v12609_v29 }
 0x4b3   :  { %10953 = vmatpush3.bf16.msra.mxu1 %v12609_v29 }
 0x4b4   :  { %10955 = vmatprep.subr.bf16.mxu1 %v12639_v46 }
 0x4e3   :  { %v8773_v12 = vpop.f32.mrb[4].mxu0 }
 0x4e4   :  { %v13386_v62 = vadd.f32 %v8773_v12, %v8633_v43  ;;  %v2943_v0 = vpop.f32.mrb[5].mxu0 }
 0x4e5   :  { %v13388_v47 = vadd.f32 %v2943_v0, %v2517_v34 }
 0x4e6   :  { %v3640_v33 = vmul.f32 %v13386_v62, %v13386_v62  ;;  %v4326_v17 = vmul.f32 %v13386_v62, %v13139_v38 }
 0x4e7   :  { %v3639_v27 = vmul.f32 %v13388_v47, %v13388_v47  ;;  %v4325_v30 = vmul.f32 %v13388_v47, %v13144_v24 }
 0x4e8   :  { %v13398_v1 = vand.u32 4294901760, %v3640_v33  ;;  %v13400_v18 = vand.u32 4294901760, %v4326_v17 }
 0x4e9   :  { %v13402_v7 = vand.u32 4294901760, %v3639_v27  ;;  %v13404_v45 = vand.u32 4294901760, %v4325_v30 }
 0x4ea   :  { %v13407_v23 = vsub.f32 %v3640_v33, %v13398_v1  ;;  %v13410_v14 = vsub.f32 %v4326_v17, %v13400_v18 }
 0x4eb   :  { %v13413_v57 = vsub.f32 %v3639_v27, %v13402_v7  ;;  %v13416_v8 = vsub.f32 %v4325_v30, %v13404_v45 }
 0x4ec   :  { %v3734_v44 = vand.u32 4294901760, %v13407_v23  ;;  %v4420_v20 = vand.u32 4294901760, %v13410_v14 }
 0x4ed   :  { %v3724_v28 = vand.u32 4294901760, %v13413_v57  ;;  %v4410_v16 = vand.u32 4294901760, %v13416_v8 }
 0x4ee   :  { %v3735_v54 = vsub.f32 %v13407_v23, %v3734_v44  ;;  %v4421_v60 = vsub.f32 %v13410_v14, %v4420_v20 }
 0x4ef   :  { %v3725_v15 = vsub.f32 %v13413_v57, %v3724_v28  ;;  %v4411_v50 = vsub.f32 %v13416_v8, %v4410_v16 }
 0x4f0   :  { %v3736_v31 = vand.u32 4294901760, %v3735_v54  ;;  %v4422_v52 = vand.u32 4294901760, %v4421_v60 }
 0x4f1   :  { %v3726_v41 = vand.u32 4294901760, %v3725_v15  ;;  %v4412_v6 = vand.u32 4294901760, %v4411_v50 }
 0x4f3   :  { %9016 = vmatprep.mubr.f32.mxu0 %v3726_v41  ;;  %9226 = vmatprep.mubr.f32.mxu1 %v4412_v6 }
 0x4f4   :  { %9017 = vmatmul.mubr.f32.vlgmr.msra.gmra.mrb[6].mxu0 %v3736_v31  ;;  %9227 = vmatmul.mubr.f32.vlgmr.msra.gmra.mrb[6].mxu1 %v4422_v52 }
 0x4f5   :  { %10765 = vmatpush3.bf16.msra.mxu0 %v12639_v46  ;;  %10957 = vmatpush3.bf16.msra.mxu1 %v12639_v46 }
 0x4f6   :  { %9051 = vmatprep.mubr.f32.mxu0 %v13402_v7  ;;  %9261 = vmatprep.mubr.f32.mxu1 %v13404_v45 }
 0x4f7   :  { %10767 = vmatprep.subr.bf16.mxu0 %v12662_v21  ;;  %10959 = vmatprep.subr.bf16.mxu1 %v12662_v21 }
 0x4f9   :  { %10769 = vmatpush3.bf16.msra.mxu0 %v12662_v21  ;;  %10961 = vmatpush3.bf16.msra.mxu1 %v12662_v21 }
 0x4fa   :  { %10771 = vmatprep.subr.bf16.mxu0 %v12707_v55  ;;  %10963 = vmatprep.subr.bf16.mxu1 %v12707_v55 }
 0x4fd   :  { %10773 = vmatpush3.bf16.msra.mxu0 %v12707_v55  ;;  %10965 = vmatpush3.bf16.msra.mxu1 %v12707_v55 }
 0x4fe   :  { %10775 = vmatprep.subr.bf16.mxu0 %v12712_v19  ;;  %10967 = vmatprep.subr.bf16.mxu1 %v12712_v19 }
 0x501   :  { %10777 = vmatpush3.bf16.msra.mxu0 %v12712_v19  ;;  %10969 = vmatpush3.bf16.msra.mxu1 %v12712_v19 }
 0x502   :  { %10779 = vmatprep.subr.bf16.mxu0 %v12737_v5  ;;  %10971 = vmatprep.subr.bf16.mxu1 %v12737_v5 }
 0x505   :  { %10781 = vmatpush3.bf16.msra.mxu0 %v12737_v5  ;;  %10973 = vmatpush3.bf16.msra.mxu1 %v12737_v5 }
 0x506   :  { %10783 = vmatprep.subr.bf16.mxu0 %v12763_v11  ;;  %10975 = vmatprep.subr.bf16.mxu1 %v12763_v11 }
 0x509   :  { %10785 = vmatpush3.bf16.msra.mxu0 %v12763_v11  ;;  %10977 = vmatpush3.bf16.msra.mxu1 %v12763_v11 }
 0x50a   :  { %10787 = vmatprep.subr.bf16.mxu0 %v12783_v56  ;;  %10979 = vmatprep.subr.bf16.mxu1 %v12783_v56 }
 0x50d   :  { %10789 = vmatpush3.bf16.msra.mxu0 %v12783_v56  ;;  %10981 = vmatpush3.bf16.msra.mxu1 %v12783_v56 }
 0x50e   :  { %10791 = vmatprep.subr.bf16.mxu0 %v12796_v36  ;;  %10983 = vmatprep.subr.bf16.mxu1 %v12796_v36 }
 0x511   :  { %10793 = vmatpush3.bf16.msra.mxu0 %v12796_v36  ;;  %10985 = vmatpush3.bf16.msra.mxu1 %v12796_v36 }
 0x512   :  { %10795 = vmatprep.subr.bf16.mxu0 %v12800_v59  ;;  %10987 = vmatprep.subr.bf16.mxu1 %v12800_v59 }
 0x514   :  { %9052 = vmatmul.mubr.f32.vlgmr.msra.gmra.mrb[6].mxu0 %v13398_v1  ;;  %9262 = vmatmul.mubr.f32.vlgmr.msra.gmra.mrb[6].mxu1 %v13400_v18 }
 0x515   :  { %10797 = vmatpush3.bf16.msra.mxu0 %v12800_v59  ;;  %9086 = vmatprep.mubr.f32.mxu0 %v13413_v57 }
 0x516   :  { %10989 = vmatpush3.bf16.msra.mxu1 %v12800_v59  ;;  %9296 = vmatprep.mubr.f32.mxu1 %v13416_v8 }
 0x517   :  { %10799 = vmatprep.subr.bf16.mxu0 %v12804_v61  ;;  %10991 = vmatprep.subr.bf16.mxu1 %v12804_v61 }
 0x519   :  { %10801 = vmatpush3.bf16.msra.mxu0 %v12804_v61 }
 0x51a   :  { %10993 = vmatpush3.bf16.msra.mxu1 %v12804_v61  ;;  %10803 = vmatprep.subr.bf16.mxu0 %v14245_v13 }
 0x51b   :  { %10995 = vmatprep.subr.bf16.mxu1 %v14245_v13 }
 0x51d   :  { %10805 = vmatpush3.bf16.msra.mxu0 %v14245_v13 }
 0x51e   :  { %10997 = vmatpush3.bf16.msra.mxu1 %v14245_v13  ;;  %10807 = vmatprep.subr.bf16.mxu0 %v14246_v25 }
 0x51f   :  { %10999 = vmatprep.subr.bf16.mxu1 %v14246_v25 }
 0x521   :  { %10809 = vmatpush3.bf16.msra.mxu0 %v14246_v25 }
 0x522   :  { %11001 = vmatpush3.bf16.msra.mxu1 %v14246_v25  ;;  %10811 = vmatprep.subr.bf16.mxu0 %v14247_v48 }
 0x523   :  { %11003 = vmatprep.subr.bf16.mxu1 %v14247_v48 }
 0x525   :  { %10813 = vmatpush3.bf16.msra.mxu0 %v14247_v48 }
 0x526   :  { %11005 = vmatpush3.bf16.msra.mxu1 %v14247_v48  ;;  %10815 = vmatprep.subr.bf16.mxu0 %v14248_v49 }
 0x527   :  { %11007 = vmatprep.subr.bf16.mxu1 %v14248_v49 }
 0x529   :  { %10817 = vmatpush3.bf16.msra.mxu0 %v14248_v49 }
 0x52a   :  { %11009 = vmatpush3.bf16.msra.mxu1 %v14248_v49  ;;  %10819 = vmatprep.subr.bf16.mxu0 %v14249_v37 }
 0x52b   :  { %11011 = vmatprep.subr.bf16.mxu1 %v14249_v37 }
 0x52d   :  { %10821 = vmatpush3.bf16.msra.mxu0 %v14249_v37 }
 0x52e   :  { %11013 = vmatpush3.bf16.msra.mxu1 %v14249_v37  ;;  %10823 = vmatprep.subr.bf16.mxu0 %v14250_v39 }
 0x52f   :  { %11015 = vmatprep.subr.bf16.mxu1 %v14250_v39 }
 0x531   :  { %10825 = vmatpush3.bf16.msra.mxu0 %v14250_v39 }
 0x532   :  { %11017 = vmatpush3.bf16.msra.mxu1 %v14250_v39  ;;  %10827 = vmatprep.subr.bf16.mxu0 %v12524_v63 }
 0x533   :  { %11019 = vmatprep.subr.bf16.mxu1 %v12524_v63 }
 0x534   :  { %9087 = vmatmul.mubr.f32.vlgmr.msra.gmra.mrb[6].mxu0 %v13407_v23 }
 0x535   :  { %9297 = vmatmul.mubr.f32.vlgmr.msra.gmra.mrb[6].mxu1 %v13410_v14  ;;  %10829 = vmatpush3.bf16.msra.mxu0 %v12524_v63 }
 0x536   :  { %9121 = vmatprep.mubr.f32.mxu0 %v3724_v28  ;;  %11021 = vmatpush3.bf16.msra.mxu1 %v12524_v63 }
 0x537   :  { %9331 = vmatprep.mubr.f32.mxu1 %v4410_v16  ;;  %10831 = vmatprep.subr.bf16.mxu0 %v12528_v32 }
 0x538   :  { %11023 = vmatprep.subr.bf16.mxu1 %v12528_v32 }
 0x539   :  { %10833 = vmatpush3.bf16.msra.mxu0 %v12528_v32 }
 0x53a   :  { %11025 = vmatpush3.bf16.msra.mxu1 %v12528_v32  ;;  %10835 = vmatprep.subr.bf16.mxu0 %v12546_v58 }
 0x53b   :  { %11027 = vmatprep.subr.bf16.mxu1 %v12546_v58 }
 0x53d   :  { %10837 = vmatpush3.bf16.msra.mxu0 %v12546_v58 }
 0x53e   :  { %11029 = vmatpush3.bf16.msra.mxu1 %v12546_v58  ;;  %10839 = vmatprep.subr.bf16.mxu0 %v12563_v3 }
 0x53f   :  { %11031 = vmatprep.subr.bf16.mxu1 %v12563_v3 }
 0x541   :  { %10841 = vmatpush3.bf16.msra.mxu0 %v12563_v3 }
 0x542   :  { %11033 = vmatpush3.bf16.msra.mxu1 %v12563_v3  ;;  %10843 = vmatprep.subr.bf16.mxu0 %v12571_v4 }
 0x543   :  { %11035 = vmatprep.subr.bf16.mxu1 %v12571_v4 }
 0x545   :  { %10845 = vmatpush3.bf16.msra.mxu0 %v12571_v4 }
 0x546   :  { %11037 = vmatpush3.bf16.msra.mxu1 %v12571_v4  ;;  %10847 = vmatprep.subr.bf16.mxu0 %v12585_v9 }
 0x547   :  { %11039 = vmatprep.subr.bf16.mxu1 %v12585_v9 }
 0x549   :  { %10849 = vmatpush3.bf16.msra.mxu0 %v12585_v9 }
 0x54a   :  { %11041 = vmatpush3.bf16.msra.mxu1 %v12585_v9  ;;  %10851 = vmatprep.subr.bf16.mxu0 %v12599_v42 }
 0x54b   :  { %11043 = vmatprep.subr.bf16.mxu1 %v12599_v42 }
 0x54d   :  { %10853 = vmatpush3.bf16.msra.mxu0 %v12599_v42 }
 0x54e   :  { %11045 = vmatpush3.bf16.msra.mxu1 %v12599_v42  ;;  %10855 = vmatprep.subr.bf16.mxu0 %v12609_v29 }
 0x54f   :  { %11047 = vmatprep.subr.bf16.mxu1 %v12609_v29 }
 0x551   :  { %10857 = vmatpush3.bf16.msra.mxu0 %v12609_v29 }
 0x552   :  { %11049 = vmatpush3.bf16.msra.mxu1 %v12609_v29  ;;  %10859 = vmatprep.subr.bf16.mxu0 %v14251_v26 }
 0x553   :  { %11051 = vmatprep.subr.bf16.mxu1 %v14251_v26 }
 0x554   :  { %9122 = vmatmul.mubr.f32.vlgmr.msra.gmra.mrb[6].mxu0 %v3734_v44 }
 0x555   :  { %9332 = vmatmul.mubr.f32.vlgmr.msra.gmra.mrb[6].mxu1 %v4420_v20  ;;  %10861 = vmatpush3.bf16.msra.mxu0 %v14251_v26 }
 0x556   :  { %9156 = vmatprep.mubr.f32.mxu0 %v13402_v7  ;;  %11053 = vmatpush3.bf16.msra.mxu1 %v14251_v26 }
 0x557   :  { %9366 = vmatprep.mubr.f32.mxu1 %v13404_v45  ;;  %10863 = vmatprep.subr.bf16.mxu0 %v14252_v51 }
 0x558   :  { %11055 = vmatprep.subr.bf16.mxu1 %v14252_v51 }
 0x559   :  { %10865 = vmatpush3.bf16.msra.mxu0 %v14252_v51 }
 0x55a   :  { %11057 = vmatpush3.bf16.msra.mxu1 %v14252_v51  ;;  %10867 = vmatprep.subr.bf16.mxu0 %v14253_v40 }
 0x55b   :  { %11059 = vmatprep.subr.bf16.mxu1 %v14253_v40 }
 0x55d   :  { %10869 = vmatpush3.bf16.msra.mxu0 %v14253_v40 }
 0x55e   :  { %11061 = vmatpush3.bf16.msra.mxu1 %v14253_v40  ;;  %10871 = vmatprep.subr.bf16.mxu0 %v14254_v22 }
 0x55f   :  { %11063 = vmatprep.subr.bf16.mxu1 %v14254_v22 }
 0x561   :  { %10873 = vmatpush3.bf16.msra.mxu0 %v14254_v22 }
 0x562   :  { %11065 = vmatpush3.bf16.msra.mxu1 %v14254_v22  ;;  %10875 = vmatprep.subr.bf16.mxu0 %v14255_v10 }
 0x563   :  { %11067 = vmatprep.subr.bf16.mxu1 %v14255_v10 }
 0x565   :  { %10877 = vmatpush3.bf16.msra.mxu0 %v14255_v10 }
 0x566   :  { %11069 = vmatpush3.bf16.msra.mxu1 %v14255_v10  ;;  %10879 = vmatprep.subr.bf16.mxu0 %v14256_v2 }
 0x567   :  { %11071 = vmatprep.subr.bf16.mxu1 %v14256_v2 }
 0x569   :  { %10881 = vmatpush3.bf16.msra.mxu0 %v14256_v2  ;;  %v13569_v43 = vpop.f32.mrb[4].mxu1 }
 0x56a   :  { %11073 = vmatpush3.bf16.msra.mxu1 %v14256_v2  ;;  %v13572_v34 = vpop.f32.mrb[5].mxu1  ;;  %10883 = vmatprep.subr.bf16.mxu0 %v14257_v35  ;;  %v5032_v28 = vsub.f32 1.0, %v13569_v43 }
 0x56b   :  { %11075 = vmatprep.subr.bf16.mxu1 %v14257_v35  ;;  %v5031_v54 = vsub.f32 1.0, %v13572_v34 }
 0x56d   :  { %10885 = vmatpush3.bf16.msra.mxu0 %v14257_v35 }
 0x56e   :  { %11077 = vmatpush3.bf16.msra.mxu1 %v14257_v35  ;;  %10887 = vmatprep.subr.bf16.mxu0 %v14258_v53 }
 0x56f   :  { %11079 = vmatprep.subr.bf16.mxu1 %v14258_v53 }
 0x571   :  { %10889 = vmatpush3.bf16.msra.mxu0 %v14258_v53 }
 0x572   :  { %11081 = vmatpush3.bf16.msra.mxu1 %v14258_v53  ;;  %10891 = vmatprep.subr.bf16.mxu0 %v12524_v63 }
 0x573   :  { %11083 = vmatprep.subr.bf16.mxu1 %v12524_v63 }
 0x574   :  { %9157 = vmatmul.mubr.f32.vlgmr.msra.gmra.mrb[6].mxu0 %v13398_v1 }
 0x575   :  { %9367 = vmatmul.mubr.f32.vlgmr.msra.gmra.mrb[6].mxu1 %v13400_v18  ;;  %10893 = vmatpush3.bf16.msra.mxu0 %v12524_v63 }
 0x576   :  { %9191 = vmatprep.mubr.f32.mxu0 %v13402_v7  ;;  %11085 = vmatpush3.bf16.msra.mxu1 %v12524_v63 }
 0x577   :  { %9401 = vmatprep.mubr.f32.mxu1 %v13404_v45  ;;  %10895 = vmatprep.subr.bf16.mxu0 %v12528_v32 }
 0x578   :  { %11087 = vmatprep.subr.bf16.mxu1 %v12528_v32 }
 0x579   :  { %10897 = vmatpush3.bf16.msra.mxu0 %v12528_v32 }
 0x57a   :  { %11089 = vmatpush3.bf16.msra.mxu1 %v12528_v32  ;;  %10899 = vmatprep.subr.bf16.mxu0 %v12546_v58 }
 0x57b   :  { %11091 = vmatprep.subr.bf16.mxu1 %v12546_v58 }
 0x57d   :  { %10901 = vmatpush3.bf16.msra.mxu0 %v12546_v58 }
 0x57e   :  { %11093 = vmatpush3.bf16.msra.mxu1 %v12546_v58  ;;  %10903 = vmatprep.subr.bf16.mxu0 %v12563_v3 }
 0x57f   :  { %11095 = vmatprep.subr.bf16.mxu1 %v12563_v3 }
 0x581   :  { %10905 = vmatpush3.bf16.msra.mxu0 %v12563_v3 }
 0x582   :  { %11097 = vmatpush3.bf16.msra.mxu1 %v12563_v3  ;;  %10907 = vmatprep.subr.bf16.mxu0 %v12571_v4 }
 0x583   :  { %11099 = vmatprep.subr.bf16.mxu1 %v12571_v4 }
 0x585   :  { %10909 = vmatpush3.bf16.msra.mxu0 %v12571_v4 }
 0x586   :  { %11101 = vmatpush3.bf16.msra.mxu1 %v12571_v4  ;;  %10911 = vmatprep.subr.bf16.mxu0 %v12585_v9 }
 0x587   :  { %11103 = vmatprep.subr.bf16.mxu1 %v12585_v9 }
 0x589   :  { %10913 = vmatpush3.bf16.msra.mxu0 %v12585_v9 }
 0x58a   :  { %11105 = vmatpush3.bf16.msra.mxu1 %v12585_v9  ;;  %10915 = vmatprep.subr.bf16.mxu0 %v12599_v42 }
 0x58b   :  { %11107 = vmatprep.subr.bf16.mxu1 %v12599_v42 }
 0x58d   :  { %10917 = vmatpush3.bf16.msra.mxu0 %v12599_v42 }
 0x58e   :  { %11109 = vmatpush3.bf16.msra.mxu1 %v12599_v42  ;;  %10919 = vmatprep.subr.bf16.mxu0 %v12609_v29 }
 0x58f   :  { %11111 = vmatprep.subr.bf16.mxu1 %v12609_v29 }
 0x591   :  { %10921 = vmatpush3.bf16.msra.mxu0 %v12609_v29 }
 0x592   :  { %11113 = vmatpush3.bf16.msra.mxu1 %v12609_v29  ;;  %11115 = vmatprep.subr.bf16.mxu0 %v12524_v63 }
 0x593   :  { %11307 = vmatprep.subr.bf16.mxu1 %v12524_v63 }
 0x594   :  { %9192 = vmatmul.mubr.f32.vlgmr.msra.gmra.mrb[6].mxu0 %v13398_v1 }
 0x595   :  { %9402 = vmatmul.mubr.f32.vlgmr.msra.gmra.mrb[6].mxu1 %v13400_v18  ;;  %11117 = vmatpush3.bf16.msra.mxu0 %v12524_v63 }
 0x596   :  { %11309 = vmatpush3.bf16.msra.mxu1 %v12524_v63  ;;  %11119 = vmatprep.subr.bf16.mxu0 %v12528_v32 }
 0x597   :  { %11311 = vmatprep.subr.bf16.mxu1 %v12528_v32 }
 0x599   :  { %11121 = vmatpush3.bf16.msra.mxu0 %v12528_v32 }
 0x59a   :  { %11313 = vmatpush3.bf16.msra.mxu1 %v12528_v32  ;;  %11123 = vmatprep.subr.bf16.mxu0 %v12546_v58 }
 0x59b   :  { %11315 = vmatprep.subr.bf16.mxu1 %v12546_v58 }
 0x59d   :  { %11125 = vmatpush3.bf16.msra.mxu0 %v12546_v58 }
 0x59e   :  { %11317 = vmatpush3.bf16.msra.mxu1 %v12546_v58  ;;  %11127 = vmatprep.subr.bf16.mxu0 %v12563_v3 }
 0x59f   :  { %11319 = vmatprep.subr.bf16.mxu1 %v12563_v3 }
 0x5a1   :  { %11129 = vmatpush3.bf16.msra.mxu0 %v12563_v3 }
 0x5a2   :  { %11321 = vmatpush3.bf16.msra.mxu1 %v12563_v3  ;;  %11131 = vmatprep.subr.bf16.mxu0 %v12571_v4 }
 0x5a3   :  { %11323 = vmatprep.subr.bf16.mxu1 %v12571_v4 }
 0x5a5   :  { %11133 = vmatpush3.bf16.msra.mxu0 %v12571_v4 }
 0x5a6   :  { %11325 = vmatpush3.bf16.msra.mxu1 %v12571_v4  ;;  %11135 = vmatprep.subr.bf16.mxu0 %v12585_v9 }
 0x5a7   :  { %11327 = vmatprep.subr.bf16.mxu1 %v12585_v9 }
 0x5a9   :  { %11137 = vmatpush3.bf16.msra.mxu0 %v12585_v9 }
 0x5aa   :  { %11329 = vmatpush3.bf16.msra.mxu1 %v12585_v9  ;;  %11139 = vmatprep.subr.bf16.mxu0 %v12599_v42 }
 0x5ab   :  { %11331 = vmatprep.subr.bf16.mxu1 %v12599_v42 }
 0x5ad   :  { %11141 = vmatpush3.bf16.msra.mxu0 %v12599_v42 }
 0x5ae   :  { %11333 = vmatpush3.bf16.msra.mxu1 %v12599_v42  ;;  %11143 = vmatprep.subr.bf16.mxu0 %v12609_v29 }
 0x5af   :  { %11335 = vmatprep.subr.bf16.mxu1 %v12609_v29 }
 0x5b1   :  { %11145 = vmatpush3.bf16.msra.mxu0 %v12609_v29 }
 0x5b2   :  { %11337 = vmatpush3.bf16.msra.mxu1 %v12609_v29  ;;  %11147 = vmatprep.subr.bf16.mxu0 %v12639_v46 }
 0x5b3   :  { %11339 = vmatprep.subr.bf16.mxu1 %v12639_v46 }
 0x667   :  { %v9193_v12 = vpop.f32.mrb[6].mxu0 }
 0x668   :  { %v5016_v0 = vmul.f32 %v9193_v12, %v13569_v43  ;;  %v9403_v33 = vpop.f32.mrb[6].mxu1  ;;  %v4315_v17 = vpop.f32.mrb[7].mxu0 }
 0x669   :  { %v5012_v27 = vmul.f32 2.0, %v9403_v33  ;;  %v5015_v30 = vmul.f32 %v4315_v17, %v13572_v34  ;;  %v5001_v1 = vpop.f32.mrb[7].mxu1 }
 0x66a   :  { %v5011_v18 = vmul.f32 2.0, %v5001_v1 }
 0x66b   :  { %v5014_v7 = vadd.f32 1.0, %v5012_v27 }
 0x66c   :  { %v5013_v45 = vadd.f32 1.0, %v5011_v18 }
 0x66d   :  { %v5018_v23 = vadd.f32 %v5016_v0, %v5014_v7  ;;  %v5026_v14 = vadd.f32 %v9193_v12, %v5014_v7  ;;  %v13663_v12 = vld [vmem:[%s14152_s4 + $0x4] ss:$0 sm:$0xff] }
 0x66e   :  { %v5017_v57 = vadd.f32 %v5015_v30, %v5013_v45  ;;  %v5025_v8 = vadd.f32 %v5013_v45, %v4315_v17 }
 0x66f   :  { %v5020_v44 = vmax.f32 %v5018_v23, 1e-15 }
 0x670   :  { %v5019_v20 = vmax.f32 %v5017_v57, 1e-15 }
 0x671   :  { %11856 = vrcp.f32 %v5020_v44 }
 0x672   :  { %11858 = vrcp.f32 %v5019_v20 }
 0x67b   :  { %v11857_v16 = vpop.eup %11856 }
 0x67c   :  { %v11859_v60 = vpop.eup %11858  ;;  %v5028_v15 = vmul.f32 %v11857_v16, %v5026_v14  ;;  %v5034_v50 = vmul.f32 %v11857_v16, %v5032_v28 }
 0x67d   :  { %v5027_v41 = vmul.f32 %v11859_v60, %v5025_v8  ;;  %v5033_v6 = vmul.f32 %v11859_v60, %v5031_v54 }
 0x67e   :  { %v5030_v31 = vmul.f32 %v5028_v15, %v13139_v38  ;;  %v5036_v52 = vmul.f32 %v13386_v62, %v5034_v50 }
 0x67f   :  { %v5029_v0 = vmul.f32 %v5027_v41, %v13144_v24  ;;  %v5035_v43 = vmul.f32 %v13388_v47, %v5033_v6 }
 0x680   :  { %v13667_v33 = vadd.f32 %v5036_v52, %v5030_v31  ;;  %v7485_v31 = vld [vmem:[%s14152_s4 + $0x5] ss:$0 sm:$0xff] }
 0x681   :  { %v13669_v34 = vadd.f32 %v5035_v43, %v5029_v0 }
 0x682   :  { %v5040_v17 = vmul.f32 %v13667_v33, %v13667_v33  ;;  %v5730_v38 = vmul.f32 %v13663_v12, %v13667_v33 }
 0x683   :  { %v5039_v62 = vmul.f32 %v13669_v34, %v13669_v34  ;;  %v5729_v27 = vmul.f32 %v13663_v12, %v13669_v34 }
 0x684   :  { %v13679_v30 = vand.u32 4294901760, %v5040_v17  ;;  %v13681_v24 = vand.u32 4294901760, %v5730_v38 }
 0x685   :  { %v13683_v47 = vand.u32 4294901760, %v5039_v62  ;;  %v13685_v1 = vand.u32 4294901760, %v5729_v27 }
 0x686   :  { %v13688_v18 = vsub.f32 %v5040_v17, %v13679_v30  ;;  %v13691_v7 = vsub.f32 %v5730_v38, %v13681_v24 }
 0x687   :  { %v13694_v45 = vsub.f32 %v5039_v62, %v13683_v47  ;;  %v13697_v23 = vsub.f32 %v5729_v27, %v13685_v1 }
 0x688   :  { %v5134_v14 = vand.u32 4294901760, %v13688_v18  ;;  %v5824_v57 = vand.u32 4294901760, %v13691_v7 }
 0x689   :  { %v5124_v8 = vand.u32 4294901760, %v13694_v45  ;;  %v5814_v44 = vand.u32 4294901760, %v13697_v23 }
 0x68a   :  { %v5135_v20 = vsub.f32 %v13688_v18, %v5134_v14  ;;  %v5825_v28 = vsub.f32 %v13691_v7, %v5824_v57 }
 0x68b   :  { %v5125_v16 = vsub.f32 %v13694_v45, %v5124_v8  ;;  %v5815_v54 = vsub.f32 %v13697_v23, %v5814_v44 }
 0x68c   :  { %v5136_v50 = vand.u32 4294901760, %v5135_v20  ;;  %v5826_v41 = vand.u32 4294901760, %v5825_v28 }
 0x68d   :  { %v5126_v60 = vand.u32 4294901760, %v5125_v16  ;;  %v5816_v15 = vand.u32 4294901760, %v5815_v54 }
 0x68f   :  { %9436 = vmatprep.mubr.f32.mxu0 %v5126_v60  ;;  %9646 = vmatprep.mubr.f32.mxu1 %v5816_v15 }
 0x690   :  { %9437 = vmatmul.mubr.f32.vlgmr.msra.gmra.mrb[8].mxu0 %v5136_v50  ;;  %9647 = vmatmul.mubr.f32.vlgmr.msra.gmra.mrb[8].mxu1 %v5826_v41 }
 0x691   :  { %11149 = vmatpush3.bf16.msra.mxu0 %v12639_v46  ;;  %11341 = vmatpush3.bf16.msra.mxu1 %v12639_v46 }
 0x692   :  { %9471 = vmatprep.mubr.f32.mxu0 %v13683_v47  ;;  %9681 = vmatprep.mubr.f32.mxu1 %v13685_v1 }
 0x693   :  { %11151 = vmatprep.subr.bf16.mxu0 %v12662_v21  ;;  %11343 = vmatprep.subr.bf16.mxu1 %v12662_v21 }
 0x695   :  { %11153 = vmatpush3.bf16.msra.mxu0 %v12662_v21  ;;  %11345 = vmatpush3.bf16.msra.mxu1 %v12662_v21 }
 0x696   :  { %11155 = vmatprep.subr.bf16.mxu0 %v12707_v55  ;;  %11347 = vmatprep.subr.bf16.mxu1 %v12707_v55 }
 0x699   :  { %11157 = vmatpush3.bf16.msra.mxu0 %v12707_v55  ;;  %11349 = vmatpush3.bf16.msra.mxu1 %v12707_v55 }
 0x69a   :  { %11159 = vmatprep.subr.bf16.mxu0 %v12712_v19  ;;  %11351 = vmatprep.subr.bf16.mxu1 %v12712_v19 }
 0x69d   :  { %11161 = vmatpush3.bf16.msra.mxu0 %v12712_v19  ;;  %11353 = vmatpush3.bf16.msra.mxu1 %v12712_v19 }
 0x69e   :  { %11163 = vmatprep.subr.bf16.mxu0 %v12737_v5  ;;  %11355 = vmatprep.subr.bf16.mxu1 %v12737_v5 }
 0x6a1   :  { %11165 = vmatpush3.bf16.msra.mxu0 %v12737_v5  ;;  %11357 = vmatpush3.bf16.msra.mxu1 %v12737_v5 }
 0x6a2   :  { %11167 = vmatprep.subr.bf16.mxu0 %v12763_v11  ;;  %11359 = vmatprep.subr.bf16.mxu1 %v12763_v11 }
 0x6a5   :  { %11169 = vmatpush3.bf16.msra.mxu0 %v12763_v11  ;;  %11361 = vmatpush3.bf16.msra.mxu1 %v12763_v11 }
 0x6a6   :  { %11171 = vmatprep.subr.bf16.mxu0 %v12783_v56  ;;  %11363 = vmatprep.subr.bf16.mxu1 %v12783_v56 }
 0x6a9   :  { %11173 = vmatpush3.bf16.msra.mxu0 %v12783_v56  ;;  %11365 = vmatpush3.bf16.msra.mxu1 %v12783_v56 }
 0x6aa   :  { %11175 = vmatprep.subr.bf16.mxu0 %v12796_v36  ;;  %11367 = vmatprep.subr.bf16.mxu1 %v12796_v36 }
 0x6ad   :  { %11177 = vmatpush3.bf16.msra.mxu0 %v12796_v36  ;;  %11369 = vmatpush3.bf16.msra.mxu1 %v12796_v36 }
 0x6ae   :  { %11179 = vmatprep.subr.bf16.mxu0 %v12800_v59  ;;  %11371 = vmatprep.subr.bf16.mxu1 %v12800_v59 }
 0x6b0   :  { %9472 = vmatmul.mubr.f32.vlgmr.msra.gmra.mrb[8].mxu0 %v13679_v30  ;;  %9682 = vmatmul.mubr.f32.vlgmr.msra.gmra.mrb[8].mxu1 %v13681_v24 }
 0x6b1   :  { %11181 = vmatpush3.bf16.msra.mxu0 %v12800_v59  ;;  %9506 = vmatprep.mubr.f32.mxu0 %v13694_v45 }
 0x6b2   :  { %11373 = vmatpush3.bf16.msra.mxu1 %v12800_v59  ;;  %9716 = vmatprep.mubr.f32.mxu1 %v13697_v23 }
 0x6b3   :  { %11183 = vmatprep.subr.bf16.mxu0 %v12804_v61  ;;  %11375 = vmatprep.subr.bf16.mxu1 %v12804_v61 }
 0x6b5   :  { %11185 = vmatpush3.bf16.msra.mxu0 %v12804_v61 }
 0x6b6   :  { %11377 = vmatpush3.bf16.msra.mxu1 %v12804_v61  ;;  %11187 = vmatprep.subr.bf16.mxu0 %v14245_v13 }
 0x6b7   :  { %11379 = vmatprep.subr.bf16.mxu1 %v14245_v13 }
 0x6b9   :  { %11189 = vmatpush3.bf16.msra.mxu0 %v14245_v13 }
 0x6ba   :  { %11381 = vmatpush3.bf16.msra.mxu1 %v14245_v13  ;;  %11191 = vmatprep.subr.bf16.mxu0 %v14246_v25 }
 0x6bb   :  { %11383 = vmatprep.subr.bf16.mxu1 %v14246_v25 }
 0x6bd   :  { %11193 = vmatpush3.bf16.msra.mxu0 %v14246_v25 }
 0x6be   :  { %11385 = vmatpush3.bf16.msra.mxu1 %v14246_v25  ;;  %11195 = vmatprep.subr.bf16.mxu0 %v14247_v48 }
 0x6bf   :  { %11387 = vmatprep.subr.bf16.mxu1 %v14247_v48 }
 0x6c1   :  { %11197 = vmatpush3.bf16.msra.mxu0 %v14247_v48 }
 0x6c2   :  { %11389 = vmatpush3.bf16.msra.mxu1 %v14247_v48  ;;  %11199 = vmatprep.subr.bf16.mxu0 %v14248_v49 }
 0x6c3   :  { %11391 = vmatprep.subr.bf16.mxu1 %v14248_v49 }
 0x6c5   :  { %11201 = vmatpush3.bf16.msra.mxu0 %v14248_v49 }
 0x6c6   :  { %11393 = vmatpush3.bf16.msra.mxu1 %v14248_v49  ;;  %11203 = vmatprep.subr.bf16.mxu0 %v14249_v37 }
 0x6c7   :  { %11395 = vmatprep.subr.bf16.mxu1 %v14249_v37 }
 0x6c9   :  { %11205 = vmatpush3.bf16.msra.mxu0 %v14249_v37 }
 0x6ca   :  { %11397 = vmatpush3.bf16.msra.mxu1 %v14249_v37  ;;  %11207 = vmatprep.subr.bf16.mxu0 %v14250_v39 }
 0x6cb   :  { %11399 = vmatprep.subr.bf16.mxu1 %v14250_v39 }
 0x6cd   :  { %11209 = vmatpush3.bf16.msra.mxu0 %v14250_v39 }
 0x6ce   :  { %11401 = vmatpush3.bf16.msra.mxu1 %v14250_v39  ;;  %11211 = vmatprep.subr.bf16.mxu0 %v12524_v63 }
 0x6cf   :  { %11403 = vmatprep.subr.bf16.mxu1 %v12524_v63 }
 0x6d0   :  { %9507 = vmatmul.mubr.f32.vlgmr.msra.gmra.mrb[8].mxu0 %v13688_v18 }
 0x6d1   :  { %9717 = vmatmul.mubr.f32.vlgmr.msra.gmra.mrb[8].mxu1 %v13691_v7  ;;  %11213 = vmatpush3.bf16.msra.mxu0 %v12524_v63 }
 0x6d2   :  { %9541 = vmatprep.mubr.f32.mxu0 %v5124_v8  ;;  %11405 = vmatpush3.bf16.msra.mxu1 %v12524_v63 }
 0x6d3   :  { %9751 = vmatprep.mubr.f32.mxu1 %v5814_v44  ;;  %11215 = vmatprep.subr.bf16.mxu0 %v12528_v32 }
 0x6d4   :  { %11407 = vmatprep.subr.bf16.mxu1 %v12528_v32 }
 0x6d5   :  { %11217 = vmatpush3.bf16.msra.mxu0 %v12528_v32 }
 0x6d6   :  { %11409 = vmatpush3.bf16.msra.mxu1 %v12528_v32  ;;  %11219 = vmatprep.subr.bf16.mxu0 %v12546_v58 }
 0x6d7   :  { %11411 = vmatprep.subr.bf16.mxu1 %v12546_v58 }
 0x6d9   :  { %11221 = vmatpush3.bf16.msra.mxu0 %v12546_v58 }
 0x6da   :  { %11413 = vmatpush3.bf16.msra.mxu1 %v12546_v58  ;;  %11223 = vmatprep.subr.bf16.mxu0 %v12563_v3 }
 0x6db   :  { %11415 = vmatprep.subr.bf16.mxu1 %v12563_v3 }
 0x6dd   :  { %11225 = vmatpush3.bf16.msra.mxu0 %v12563_v3 }
 0x6de   :  { %11417 = vmatpush3.bf16.msra.mxu1 %v12563_v3  ;;  %11227 = vmatprep.subr.bf16.mxu0 %v12571_v4 }
 0x6df   :  { %11419 = vmatprep.subr.bf16.mxu1 %v12571_v4 }
 0x6e1   :  { %11229 = vmatpush3.bf16.msra.mxu0 %v12571_v4 }
 0x6e2   :  { %11421 = vmatpush3.bf16.msra.mxu1 %v12571_v4  ;;  %11231 = vmatprep.subr.bf16.mxu0 %v12585_v9 }
 0x6e3   :  { %11423 = vmatprep.subr.bf16.mxu1 %v12585_v9 }
 0x6e5   :  { %11233 = vmatpush3.bf16.msra.mxu0 %v12585_v9 }
 0x6e6   :  { %11425 = vmatpush3.bf16.msra.mxu1 %v12585_v9  ;;  %11235 = vmatprep.subr.bf16.mxu0 %v12599_v42 }
 0x6e7   :  { %11427 = vmatprep.subr.bf16.mxu1 %v12599_v42 }
 0x6e9   :  { %11237 = vmatpush3.bf16.msra.mxu0 %v12599_v42 }
 0x6ea   :  { %11429 = vmatpush3.bf16.msra.mxu1 %v12599_v42  ;;  %11239 = vmatprep.subr.bf16.mxu0 %v12609_v29 }
 0x6eb   :  { %11431 = vmatprep.subr.bf16.mxu1 %v12609_v29 }
 0x6ed   :  { %11241 = vmatpush3.bf16.msra.mxu0 %v12609_v29 }
 0x6ee   :  { %11433 = vmatpush3.bf16.msra.mxu1 %v12609_v29  ;;  %11243 = vmatprep.subr.bf16.mxu0 %v14251_v26 }
 0x6ef   :  { %11435 = vmatprep.subr.bf16.mxu1 %v14251_v26 }
 0x6f0   :  { %9542 = vmatmul.mubr.f32.vlgmr.msra.gmra.mrb[8].mxu0 %v5134_v14 }
 0x6f1   :  { %9752 = vmatmul.mubr.f32.vlgmr.msra.gmra.mrb[8].mxu1 %v5824_v57  ;;  %11245 = vmatpush3.bf16.msra.mxu0 %v14251_v26 }
 0x6f2   :  { %9576 = vmatprep.mubr.f32.mxu0 %v13683_v47  ;;  %11437 = vmatpush3.bf16.msra.mxu1 %v14251_v26 }
 0x6f3   :  { %9786 = vmatprep.mubr.f32.mxu1 %v13685_v1  ;;  %11247 = vmatprep.subr.bf16.mxu0 %v14252_v51 }
 0x6f4   :  { %11439 = vmatprep.subr.bf16.mxu1 %v14252_v51 }
 0x6f5   :  { %11249 = vmatpush3.bf16.msra.mxu0 %v14252_v51 }
 0x6f6   :  { %11441 = vmatpush3.bf16.msra.mxu1 %v14252_v51  ;;  %11251 = vmatprep.subr.bf16.mxu0 %v14253_v40 }
 0x6f7   :  { %11443 = vmatprep.subr.bf16.mxu1 %v14253_v40 }
 0x6f9   :  { %11253 = vmatpush3.bf16.msra.mxu0 %v14253_v40 }
 0x6fa   :  { %11445 = vmatpush3.bf16.msra.mxu1 %v14253_v40  ;;  %11255 = vmatprep.subr.bf16.mxu0 %v14254_v22 }
 0x6fb   :  { %11447 = vmatprep.subr.bf16.mxu1 %v14254_v22 }
 0x6fd   :  { %11257 = vmatpush3.bf16.msra.mxu0 %v14254_v22 }
 0x6fe   :  { %11449 = vmatpush3.bf16.msra.mxu1 %v14254_v22  ;;  %11259 = vmatprep.subr.bf16.mxu0 %v14255_v10 }
 0x6ff   :  { %11451 = vmatprep.subr.bf16.mxu1 %v14255_v10 }
 0x701   :  { %11261 = vmatpush3.bf16.msra.mxu0 %v14255_v10 }
 0x702   :  { %11453 = vmatpush3.bf16.msra.mxu1 %v14255_v10  ;;  %11263 = vmatprep.subr.bf16.mxu0 %v14256_v2 }
 0x703   :  { %11455 = vmatprep.subr.bf16.mxu1 %v14256_v2 }
 0x705   :  { %11265 = vmatpush3.bf16.msra.mxu0 %v14256_v2 }
 0x706   :  { %11457 = vmatpush3.bf16.msra.mxu1 %v14256_v2  ;;  %11267 = vmatprep.subr.bf16.mxu0 %v14257_v35 }
 0x707   :  { %11459 = vmatprep.subr.bf16.mxu1 %v14257_v35 }
 0x709   :  { %11269 = vmatpush3.bf16.msra.mxu0 %v14257_v35 }
 0x70a   :  { %11461 = vmatpush3.bf16.msra.mxu1 %v14257_v35  ;;  %11271 = vmatprep.subr.bf16.mxu0 %v14258_v53 }
 0x70b   :  { %11463 = vmatprep.subr.bf16.mxu1 %v14258_v53 }
 0x70d   :  { %11273 = vmatpush3.bf16.msra.mxu0 %v14258_v53 }
 0x70e   :  { %11465 = vmatpush3.bf16.msra.mxu1 %v14258_v53  ;;  %11275 = vmatprep.subr.bf16.mxu0 %v12524_v63 }
 0x70f   :  { %11467 = vmatprep.subr.bf16.mxu1 %v12524_v63 }
 0x710   :  { %9577 = vmatmul.mubr.f32.vlgmr.msra.gmra.mrb[8].mxu0 %v13679_v30 }
 0x711   :  { %9787 = vmatmul.mubr.f32.vlgmr.msra.gmra.mrb[8].mxu1 %v13681_v24  ;;  %11277 = vmatpush3.bf16.msra.mxu0 %v12524_v63 }
 0x712   :  { %9611 = vmatprep.mubr.f32.mxu0 %v13683_v47  ;;  %11469 = vmatpush3.bf16.msra.mxu1 %v12524_v63 }
 0x713   :  { %9821 = vmatprep.mubr.f32.mxu1 %v13685_v1  ;;  %11279 = vmatprep.subr.bf16.mxu0 %v12528_v32 }
 0x714   :  { %11471 = vmatprep.subr.bf16.mxu1 %v12528_v32 }
 0x715   :  { %11281 = vmatpush3.bf16.msra.mxu0 %v12528_v32 }
 0x716   :  { %11473 = vmatpush3.bf16.msra.mxu1 %v12528_v32  ;;  %11283 = vmatprep.subr.bf16.mxu0 %v12546_v58 }
 0x717   :  { %11475 = vmatprep.subr.bf16.mxu1 %v12546_v58 }
 0x719   :  { %11285 = vmatpush3.bf16.msra.mxu0 %v12546_v58 }
 0x71a   :  { %11477 = vmatpush3.bf16.msra.mxu1 %v12546_v58  ;;  %11287 = vmatprep.subr.bf16.mxu0 %v12563_v3 }
 0x71b   :  { %11479 = vmatprep.subr.bf16.mxu1 %v12563_v3 }
 0x71d   :  { %11289 = vmatpush3.bf16.msra.mxu0 %v12563_v3 }
 0x71e   :  { %11481 = vmatpush3.bf16.msra.mxu1 %v12563_v3  ;;  %11291 = vmatprep.subr.bf16.mxu0 %v12571_v4 }
 0x71f   :  { %11483 = vmatprep.subr.bf16.mxu1 %v12571_v4 }
 0x721   :  { %11293 = vmatpush3.bf16.msra.mxu0 %v12571_v4 }
 0x722   :  { %11485 = vmatpush3.bf16.msra.mxu1 %v12571_v4  ;;  %11295 = vmatprep.subr.bf16.mxu0 %v12585_v9 }
 0x723   :  { %11487 = vmatprep.subr.bf16.mxu1 %v12585_v9 }
 0x725   :  { %11297 = vmatpush3.bf16.msra.mxu0 %v12585_v9 }
 0x726   :  { %11489 = vmatpush3.bf16.msra.mxu1 %v12585_v9  ;;  %11299 = vmatprep.subr.bf16.mxu0 %v12599_v42 }
 0x727   :  { %11491 = vmatprep.subr.bf16.mxu1 %v12599_v42 }
 0x729   :  { %11301 = vmatpush3.bf16.msra.mxu0 %v12599_v42 }
 0x72a   :  { %11493 = vmatpush3.bf16.msra.mxu1 %v12599_v42  ;;  %11303 = vmatprep.subr.bf16.mxu0 %v12609_v29 }
 0x72b   :  { %11495 = vmatprep.subr.bf16.mxu1 %v12609_v29 }
 0x72d   :  { %11305 = vmatpush3.bf16.msra.mxu0 %v12609_v29 }
 0x72e   :  { %11497 = vmatpush3.bf16.msra.mxu1 %v12609_v29  ;;  %11499 = vmatprep.subr.bf16.mxu0 %v12524_v63 }
 0x730   :  { %9612 = vmatmul.mubr.f32.vlgmr.msra.gmra.mrb[8].mxu0 %v13679_v30 }
 0x731   :  { %9822 = vmatmul.mubr.f32.vlgmr.msra.gmra.mrb[8].mxu1 %v13681_v24  ;;  %11501 = vmatpush3.bf16.msra.mxu0 %v12524_v63 }
 0x732   :  { %11503 = vmatprep.subr.bf16.mxu0 %v12528_v32 }
 0x735   :  { %11505 = vmatpush3.bf16.msra.mxu0 %v12528_v32 }
 0x736   :  { %11507 = vmatprep.subr.bf16.mxu0 %v12546_v58 }
 0x739   :  { %11509 = vmatpush3.bf16.msra.mxu0 %v12546_v58 }
 0x73a   :  { %11511 = vmatprep.subr.bf16.mxu0 %v12563_v3 }
 0x73d   :  { %11513 = vmatpush3.bf16.msra.mxu0 %v12563_v3 }
 0x73e   :  { %11515 = vmatprep.subr.bf16.mxu0 %v12571_v4 }
 0x741   :  { %11517 = vmatpush3.bf16.msra.mxu0 %v12571_v4 }
 0x742   :  { %11519 = vmatprep.subr.bf16.mxu0 %v12585_v9 }
 0x745   :  { %11521 = vmatpush3.bf16.msra.mxu0 %v12585_v9 }
 0x746   :  { %11523 = vmatprep.subr.bf16.mxu0 %v12599_v42 }
 0x749   :  { %11525 = vmatpush3.bf16.msra.mxu0 %v12599_v42 }
 0x74a   :  { %11527 = vmatprep.subr.bf16.mxu0 %v12609_v29 }
 0x74d   :  { %11529 = vmatpush3.bf16.msra.mxu0 %v12609_v29 }
 0x74e   :  { %11531 = vmatprep.subr.bf16.mxu0 %v12639_v46 }
 0x803   :  { %v9613_v6 = vpop.f32.mrb[8].mxu0 }
 0x804   :  { %v9823_v52 = vpop.f32.mrb[8].mxu1  ;;  %v5715_v0 = vpop.f32.mrb[9].mxu0  ;;  %v6424_v62 = vmul.f32 %v9613_v6, %v7485_v31  ;;  %v6440_v45 = vsub.f32 1.0, %v9613_v6 }
 0x805   :  { %v6416_v43 = vmul.f32 2.0, %v9823_v52  ;;  %v6405_v17 = vpop.f32.mrb[9].mxu1  ;;  %v6423_v30 = vmul.f32 %v7485_v31, %v5715_v0  ;;  %v6439_v57 = vsub.f32 1.0, %v5715_v0 }
 0x806   :  { %v6415_v38 = vmul.f32 2.0, %v6405_v17 }
 0x807   :  { %v6418_v27 = vadd.f32 1.0, %v6416_v43 }
 0x808   :  { %v6417_v24 = vadd.f32 1.0, %v6415_v38 }
 0x809   :  { %v6426_v47 = vadd.f32 %v6424_v62, %v6418_v27  ;;  %v6434_v23 = vadd.f32 %v7485_v31, %v6418_v27 }
 0x80a   :  { %v6425_v1 = vadd.f32 %v6423_v30, %v6417_v24  ;;  %v6433_v8 = vadd.f32 %v7485_v31, %v6417_v24 }
 0x80b   :  { %v6428_v18 = vmax.f32 %v6426_v47, 1e-15 }
 0x80c   :  { %v6427_v7 = vmax.f32 %v6425_v1, 1e-15 }
 0x80d   :  { %11860 = vrcp.f32 %v6428_v18 }
 0x80e   :  { %11862 = vrcp.f32 %v6427_v7 }
 0x817   :  { %v11861_v14 = vpop.eup %11860 }
 0x818   :  { %v11863_v44 = vpop.eup %11862  ;;  %v6436_v20 = vmul.f32 %v11861_v14, %v6434_v23  ;;  %v6442_v28 = vmul.f32 %v11861_v14, %v6440_v45 }
 0x819   :  { %v6435_v16 = vmul.f32 %v11863_v44, %v6433_v8  ;;  %v6441_v54 = vmul.f32 %v11863_v44, %v6439_v57 }
 0x81a   :  { %v6438_v60 = vmul.f32 %v6436_v20, %v13667_v33  ;;  %v6444_v15 = vmul.f32 %v13663_v12, %v6442_v28 }
 0x81b   :  { %v6437_v50 = vmul.f32 %v6435_v16, %v13669_v34  ;;  %v6443_v41 = vmul.f32 %v13663_v12, %v6441_v54 }
 0x81c   :  { %v13921_v52 = vadd.f32 %v6444_v15, %v6438_v60 }
 0x81d   :  { %v13923_v6 = vadd.f32 %v6443_v41, %v6437_v50 }
 0x81e   :  { %v6448_v31 = vmul.f32 %v13921_v52, %v13921_v52 }
 0x81f   :  { %v6447_v0 = vmul.f32 %v13923_v6, %v13923_v6 }
 0x820   :  { %v13929_v43 = vand.u32 4294901760, %v6448_v31 }
 0x821   :  { %v13931_v17 = vand.u32 4294901760, %v6447_v0 }
 0x822   :  { %v13934_v33 = vsub.f32 %v6448_v31, %v13929_v43 }
 0x823   :  { %v6531_v34 = vsub.f32 %v6447_v0, %v13931_v17 }
 0x824   :  { %v6542_v12 = vand.u32 4294901760, %v13934_v33 }
 0x825   :  { %v6532_v38 = vand.u32 4294901760, %v6531_v34 }
 0x826   :  { %v6543_v62 = vsub.f32 %v13934_v33, %v6542_v12 }
 0x827   :  { %v6533_v27 = vsub.f32 %v6531_v34, %v6532_v38 }
 0x828   :  { %v6544_v24 = vand.u32 4294901760, %v6543_v62 }
 0x829   :  { %v6534_v30 = vand.u32 4294901760, %v6533_v27 }
 0x82b   :  { %9856 = vmatprep.mubr.f32.mxu0 %v6534_v30 }
 0x82c   :  { %9857 = vmatmul.mubr.f32.vlgmr.msra.gmra.mrb[10].mxu0 %v6544_v24 }
 0x82d   :  { %11533 = vmatpush3.bf16.msra.mxu0 %v12639_v46  ;;  %9891 = vmatprep.mubr.f32.mxu0 %v13931_v17  ;;  %v13962_v46 = vld [vmem:[%s14154_s6] sm:$0x1]  ;;  %s12078_s6 = smov 96  }
 0x82e   :  { %11535 = vmatprep.subr.bf16.mxu0 %v12662_v21  ;;  %v7182_v31 = vmul.f32 %v13962_v46, %v13962_v46 }
 0x830   :  { %v7184_v0 = vsel %vm7183_vm0, %v7182_v31, 0.0 }
 0x831   :  { %11537 = vmatpush3.bf16.msra.mxu0 %v12662_v21  ;;  %v14259_v21 = vld [vmem:[#allocation17_spill] sm:$0xff] }
 0x832   :  { %11539 = vmatprep.subr.bf16.mxu0 %v12707_v55 }
 0x835   :  { %11541 = vmatpush3.bf16.msra.mxu0 %v12707_v55 }
 0x836   :  { %11543 = vmatprep.subr.bf16.mxu0 %v12712_v19 }
 0x839   :  { %11545 = vmatpush3.bf16.msra.mxu0 %v12712_v19  ;;  %v13967_v19 = vrot.slane %v13962_v46, %v14259_v21 }
 0x83a   :  { %11547 = vmatprep.subr.bf16.mxu0 %v12737_v5 }
 0x83b   :  { %7209 = vrot.lane.b32.xlu0 %v13967_v19, %s12077_s0 }
 0x83d   :  { %11549 = vmatpush3.bf16.msra.mxu0 %v12737_v5 }
 0x83e   :  { %11551 = vmatprep.subr.bf16.mxu0 %v12763_v11 }
 0x841   :  { %11553 = vmatpush3.bf16.msra.mxu0 %v12763_v11 }
 0x842   :  { %11555 = vmatprep.subr.bf16.mxu0 %v12783_v56 }
 0x845   :  { %11557 = vmatpush3.bf16.msra.mxu0 %v12783_v56 }
 0x846   :  { %11559 = vmatprep.subr.bf16.mxu0 %v12796_v36 }
 0x849   :  { %11561 = vmatpush3.bf16.msra.mxu0 %v12796_v36 }
 0x84a   :  { %11563 = vmatprep.subr.bf16.mxu0 %v12800_v59 }
 0x84c   :  { %9892 = vmatmul.mubr.f32.vlgmr.msra.gmra.mrb[10].mxu0 %v13929_v43 }
 0x84d   :  { %11565 = vmatpush3.bf16.msra.mxu0 %v12800_v59  ;;  %9926 = vmatprep.mubr.f32.mxu0 %v6531_v34 }
 0x84e   :  { %11567 = vmatprep.subr.bf16.mxu0 %v12804_v61 }
 0x851   :  { %11569 = vmatpush3.bf16.msra.mxu0 %v12804_v61 }
 0x852   :  { %11571 = vmatprep.subr.bf16.mxu0 %v14245_v13 }
 0x855   :  { %11573 = vmatpush3.bf16.msra.mxu0 %v14245_v13 }
 0x856   :  { %11575 = vmatprep.subr.bf16.mxu0 %v14246_v25 }
 0x859   :  { %11577 = vmatpush3.bf16.msra.mxu0 %v14246_v25 }
 0x85a   :  { %11579 = vmatprep.subr.bf16.mxu0 %v14247_v48 }
 0x85d   :  { %11581 = vmatpush3.bf16.msra.mxu0 %v14247_v48 }
 0x85e   :  { %11583 = vmatprep.subr.bf16.mxu0 %v14248_v49 }
 0x861   :  { %11585 = vmatpush3.bf16.msra.mxu0 %v14248_v49 }
 0x862   :  { %11587 = vmatprep.subr.bf16.mxu0 %v14249_v37 }
 0x865   :  { %11589 = vmatpush3.bf16.msra.mxu0 %v14249_v37 }
 0x866   :  { %11591 = vmatprep.subr.bf16.mxu0 %v14250_v39 }
 0x869   :  { %11593 = vmatpush3.bf16.msra.mxu0 %v14250_v39 }
 0x86a   :  { %11595 = vmatprep.subr.bf16.mxu0 %v12524_v63 }
 0x86c   :  { %9927 = vmatmul.mubr.f32.vlgmr.msra.gmra.mrb[10].mxu0 %v13934_v33 }
 0x86d   :  { %11597 = vmatpush3.bf16.msra.mxu0 %v12524_v63  ;;  %9961 = vmatprep.mubr.f32.mxu0 %v6532_v38 }
 0x86e   :  { %11599 = vmatprep.subr.bf16.mxu0 %v12528_v32 }
 0x871   :  { %11601 = vmatpush3.bf16.msra.mxu0 %v12528_v32 }
 0x872   :  { %11603 = vmatprep.subr.bf16.mxu0 %v12546_v58 }
 0x875   :  { %11605 = vmatpush3.bf16.msra.mxu0 %v12546_v58 }
 0x876   :  { %11607 = vmatprep.subr.bf16.mxu0 %v12563_v3 }
 0x879   :  { %11609 = vmatpush3.bf16.msra.mxu0 %v12563_v3 }
 0x87a   :  { %11611 = vmatprep.subr.bf16.mxu0 %v12571_v4 }
 0x87d   :  { %11613 = vmatpush3.bf16.msra.mxu0 %v12571_v4 }
 0x87e   :  { %11615 = vmatprep.subr.bf16.mxu0 %v12585_v9 }
 0x881   :  { %11617 = vmatpush3.bf16.msra.mxu0 %v12585_v9 }
 0x882   :  { %11619 = vmatprep.subr.bf16.mxu0 %v12599_v42 }
 0x885   :  { %11621 = vmatpush3.bf16.msra.mxu0 %v12599_v42 }
 0x886   :  { %11623 = vmatprep.subr.bf16.mxu0 %v12609_v29 }
 0x889   :  { %11625 = vmatpush3.bf16.msra.mxu0 %v12609_v29 }
 0x88a   :  { %11627 = vmatprep.subr.bf16.mxu0 %v14251_v26 }
 0x88c   :  { %9962 = vmatmul.mubr.f32.vlgmr.msra.gmra.mrb[10].mxu0 %v6542_v12 }
 0x88d   :  { %11629 = vmatpush3.bf16.msra.mxu0 %v14251_v26  ;;  %9996 = vmatprep.mubr.f32.mxu0 %v13931_v17 }
 0x88e   :  { %11631 = vmatprep.subr.bf16.mxu0 %v14252_v51 }
 0x891   :  { %11633 = vmatpush3.bf16.msra.mxu0 %v14252_v51 }
 0x892   :  { %11635 = vmatprep.subr.bf16.mxu0 %v14253_v40 }
 0x895   :  { %11637 = vmatpush3.bf16.msra.mxu0 %v14253_v40 }
 0x896   :  { %11639 = vmatprep.subr.bf16.mxu0 %v14254_v22 }
 0x899   :  { %11641 = vmatpush3.bf16.msra.mxu0 %v14254_v22 }
 0x89a   :  { %11643 = vmatprep.subr.bf16.mxu0 %v14255_v10 }
 0x89d   :  { %11645 = vmatpush3.bf16.msra.mxu0 %v14255_v10 }
 0x89e   :  { %11647 = vmatprep.subr.bf16.mxu0 %v14256_v2 }
 0x8a1   :  { %11649 = vmatpush3.bf16.msra.mxu0 %v14256_v2 }
 0x8a2   :  { %11651 = vmatprep.subr.bf16.mxu0 %v14257_v35 }
 0x8a5   :  { %11653 = vmatpush3.bf16.msra.mxu0 %v14257_v35 }
 0x8a6   :  { %11655 = vmatprep.subr.bf16.mxu0 %v14258_v53 }
 0x8a9   :  { %11657 = vmatpush3.bf16.msra.mxu0 %v14258_v53 }
 0x8aa   :  { %11659 = vmatprep.subr.bf16.mxu0 %v12524_v63 }
 0x8ac   :  { %9997 = vmatmul.mubr.f32.vlgmr.msra.gmra.mrb[10].mxu0 %v13929_v43 }
 0x8ad   :  { %11661 = vmatpush3.bf16.msra.mxu0 %v12524_v63  ;;  %10031 = vmatprep.mubr.f32.mxu0 %v13931_v17  ;;  %v7210_v54 = vpop.permute.xlu0 %7209 }
 0x8ae   :  { %11663 = vmatprep.subr.bf16.mxu0 %v12528_v32 }
 0x8b1   :  { %11665 = vmatpush3.bf16.msra.mxu0 %v12528_v32 }
 0x8b2   :  { %11667 = vmatprep.subr.bf16.mxu0 %v12546_v58 }
 0x8b5   :  { %11669 = vmatpush3.bf16.msra.mxu0 %v12546_v58 }
 0x8b6   :  { %11671 = vmatprep.subr.bf16.mxu0 %v12563_v3 }
 0x8b9   :  { %11673 = vmatpush3.bf16.msra.mxu0 %v12563_v3 }
 0x8ba   :  { %11675 = vmatprep.subr.bf16.mxu0 %v12571_v4 }
 0x8bd   :  { %11677 = vmatpush3.bf16.msra.mxu0 %v12571_v4 }
 0x8be   :  { %11679 = vmatprep.subr.bf16.mxu0 %v12585_v9 }
 0x8c1   :  { %11681 = vmatpush3.bf16.msra.mxu0 %v12585_v9 }
 0x8c2   :  { %11683 = vmatprep.subr.bf16.mxu0 %v12599_v42 }
 0x8c5   :  { %11685 = vmatpush3.bf16.msra.mxu0 %v12599_v42 }
 0x8c6   :  { %11687 = vmatprep.subr.bf16.mxu0 %v12609_v29 }
 0x8c9   :  { %11689 = vmatpush3.bf16.msra.mxu0 %v12609_v29 }
 0x8cc   :  { %10032 = vmatmul.mubr.f32.vlgmr.msra.gmra.mrb[10].mxu0 %v13929_v43 }
 0x99f   :  { %v10033_v63 = vpop.f32.mrb[10].mxu0 }
 0x9a0   :  { %11864 = vrsqrt.f32 %v10033_v63  ;;  %v7123_v32 = vpop.f32.mrb[11].mxu0  ;;  %vm7142_vm12 = vcmp.eq.f32.partialorder %v10033_v63, inf  ;;  %v7145_v55 = vand.u32 2147483648, %v10033_v63  ;;  %vm7144_vm13 = vcmp.eq.f32.partialorder %v10033_v63, 0.0 }
 0x9a1   :  { %11866 = vrsqrt.f32 %v7123_v32  ;;  %vm7135_vm14 = vcmp.eq.f32.partialorder %v7123_v32, inf  ;;  %v7138_v42 = vand.u32 2147483648, %v7123_v32  ;;  %vm7137_vm15 = vcmp.eq.f32.partialorder %v7123_v32, 0.0 }
 0x9aa   :  { %v11865_v58 = vpop.eup %11864 }
 0x9ab   :  { %v11867_v3 = vpop.eup %11866  ;;  %v7141_v4 = vmul.f32 %v11865_v58, %v10033_v63 }
 0x9ac   :  { %v7134_v9 = vmul.f32 %v11867_v3, %v7123_v32 }
 0x9ad   :  { %v7143_v5 = vsel %vm7142_vm12, %v10033_v63, %v7141_v4 }
 0x9ae   :  { %v7146_v11 = vsel %vm7144_vm13, %v7145_v55, %v7143_v5  ;;  %v7136_v56 = vsel %vm7135_vm14, %v7123_v32, %v7134_v9 }
 0x9af   :  { %v7148_v29 = vmax.f32 %v7146_v11, 1e-15  ;;  %v7139_v36 = vsel %vm7137_vm15, %v7138_v42, %v7136_v56 }
 0x9b0   :  { %v7147_v59 = vmax.f32 %v7139_v36, 1e-15 }
 0x9b1   :  { %v7487_v61 = vclamps-f32 %v7148_v29, 0.9999999 }
 0x9b2   :  { %v7486_v13 = vclamps-f32 %v7147_v59, 0.9999999 }
 0x9b3   :  { %v7156_v25 = vsub.f32 1.0, %v7487_v61  ;;  %v7154_v49 = vadd.f32 1.0, %v7487_v61 }
 0x9b4   :  { %v7155_v48 = vsub.f32 1.0, %v7486_v13  ;;  %v7153_v39 = vadd.f32 1.0, %v7486_v13 }
 0x9b5   :  { %11868 = vrcp.f32 %v7156_v25 }
 0x9b6   :  { %11870 = vrcp.f32 %v7155_v48 }
 0x9bf   :  { %v11869_v37 = vpop.eup %11868 }
 0x9c0   :  { %v11871_v26 = vpop.eup %11870  ;;  %v7160_v51 = vmul.f32 %v11869_v37, %v7154_v49 }
 0x9c1   :  { %v7158_v40 = vmul.f32 %v11871_v26, %v7153_v39 }
 0x9c2   :  { %11872 = vlog2.f32 %v7160_v51 }
 0x9c3   :  { %11874 = vlog2.f32 %v7158_v40 }
 0x9c4   :  { %11876 = vrcp.f32 %v7148_v29 }
 0x9c5   :  { %11878 = vrcp.f32 %v7147_v59 }
 0x9cc   :  { %v11873_v22 = vpop.eup %11872 }
 0x9cd   :  { %v11875_v10 = vpop.eup %11874  ;;  %v7164_v2 = vmul.f32 0.6931472, %v11873_v22 }
 0x9ce   :  { %v7162_v35 = vmul.f32 0.6931472, %v11875_v10  ;;  %v11877_v47 = vpop.eup %11876 }
 0x9cf   :  { %v7166_v53 = vmul.f32 0.5, %v7164_v2  ;;  %v11879_v18 = vpop.eup %11878 }
 0x9d0   :  { %v7165_v1 = vmul.f32 0.5, %v7162_v35 }
 0x9d1   :  { %v7170_v7 = vmul.f32 %v11877_v47, %v7166_v53 }
 0x9d2   :  { %v7168_v45 = vmul.f32 %v11879_v18, %v7165_v1 }
 0x9d3   :  { %v7172_v23 = vmul.f32 %v7170_v7, %v13921_v52 }
 0x9d4   :  { %v7171_v14 = vmul.f32 %v7168_v45, %v13923_v6 }
 0x9d5   :  { %v7174_v57 = vmul.f32 0.5, %v7172_v23 }
 0x9d6   :  { %v7173_v8 = vmul.f32 0.5, %v7171_v14 }
 0x9d7   :  { %11880 = vtanh.f32 %v7174_v57  ;;  %v14083_v57 = vld [vmem:[#allocation5] sm:$0xff] }
 0x9d8   :  { %11882 = vtanh.f32 %v7173_v8  ;;  %v7268_v8 = vsub.f32 0.0, %v14083_v57 }
 0x9e1   :  { %v11881_v44 = vpop.eup %11880 }
 0x9e2   :  { %v11883_v20 = vpop.eup %11882  ;;  %v7178_v28 = vadd.f32 1.0, %v11881_v44 }
 0x9e3   :  { %v7177_v16 = vadd.f32 1.0, %v11883_v20 }
 0x9e4   :  { %v14042_v60 = vmul.f32 0.5, %v7178_v28 }
 0x9e5   :  { %v14044_v15 = vmul.f32 0.5, %v7177_v16 }
 0x9e6   :  { %v7213_v50 = vmul.f32 %v7210_v54, %v14042_v60  ;;  %v14049_v41 = vmul.f32 %v14042_v60, %v14042_v60 }
 0x9e7   :  { %v7212_v52 = vmul.f32 %v7210_v54, %v14044_v15  ;;  %v14058_v6 = vmul.f32 %v14044_v15, %v14044_v15 }
 0x9e8   :  { %7193 = vrot.lane.b32.xlu0 %v14049_v41, %s12078_s6  ;;  %7218 = vrot.lane.b32.xlu1 %v7213_v50, %s12078_s6 }
 0x9ec   :  { %7216 = vrot.lane.b32.xlu1 %v7212_v52, %s12078_s6 }
 0x9f0   :  { %7191 = vrot.lane.b32.xlu1 %v14058_v6, %s12078_s6 }
 0xa14   :  { %7185 = vadd.xlane.f32.xlu1 %v7184_v0 }
 0xa5a   :  { %v7219_v43 = vpop.permute.xlu1 %7218  ;;  %v7194_v17 = vpop.permute.xlu0 %7193 }
 0xa5b   :  { %v7225_v33 = vsel %vm139_vm1, %v7219_v43, 0.0  ;;  %v7200_v34 = vsel %vm139_vm1, %v7194_v17, 0.0 }
 0xa5c   :  { %7226 = vadd.xlane.f32.xlu0 %v7225_v33  ;;  %7201 = vadd.xlane.f32.xlu1 %v7200_v34 }
 0xa5e   :  { %v7217_v12 = vpop.permute.xlu1 %7216 }
 0xa5f   :  { %v7222_v38 = vsel %vm139_vm1, %v7217_v12, 0.0  ;;  %v14260_v12 = vld [vmem:[#allocation16_spill] sm:$0xff] }
 0xa60   :  { %7223 = vadd.xlane.f32.xlu0 %v7222_v38 }
 0xa62   :  { %v7192_v62 = vpop.permute.xlu1 %7191 }
 0xa63   :  { %v7197_v27 = vsel %vm139_vm1, %v7192_v62, 0.0 }
 0xa64   :  { %7198 = vadd.xlane.f32.xlu0 %v7197_v27 }
 0xaa1   :  { %v7186_v30 = vpop.xlane.xlu1 %7185 }
 0xaa2   :  { %v7235_v24 = vrot.slane %v7186_v30, %v14259_v21 }
 0xae9   :  { %v7202_v46 = vpop.xlane.xlu1 %7201  ;;  %v7227_v63 = vpop.xlane.xlu0 %7226 }
 0xaea   :  { %v7229_v32 = vmul.f32 2.0, %v7227_v63  ;;  %v7237_v58 = vmul.f32 %v7235_v24, %v7202_v46  ;;  %v7253_v13 = vsub.f32 1.0, %v7202_v46  ;;  %v14261_v63 = vld [vmem:[#allocation18_spill] sm:$0xff] }
 0xaec   :  { %v7231_v3 = vadd.f32 1.0, %v7229_v32 }
 0xaed   :  { %v7224_v4 = vpop.xlane.xlu0 %7223 }
 0xaee   :  { %v7239_v55 = vadd.f32 %v7237_v58, %v7231_v3  ;;  %v7247_v9 = vadd.f32 %v7235_v24, %v7231_v3  ;;  %v7228_v5 = vmul.f32 2.0, %v7224_v4  ;;  %v7322_v4 = vsub.f32 1.0, %v14260_v12 }
 0xaf0   :  { %v7241_v42 = vmax.f32 %v7239_v55, 1e-15  ;;  %v7230_v11 = vadd.f32 1.0, %v7228_v5 }
 0xaf1   :  { %v7199_v56 = vpop.xlane.xlu0 %7198 }
 0xaf2   :  { %11884 = vrcp.f32 %v7241_v42  ;;  %v7246_v29 = vadd.f32 %v7235_v24, %v7230_v11  ;;  %v7236_v36 = vmul.f32 %v7235_v24, %v7199_v56  ;;  %v7252_v37 = vsub.f32 1.0, %v7199_v56 }
 0xaf3   :  { %v7323_v42 = vsub.f32 1.0, %v14261_v63 }
 0xaf4   :  { %v7238_v59 = vadd.f32 %v7236_v36, %v7230_v11 }
 0xaf6   :  { %v7240_v61 = vmax.f32 %v7238_v59, 1e-15 }
 0xaf8   :  { %11886 = vrcp.f32 %v7240_v61 }
 0xafc   :  { %v11885_v21 = vpop.eup %11884 }
 0xafd   :  { %v7255_v25 = vmul.f32 %v11885_v21, %v7253_v13  ;;  %v7249_v48 = vmul.f32 %v11885_v21, %v7247_v9  ;;  %v7341_v13 = vsel %vm139_vm1, %v14049_v41, 0.0  ;;  %v7338_v21 = vsel %vm139_vm1, %v14058_v6, 0.0 }
 0xaff   :  { %v7257_v49 = vmul.f32 %v7255_v25, %v13967_v19  ;;  %v7251_v22 = vmul.f32 %v7249_v48, %v14042_v60 }
 0xb01   :  { %7262 = vrot.lane.b32.xlu1 %v7257_v49, %s12077_s0 }
 0xb02   :  { %v11887_v39 = vpop.eup %11886 }
 0xb03   :  { %v7254_v26 = vmul.f32 %v11887_v39, %v7252_v37  ;;  %v7248_v51 = vmul.f32 %v11887_v39, %v7246_v29 }
 0xb05   :  { %v7256_v40 = vmul.f32 %v7254_v26, %v13967_v19  ;;  %v7250_v35 = vmul.f32 %v7248_v51, %v14044_v15  ;;  %v14079_v19 = vld [vmem:[#allocation5 + $0x8] sm:$0xff] }
 0xb06   :  { %v7269_v7 = vsub.f32 0.0, %v14079_v19 }
 0xb07   :  { %7260 = vrot.lane.b32.xlu0 %v7256_v40, %s12077_s0 }
 0xb73   :  { %v7263_v10 = vpop.permute.xlu1 %7262 }
 0xb74   :  { %v7267_v2 = vadd.f32 %v7263_v10, %v7251_v22 }
 0xb76   :  { %7290 = vrot.lane.b32.xlu1 %v7267_v2, %s12078_s6  ;;  %v7271_v18 = vmul.f32 %v7267_v2, %v7267_v2 }
 0xb79   :  { %v7261_v53 = vpop.permute.xlu0 %7260 }
 0xb7a   :  { %v7266_v47 = vadd.f32 %v7261_v53, %v7250_v35 }
 0xb7c   :  { %7288 = vrot.lane.b32.xlu1 %v7266_v47, %s12078_s6  ;;  %v7270_v1 = vmul.f32 %v7266_v47, %v7266_v47 }
 0xb7e   :  { %7274 = vrot.lane.b32.xlu0 %v7270_v1, %s12078_s6 }
 0xb80   :  { %7276 = vrot.lane.b32.xlu1 %v7271_v18, %s12078_s6 }
 0xbe8   :  { %v7291_v45 = vpop.permute.xlu1 %7290 }
 0xbe9   :  { %v7295_v23 = vmul.f32 %v7291_v45, %v7269_v7 }
 0xbeb   :  { %v7299_v14 = vsel %vm139_vm1, %v7295_v23, 0.0 }
 0xbec   :  { %7300 = vadd.xlane.f32.xlu1 %v7299_v14 }
 0xbee   :  { %v7289_v44 = vpop.permute.xlu1 %7288 }
 0xbef   :  { %v7294_v20 = vmul.f32 %v7289_v44, %v7268_v8 }
 0xbf0   :  { %v7275_v16 = vpop.permute.xlu0 %7274 }
 0xbf1   :  { %v7296_v28 = vsel %vm139_vm1, %v7294_v20, 0.0  ;;  %v7280_v54 = vsel %vm139_vm1, %v7275_v16, 0.0 }
 0xbf2   :  { %7297 = vadd.xlane.f32.xlu0 %v7296_v28  ;;  %v7277_v50 = vpop.permute.xlu1 %7276 }
 0xbf3   :  { %v7283_v52 = vsel %vm139_vm1, %v7277_v50, 0.0 }
 0xbf6   :  { %7281 = vadd.xlane.f32.xlu0 %v7280_v54 }
 0xbfa   :  { %7284 = vadd.xlane.f32.xlu0 %v7283_v52 }
 0xc79   :  { %v7301_v43 = vpop.xlane.xlu1 %7300 }
 0xc7a   :  { %v7303_v34 = vmul.f32 2.0, %v7301_v43 }
 0xc7c   :  { %v7305_v24 = vadd.f32 1.0, %v7303_v34 }
 0xc7f   :  { %v7298_v31 = vpop.xlane.xlu0 %7297 }
 0xc80   :  { %v7302_v0 = vmul.f32 2.0, %v7298_v31 }
 0xc82   :  { %v7304_v17 = vadd.f32 1.0, %v7302_v0 }
 0xc83   :  { %v7282_v33 = vpop.xlane.xlu0 %7281 }
 0xc84   :  { %v7306_v38 = vmul.f32 %v7282_v33, %v14260_v12  ;;  %v7316_v62 = vadd.f32 %v7304_v17, %v7282_v33 }
 0xc86   :  { %v7308_v27 = vadd.f32 %v7306_v38, %v7304_v17 }
 0xc87   :  { %v7285_v30 = vpop.xlane.xlu0 %7284 }
 0xc88   :  { %v7310_v46 = vmax.f32 %v7308_v27, 1e-15  ;;  %v7307_v32 = vmul.f32 %v7285_v30, %v14261_v63  ;;  %v7317_v11 = vadd.f32 %v7305_v24, %v7285_v30 }
 0xc8a   :  { %11888 = vrcp.f32 %v7310_v46  ;;  %v7309_v58 = vadd.f32 %v7307_v32, %v7305_v24 }
 0xc8c   :  { %v7311_v3 = vmax.f32 %v7309_v58, 1e-15 }
 0xc8e   :  { %11890 = vrcp.f32 %v7311_v3 }
 0xc94   :  { %v11889_v55 = vpop.eup %11888 }
 0xc95   :  { %v7318_v9 = vmul.f32 %v11889_v55, %v7316_v62  ;;  %v7324_v5 = vmul.f32 %v11889_v55, %v7322_v4 }
 0xc97   :  { %v7326_v56 = vmul.f32 %v7324_v5, %v7266_v47  ;;  %v7320_v25 = vmul.f32 %v7318_v9, %v7268_v8 }
 0xc98   :  { %v11891_v29 = vpop.eup %11890 }
 0xc99   :  { %v7319_v36 = vmul.f32 %v11891_v29, %v7317_v11  ;;  %7330 = vrot.lane.b32.xlu0 %v7326_v56, %s12078_s6  ;;  %v7325_v59 = vmul.f32 %v11891_v29, %v7323_v42 }
 0xc9b   :  { %v7327_v61 = vmul.f32 %v7325_v59, %v7267_v2  ;;  %v7321_v39 = vmul.f32 %v7319_v36, %v7269_v7 }
 0xc9d   :  { %7332 = vrot.lane.b32.xlu1 %v7327_v61, %s12078_s6 }
 0xcb8   :  { %7342 = vadd.xlane.f32.xlu0 %v7341_v13 }
 0xcc1   :  { %7339 = vadd.xlane.f32.xlu1 %v7338_v21 }
 0xd0b   :  { %v7331_v48 = vpop.permute.xlu0 %7330 }
 0xd0c   :  { %v7336_v49 = vadd.f32 %v7331_v48, %v7320_v25 }
 0xd0e   :  { %v14104_v37 = vmul.f32 %v7336_v49, %v14044_v15 }
 0xd0f   :  { %v7333_v26 = vpop.permute.xlu1 %7332 }
 0xd10   :  { %v7337_v51 = vadd.f32 %v7333_v26, %v7321_v39  ;;  %v7362_v40 = vmul.f32 %v14104_v37, %v14104_v37 }
 0xd12   :  { %v14109_v22 = vmul.f32 %v7337_v51, %v14042_v60  ;;  %v7364_v41 = vsel %vm139_vm1, %v7362_v40, 0.0 }
 0xd13   :  { %7365 = vadd.xlane.f32.xlu0 %v7364_v41 }
 0xd14   :  { %v7363_v6 = vmul.f32 %v14109_v22, %v14109_v22 }
 0xd16   :  { %v7367_v10 = vsel %vm139_vm1, %v7363_v6, 0.0 }
 0xd17   :  { %7368 = vadd.xlane.f32.xlu1 %v7367_v10 }
 0xd45   :  { %v7343_v2 = vpop.xlane.xlu0 %7342 }
 0xd46   :  { %vm7353_vm4 = vcmp.eq.f32.partialorder %v7343_v2, inf  ;;  %v7356_v23 = vand.u32 2147483648, %v7343_v2  ;;  %vm7355_vm5 = vcmp.eq.f32.partialorder %v7343_v2, 0.0 }
 0xd4e   :  { %v7340_v15 = vpop.xlane.xlu1 %7339 }
 0xd4f   :  { %11892 = vrsqrt.f32 %v7340_v15  ;;  %vm7346_vm2 = vcmp.eq.f32.partialorder %v7340_v15, inf  ;;  %v7349_v18 = vand.u32 2147483648, %v7340_v15  ;;  %vm7348_vm3 = vcmp.eq.f32.partialorder %v7340_v15, 0.0 }
 0xd50   :  { %11894 = vrsqrt.f32 %v7343_v2 }
 0xd59   :  { %v11893_v35 = vpop.eup %11892 }
 0xd5a   :  { %v7345_v53 = vmul.f32 %v11893_v35, %v7340_v15  ;;  %v11895_v47 = vpop.eup %11894 }
 0xd5b   :  { %v7352_v1 = vmul.f32 %v11895_v47, %v7343_v2 }
 0xd5c   :  { %v7347_v60 = vsel %vm7346_vm2, %v7340_v15, %v7345_v53 }
 0xd5d   :  { %v7350_v7 = vsel %vm7348_vm3, %v7349_v18, %v7347_v60  ;;  %v7354_v45 = vsel %vm7353_vm4, %v7343_v2, %v7352_v1 }
 0xd5e   :  { %v7358_v14 = vmax.f32 %v7350_v7, 1e-15  ;;  %v7357_v8 = vsel %vm7355_vm5, %v7356_v23, %v7354_v45 }
 0xd5f   :  { %v7359_v44 = vmax.f32 %v7357_v8, 1e-15 }
 0xd60   :  { %v7488_v20 = vclamps-f32 %v7358_v14, 0.9999999 }
 0xd61   :  { %v7489_v28 = vclamps-f32 %v7359_v44, 0.9999999 }
 0xd62   :  { %v7396_v16 = vsub.f32 1.0, %v7488_v20  ;;  %v7394_v52 = vadd.f32 1.0, %v7488_v20 }
 0xd63   :  { %v7397_v54 = vsub.f32 1.0, %v7489_v28  ;;  %v7395_v43 = vadd.f32 1.0, %v7489_v28 }
 0xd64   :  { %11896 = vrcp.f32 %v7396_v16 }
 0xd65   :  { %11898 = vrcp.f32 %v7397_v54 }
 0xd6e   :  { %v11897_v50 = vpop.eup %11896 }
 0xd6f   :  { %v7399_v31 = vmul.f32 %v11897_v50, %v7394_v52  ;;  %v11899_v0 = vpop.eup %11898 }
 0xd70   :  { %v7401_v17 = vmul.f32 %v11899_v0, %v7395_v43 }
 0xd71   :  { %11900 = vlog2.f32 %v7399_v31 }
 0xd7b   :  { %v11901_v38 = vpop.eup %11900 }
 0xd7c   :  { %v7403_v46 = vmul.f32 0.6931472, %v11901_v38 }
 0xd7e   :  { %v7406_v29 = vmul.f32 0.5, %v7403_v46 }
 0xda0   :  { %v7366_v33 = vpop.xlane.xlu0 %7365 }
 0xda1   :  { %11902 = vrsqrt.f32 %v7366_v33  ;;  %vm7372_vm6 = vcmp.eq.f32.partialorder %v7366_v33, inf  ;;  %v7375_v30 = vand.u32 2147483648, %v7366_v33  ;;  %vm7374_vm7 = vcmp.eq.f32.partialorder %v7366_v33, 0.0 }
 0xda2   :  { %11904 = vlog2.f32 %v7401_v17 }
 0xda4   :  { %v7369_v34 = vpop.xlane.xlu1 %7368 }
 0xda5   :  { %11906 = vrsqrt.f32 %v7369_v34  ;;  %vm7379_vm8 = vcmp.eq.f32.partialorder %v7369_v34, inf  ;;  %v7382_v11 = vand.u32 2147483648, %v7369_v34  ;;  %vm7381_vm9 = vcmp.eq.f32.partialorder %v7369_v34, 0.0 }
 0xda6   :  { %11908 = vrcp.f32 %v7358_v14 }
 0xda7   :  { %11910 = vrcp.f32 %v7359_v44 }
 0xdab   :  { %v11903_v62 = vpop.eup %11902 }
 0xdac   :  { %v7371_v27 = vmul.f32 %v11903_v62, %v7366_v33  ;;  %v11905_v24 = vpop.eup %11904 }
 0xdad   :  { %v7405_v56 = vmul.f32 0.6931472, %v11905_v24 }
 0xdae   :  { %v7373_v32 = vsel %vm7372_vm6, %v7366_v33, %v7371_v27 }
 0xdaf   :  { %v11907_v58 = vpop.eup %11906  ;;  %v7376_v3 = vsel %vm7374_vm7, %v7375_v30, %v7373_v32  ;;  %v7407_v49 = vmul.f32 0.5, %v7405_v56 }
 0xdb0   :  { %v7384_v55 = vmax.f32 %v7376_v3, 1e-15  ;;  %v7378_v9 = vmul.f32 %v11907_v58, %v7369_v34  ;;  %v11909_v5 = vpop.eup %11908 }
 0xdb1   :  { %v11911_v25 = vpop.eup %11910 }
 0xdb2   :  { %v7387_v36 = vmul.f32 %v11909_v5, %v7384_v55  ;;  %v7380_v59 = vsel %vm7379_vm8, %v7369_v34, %v7378_v9  ;;  %11912 = vrcp.f32 %v7384_v55 }
 0xdb3   :  { %v7383_v61 = vsel %vm7381_vm9, %v7382_v11, %v7380_v59 }
 0xdb4   :  { %v7408_v13 = vmul.f32 %v7406_v29, %v7387_v36  ;;  %v7385_v21 = vmax.f32 %v7383_v61, 1e-15 }
 0xdb6   :  { %11914 = vtanh.f32 %v7408_v13  ;;  %v7389_v48 = vmul.f32 %v11911_v25, %v7385_v21 }
 0xdb7   :  { %11916 = vrcp.f32 %v7385_v21 }
 0xdb8   :  { %v7409_v39 = vmul.f32 %v7407_v49, %v7389_v48 }
 0xdba   :  { %11918 = vtanh.f32 %v7409_v39 }
 0xdbc   :  { %v11913_v26 = vpop.eup %11912 }
 0xdc0   :  { %v11915_v51 = vpop.eup %11914 }
 0xdc1   :  { %v7413_v40 = vmul.f32 %v11915_v51, %v11913_v26  ;;  %v11917_v41 = vpop.eup %11916 }
 0xdc3   :  { %v7416_v6 = vmul.f32 %v7413_v40, %v14104_v37 }
 0xdc4   :  { %v11919_v10 = vpop.eup %11918 }
 0xdc5   :  { %v7426_v15 = vmul.f32 %v14083_v57, %v7416_v6  ;;  %v7415_v2 = vmul.f32 %v11919_v10, %v11917_v41  ;;  %v7418_v47 = vmul.f32 %v7416_v6, %v7416_v6 }
 0xdc7   :  { %v7428_v35 = vsel %vm139_vm1, %v7426_v15, 0.0  ;;  %v7417_v53 = vmul.f32 %v7415_v2, %v14109_v22  ;;  %v7420_v18 = vsel %vm139_vm1, %v7418_v47, 0.0 }
 0xdc8   :  { %7429 = vadd.xlane.f32.xlu0 %v7428_v35 }
 0xdc9   :  { %v7427_v1 = vmul.f32 %v14079_v19, %v7417_v53  ;;  %v7419_v7 = vmul.f32 %v7417_v53, %v7417_v53 }
 0xdcb   :  { %v7431_v60 = vsel %vm139_vm1, %v7427_v1, 0.0  ;;  %v7423_v37 = vsel %vm139_vm1, %v7419_v7, 0.0 }
 0xdcc   :  { %7432 = vadd.xlane.f32.xlu1 %v7431_v60  ;;  %7421 = vadd.xlane.f32.xlu0 %v7420_v18 }
 0xdd0   :  { %7424 = vadd.xlane.f32.xlu1 %v7423_v37 }
 0xe55   :  { %v7430_v45 = vpop.xlane.xlu0 %7429 }
 0xe56   :  { %v7434_v23 = vmul.f32 2.0, %v7430_v45 }
 0xe58   :  { %v7436_v44 = vadd.f32 1.0, %v7434_v23 }
 0xe59   :  { %v7433_v14 = vpop.xlane.xlu1 %7432  ;;  %v7422_v8 = vpop.xlane.xlu0 %7421 }
 0xe5a   :  { %v7435_v22 = vmul.f32 2.0, %v7433_v14  ;;  %v7438_v20 = vmul.f32 %v7422_v8, %v14260_v12  ;;  %v7448_v43 = vadd.f32 %v7436_v44, %v7422_v8 }
 0xe5c   :  { %v7440_v28 = vadd.f32 %v7438_v20, %v7436_v44  ;;  %v7437_v54 = vadd.f32 1.0, %v7435_v22 }
 0xe5d   :  { %v7425_v16 = vpop.xlane.xlu1 %7424 }
 0xe5e   :  { %v7442_v50 = vmax.f32 %v7440_v28, 1e-15  ;;  %v7439_v52 = vmul.f32 %v7425_v16, %v14261_v63  ;;  %v7449_v27 = vadd.f32 %v7437_v54, %v7425_v16 }
 0xe60   :  { %11920 = vrcp.f32 %v7442_v50  ;;  %v7441_v31 = vadd.f32 %v7439_v52, %v7437_v54 }
 0xe62   :  { %v7443_v0 = vmax.f32 %v7441_v31, 1e-15 }
 0xe64   :  { %11922 = vrcp.f32 %v7443_v0 }
 0xe6a   :  { %v11921_v17 = vpop.eup %11920 }
 0xe6b   :  { %v7450_v33 = vmul.f32 %v11921_v17, %v7448_v43  ;;  %v7454_v34 = vmul.f32 %v11921_v17, %v7322_v4 }
 0xe6d   :  { %v7452_v38 = vmul.f32 %v14083_v57, %v7450_v33  ;;  %v7456_v62 = vmul.f32 %v7454_v34, %v7416_v6 }
 0xe6e   :  { %v11923_v30 = vpop.eup %11922 }
 0xe6f   :  { %v7458_v24 = vadd.f32 %v7456_v62, %v7452_v38  ;;  %v7451_v46 = vmul.f32 %v11923_v30, %v7449_v27  ;;  %v7455_v32 = vmul.f32 %v11923_v30, %v7323_v42 }
 0xe71   :  { %7460 = vst.msk [vmem:[#allocation11] sm:$0xff] %vm139_vm1, %v7458_v24  ;;  %v7453_v58 = vmul.f32 %v14079_v19, %v7451_v46  ;;  %v7457_v3 = vmul.f32 %v7455_v32, %v7417_v53 }
 0xe73   :  { %v7459_v55 = vadd.f32 %v7457_v3, %v7453_v58 }
 0xe75   :  { %7461 = vst.msk [vmem:[#allocation11 + $0x8] sm:$0xff] %vm139_vm1, %v7459_v55 }
 0xe76   :  { %12047 = shalt.err (!%p12044_p2)
}
 0xe77   :  { %s12048_s14 = scalar_lea.hbm %s14155_s7, 256 }
 0xe78   :  { %p12049_p3 = scmp.ne.s32.totalorder %s14155_s7, %s12048_s14  ;;  %p12052_p4 = scmp.lt.u32.totalorder %s12048_s14, %s14155_s7 }
 0xe7a   :  { %p12054_p5 = pnand %p12052_p4, %p12049_p3 }
 0xe7c   :  { %12057 = shalt.err (!%p12054_p5)
}
 0xe7d   :  { %7473 = dma.vmem_to_hbm [thread:$0]  %s7468_s8, 256, %s14155_s7, [#allocation4], %s12067_s11, %s12067_s11, %s12068_s12  }
 0xe7e   :  { %12064 = dma.done.wait [#allocation4], 256  }
 0xe7f   :  { %12065 = vsyncadd [#allocation4], 4294967040 }
 0xe80   :  { %7477 = vsyncpa [#allocation3], 1 }
 0xe81   :  { %7478 = vsyncpa [#allocation6], 1 }
 0xe82   :  { %7479 = vsyncpa [#allocation9], 1 }
 0xe83   :  { %7480 = vsyncpa [#allocation4], 1 }

</bundles_post_ra>
